<compile_context>
chip_gen: v7x
topology: tpu7x:2x2x1
jax: 0.10.0
libtpu: 0.0.40
codegen_flags: <defaults>
</compile_context>

<pallas_src>
import functools

import jax
import jax.numpy as jnp
from jax.experimental import pallas as pl
from jax.experimental.pallas import tpu as pltpu

HIGHEST = jax.lax.Precision.HIGHEST   # reference only
BN_EPS = 1e-5
K = 5                                  # ConvTranspose2d kernel size everywhere

VMEM_LIMIT_BYTES = 32 * 1024 * 1024    # explicit scoped-VMEM limit (portable)
TILE_BYTE_BUDGET = 4 * 1024 * 1024     # per-row-tile byte budget (x2 double buffering)
ROW_TILE_CAP = 512                     # GEMM / elementwise rows per tile
STAT_ROW_TILE_CAP = 256                # stats rows per tile
COL_TILE_CAP = 2048                    # GEMM output columns per tile


# ----------------------------------------------------------------------------
# Tiling plans
# ----------------------------------------------------------------------------
def _round_up(x, m):
    return -(-x // m) * m


def _plan_rows(m, row_bytes, cap=ROW_TILE_CAP):
    """Row tile (multiple of 16) + zero-padded row count, sized to TILE_BYTE_BUDGET."""
    cap = min(cap, max(16, (TILE_BYTE_BUDGET // max(row_bytes, 1)) // 16 * 16))
    if m <= cap:
        tm = _round_up(m, 16)
        return tm, tm
    return cap, _round_up(m, cap)


def _plan_cols(nc):
    """Column tile + zero-padded column count (lane-dense: multiple of 128 when tiled)."""
    if nc < 128:
        return 128, 128
    if nc <= COL_TILE_CAP:
        return nc, nc
    n_tiles = -(-nc // COL_TILE_CAP)
    tn = _round_up(-(-nc // n_tiles), 128)
    return tn, tn * n_tiles


# ----------------------------------------------------------------------------
# Pallas kernels
# ----------------------------------------------------------------------------
def _gemm_kernel(x_ref, scale_ref, shift_ref, w_ref, o_ref, *, fuse_bn_relu):
    """o = act(x) @ w ; act = relu(x*scale + shift) if fuse_bn_relu else identity.
    bf16 MXU operands with f32 accumulation (native fast path on v5e/v6e/v7x)."""
    x = x_ref[...]
    if fuse_bn_relu:
        x = jnp.maximum(x.astype(jnp.float32) * scale_ref[...] + shift_ref[...], 0.0)
    o_ref[...] = jax.lax.dot(x.astype(jnp.bfloat16), w_ref[...],
                             preferred_element_type=jnp.float32)


def fused_gemm(x, w, scale=None, shift=None):
    """(M, Kc) @ (Kc, Nc) with optional fused per-input-channel BN affine + ReLU.

    The contraction (Kc <= 8*feature_dim) fits in one block, so the grid is
    (column tiles, row tiles) -- both "parallel" (v7x megacore shardable).  The weight
    tile is outer-loop resident while the M rows stream.  Rows are zero-padded to the
    tile size and columns zero-padded for lane density; padding is sliced off."""
    m, kc = x.shape
    nc = w.shape[1]
    tn, nc_pad = _plan_cols(nc)
    tm, m_pad = _plan_rows(m, row_bytes=tn * 4 + kc * 2)

    fuse = scale is not None
    if fuse:
        scale = scale.reshape(1, kc).astype(jnp.float32)
        shift = shift.reshape(1, kc).astype(jnp.float32)
    else:
        scale = jnp.ones((1, kc), jnp.float32)
        shift = jnp.zeros((1, kc), jnp.float32)

    xb = x.astype(jnp.bfloat16)
    if m_pad != m:
        xb = jnp.pad(xb, ((0, m_pad - m), (0, 0)))
    wb = w.astype(jnp.bfloat16)
    if nc_pad != nc:
        wb = jnp.pad(wb, ((0, 0), (0, nc_pad - nc)))   # lane-dense output columns

    out = pl.pallas_call(
        functools.partial(_gemm_kernel, fuse_bn_relu=fuse),
        out_shape=jax.ShapeDtypeStruct((m_pad, nc_pad), jnp.float32),
        grid=(nc_pad // tn, m_pad // tm),
        in_specs=[pl.BlockSpec((tm, kc), lambda j, i: (i, 0)),
                  pl.BlockSpec((1, kc), lambda j, i: (0, 0)),
                  pl.BlockSpec((1, kc), lambda j, i: (0, 0)),
                  pl.BlockSpec((kc, tn), lambda j, i: (0, j))],
        out_specs=pl.BlockSpec((tm, tn), lambda j, i: (i, j)),
        compiler_params=pltpu.CompilerParams(
            dimension_semantics=("parallel", "parallel"),
            vmem_limit_bytes=VMEM_LIMIT_BYTES),
    )(xb, scale, shift, wb)
    return out[:m, :nc]


def _col_stats_kernel(x_ref, sum_ref, sq_ref):
    """Single-pass per-column sum and sum-of-squares, accumulated across row tiles."""
    @pl.when(pl.program_id(0) == 0)
    def _():
        sum_ref[...] = jnp.zeros_like(sum_ref)
        sq_ref[...] = jnp.zeros_like(sq_ref)
    x = x_ref[...].astype(jnp.float32)
    sum_ref[...] += jnp.sum(x, axis=0, keepdims=True)
    sq_ref[...] += jnp.sum(x * x, axis=0, keepdims=True)


def column_stats(x):
    """x:(M, C) -> per-column (sum, sumsq) in f32.  Zero-row padding is exact."""
    m, c = x.shape
    tm, m_pad = _plan_rows(m, row_bytes=c * x.dtype.itemsize, cap=STAT_ROW_TILE_CAP)
    if m_pad != m:
        x = jnp.pad(x, ((0, m_pad - m), (0, 0)))
    s, q = pl.pallas_call(
        _col_stats_kernel,
        out_shape=(jax.ShapeDtypeStruct((1, c), jnp.float32),
                   jax.ShapeDtypeStruct((1, c), jnp.float32)),
        grid=(m_pad // tm,),
        in_specs=[pl.BlockSpec((tm, c), lambda i: (i, 0))],
        out_specs=(pl.BlockSpec((1, c), lambda i: (0, 0)),
                   pl.BlockSpec((1, c), lambda i: (0, 0))),
        compiler_params=pltpu.CompilerParams(
            dimension_semantics=("arbitrary",),   # resident accumulator across tiles
            vmem_limit_bytes=VMEM_LIMIT_BYTES),
    )(x)
    return s.reshape(-1), q.reshape(-1)


def _affine_relu_kernel(x_ref, scale_ref, shift_ref, o_ref):
    y = x_ref[...].astype(jnp.float32) * scale_ref[...] + shift_ref[...]
    o_ref[...] = jnp.maximum(y, 0.0).astype(o_ref.dtype)


def affine_relu(x, scale, shift, out_dtype=jnp.bfloat16):
    """Standalone BN affine + ReLU (only needed for the l1 flat-feature layout)."""
    m, c = x.shape
    tm, m_pad = _plan_rows(m, row_bytes=c * 6)
    if m_pad != m:
        x = jnp.pad(x, ((0, m_pad - m), (0, 0)))
    out = pl.pallas_call(
        _affine_relu_kernel,
        out_shape=jax.ShapeDtypeStruct((m_pad, c), out_dtype),
        grid=(m_pad // tm,),
        in_specs=[pl.BlockSpec((tm, c), lambda i: (i, 0)),
                  pl.BlockSpec((1, c), lambda i: (0, 0)),
                  pl.BlockSpec((1, c), lambda i: (0, 0))],
        out_specs=pl.BlockSpec((tm, c), lambda i: (i, 0)),
        compiler_params=pltpu.CompilerParams(
            dimension_semantics=("parallel",), vmem_limit_bytes=VMEM_LIMIT_BYTES),
    )(x, scale.reshape(1, c).astype(jnp.float32),
      shift.reshape(1, c).astype(jnp.float32))
    return out[:m]


def _tanh_kernel(x_ref, o_ref):
    o_ref[...] = jnp.tanh(x_ref[...].astype(jnp.float32))


def tanh_rows(x):
    """Elementwise tanh on a lane-dense 2-D view, row-tiled ('parallel')."""
    m, c = x.shape
    tm, m_pad = _plan_rows(m, row_bytes=c * 8)
    if m_pad != m:
        x = jnp.pad(x, ((0, m_pad - m), (0, 0)))
    out = pl.pallas_call(
        _tanh_kernel,
        out_shape=jax.ShapeDtypeStruct((m_pad, c), jnp.float32),
        grid=(m_pad // tm,),
        in_specs=[pl.BlockSpec((tm, c), lambda i: (i, 0))],
        out_specs=pl.BlockSpec((tm, c), lambda i: (i, 0)),
        compiler_params=pltpu.CompilerParams(
            dimension_semantics=("parallel",), vmem_limit_bytes=VMEM_LIMIT_BYTES),
    )(x)
    return out[:m]


# ----------------------------------------------------------------------------
# Plain-JAX glue: scatter-GEMM weight layout, sub-pixel overlap-add (col2im),
# and the tiny per-channel BN scale/shift math.
# ----------------------------------------------------------------------------
# Output-row parity of ConvTranspose2d(k=5, s=2, p=2, op=1) after cropping:
#   even output rows: taps ky in {0,2,4} read input rows m+1, m, m-1
#   odd  output rows: taps ky in {1,3}   read input rows m+1, m
_PHASE_TAPS = ([(0, 1), (2, 0), (4, -1)], [(1, 1), (3, 0)])


def col2im_stride2(cols, n, h, w, cout):
    """Overlap-add / sub-pixel interleave.  cols: (n*h*w, K*K*cout) tap-major
    (ky, kx, cout) -> transposed-conv output (n, 2h, 2w, cout)."""
    contrib = cols.reshape(n, h, w, K, K, cout)
    cp = jnp.pad(contrib, ((0, 0), (1, 1), (1, 1), (0, 0), (0, 0), (0, 0)))
    row_phases = []
    for rtaps in _PHASE_TAPS:
        col_phases = []
        for ctaps in _PHASE_TAPS:
            acc = None
            for ky, sy in rtaps:
                for kx, sx in ctaps:
                    piece = cp[:, 1 + sy:1 + sy + h, 1 + sx:1 + sx + w, ky, kx, :]
                    acc = piece if acc is None else acc + piece
            col_phases.append(acc)
        row_phases.append(jnp.stack(col_phases, axis=3))   # (n, h, w, 2, cout)
    full = jnp.stack(row_phases, axis=2)                   # (n, h, 2, w, 2, cout)
    return full.reshape(n, 2 * h, 2 * w, cout)


def convT_weight_to_gemm(wt):
    """PyTorch ConvTranspose2d weight (Cin, Cout, K, K) -> scatter-GEMM (Cin, K*K*Cout)."""
    return jnp.transpose(wt, (0, 2, 3, 1)).reshape(wt.shape[0], -1)


def bn_affine(col_sum, col_sumsq, count, gamma, beta):
    """Fold batch statistics (biased variance, eps=1e-5) into per-channel scale/shift."""
    mean = col_sum / count
    var = jnp.maximum(col_sumsq / count - mean * mean, 0.0)
    scale = gamma * jax.lax.rsqrt(var + BN_EPS)
    return scale, beta - mean * scale


# ----------------------------------------------------------------------------
# Generator forward (Pallas pipeline)
# ----------------------------------------------------------------------------
def generator_forward(params, z, feature_dim):
    fd = feature_dim
    n = z.shape[0]

    # ---- l1: Linear(bias=False) -> BatchNorm1d -> ReLU ----------------------
    y1 = fused_gemm(z, params["l1_w"].T)                        # (n, fd*128) f32
    s, q = column_stats(y1)                                     # batch stats per feature
    scale1, shift1 = bn_affine(s, q, n, params["l1_gamma"], params["l1_beta"])
    a1 = affine_relu(y1, scale1, shift1)                        # (n, fd*128) bf16
    # y.view(n, fd*8, 4, 4) (NCHW) -> NHWC for the conv path
    x2d = (a1.reshape(n, fd * 8, 4, 4).transpose(0, 2, 3, 1)
             .reshape(n * 16, fd * 8))
    h = w = 4
    in_scale = in_shift = None                                  # input already activated

    # ---- l2: 3 x [ConvTranspose2d(5,2,2,1) -> BatchNorm2d -> ReLU] ----------
    for i in range(3):
        wt = params[f"l2_{i}_w"]
        cout = wt.shape[1]
        # previous layer's BN + ReLU is fused into this GEMM's input load
        cols = fused_gemm(x2d, convT_weight_to_gemm(wt), in_scale, in_shift)
        y = col2im_stride2(cols, n, h, w, cout)                 # (n, 2h, 2w, cout) f32
        h, w = 2 * h, 2 * w
        yb = y.astype(jnp.bfloat16)                             # bf16 activations in HBM
        s, q = column_stats(yb.reshape(n * h, w * cout))        # lane-dense stats view
        s = s.reshape(w, cout).sum(axis=0)
        q = q.reshape(w, cout).sum(axis=0)
        in_scale, in_shift = bn_affine(s, q, n * h * w,
                                       params[f"l2_{i}_gamma"], params[f"l2_{i}_beta"])
        x2d = yb.reshape(n * h * w, cout)

    # ---- l3: ConvTranspose2d -> Tanh ----------------------------------------
    cols = fused_gemm(x2d, convT_weight_to_gemm(params["l3_w"]), in_scale, in_shift)
    y = col2im_stride2(cols, n, h, w, 3)                        # (n, 64, 64, 3) f32
    h, w = 2 * h, 2 * w
    y = tanh_rows(y.reshape(n * h, w * 3)).reshape(n, h, w, 3)  # lane-dense tanh
    return y.transpose(0, 3, 1, 2)                              # NCHW (n, 3, 64, 64)


# ----------------------------------------------------------------------------
# Deterministic parameter init (shapes from WGAN_GP_Generator.__init__)
# ----------------------------------------------------------------------------
def init_params(key, in_dim, feature_dim):
    fd = feature_dim
    ks = jax.random.split(key, 12)
    p = {
        "l1_w": 0.05 * jax.random.normal(ks[0], (fd * 8 * 4 * 4, in_dim), jnp.float32),
        "l1_gamma": 1.0 + 0.02 * jax.random.normal(ks[1], (fd * 8 * 4 * 4,), jnp.float32),
        "l1_beta": jnp.zeros((fd * 8 * 4 * 4,), jnp.float32),
        "l3_w": 0.02 * jax.random.normal(ks[11], (fd, 3, K, K), jnp.float32),
    }
    dims = [fd * 8, fd * 4, fd * 2, fd]
    for i in range(3):
        cin, cout = dims[i], dims[i + 1]
        p[f"l2_{i}_w"] = 0.02 * jax.random.normal(ks[2 + 3 * i], (cin, cout, K, K), jnp.float32)
        p[f"l2_{i}_gamma"] = 1.0 + 0.02 * jax.random.normal(ks[3 + 3 * i], (cout,), jnp.float32)
        p[f"l2_{i}_beta"] = jnp.zeros((cout,), jnp.float32)
    return p


# ----------------------------------------------------------------------------
# Pure-JAX reference (XLA convs, f32 HIGHEST) for correctness checking
# ----------------------------------------------------------------------------
def _convT_ref(x_nhwc, wt):
    w_hwio = jnp.transpose(jnp.flip(wt, (2, 3)), (2, 3, 0, 1))
    return jax.lax.conv_general_dilated(
        x_nhwc, w_hwio, window_strides=(1, 1), padding=((2, 3), (2, 3)),
        lhs_dilation=(2, 2), dimension_numbers=("NHWC", "HWIO", "NHWC"),
        precision=HIGHEST)


def _bn_ref(y, gamma, beta, axes):
    mean = jnp.mean(y, axis=axes, keepdims=True)
    var = jnp.mean((y - mean) ** 2, axis=axes, keepdims=True)
    return gamma * (y - mean) * jax.lax.rsqrt(var + BN_EPS) + beta


def generator_forward_ref(params, z, feature_dim):
    fd = feature_dim
    n = z.shape[0]
    y = jnp.dot(z, params["l1_w"].T, precision=HIGHEST)
    y = jnp.maximum(_bn_ref(y, params["l1_gamma"][None], params["l1_beta"][None], (0,)), 0.0)
    y = y.reshape(n, fd * 8, 4, 4).transpose(0, 2, 3, 1)
    for i in range(3):
        y = _convT_ref(y, params[f"l2_{i}_w"])
        y = jnp.maximum(_bn_ref(y, params[f"l2_{i}_gamma"][None, None, None],
                                params[f"l2_{i}_beta"][None, None, None], (0, 1, 2)), 0.0)
    y = jnp.tanh(_convT_ref(y, params["l3_w"]))
    return y.transpose(0, 3, 1, 2)


if __name__ == "__main__":
    in_dim, feature_dim, batch = 16, 8, 4
    key = jax.random.PRNGKey(0)
    kp, kz = jax.random.split(key)
    params = init_params(kp, in_dim, feature_dim)
    z = jax.random.normal(kz, (batch, in_dim), jnp.float32)

    fwd = jax.jit(functools.partial(generator_forward, feature_dim=feature_dim))
    out = jax.block_until_ready(fwd(params, z))
    assert out.shape == (batch, 3, 64, 64), out.shape
    assert bool(jnp.all(jnp.isfinite(out)))

    ref_fn = jax.jit(functools.partial(generator_forward_ref, feature_dim=feature_dim))
    ref = jax.block_until_ready(ref_fn(params, z))
    # Kernel uses bf16 MXU operands / bf16 inter-layer activations (per perf guidance);
    # reference runs in f32 HIGHEST, so compare at a bf16-appropriate tolerance.
    assert jnp.allclose(out, ref, atol=3e-2, rtol=3e-2), float(jnp.max(jnp.abs(out - ref)))
    print("KERNEL_OK")
</pallas_src>

<mosaic_0001>
module attributes {stable_mosaic.version = 11 : i64} {
  func.func @_gemm_kernel(%arg0: i32, %arg1: i32, %arg2: memref<16x16xbf16, #tpu.memory_space<vmem>>, %arg3: memref<1x16xf32, #tpu.memory_space<vmem>>, %arg4: memref<1x16xf32, #tpu.memory_space<vmem>>, %arg5: memref<16x1024xbf16, #tpu.memory_space<vmem>>, %arg6: memref<16x1024xf32, #tpu.memory_space<vmem>>) attributes {dimension_semantics = [#tpu.dimension_semantics<parallel>, #tpu.dimension_semantics<parallel>], iteration_bounds = array<i64: 1, 1>, scalar_prefetch = 0 : i64, scratch_operands = 0 : i64, tpu.core_type = #tpu.core_type<tc>, window_params = [{transform_indices = @transform_0, window_bounds = array<i64: 16, 16>}, {pipeline_mode = #tpu.pipeline_mode<synchronous>, transform_indices = @transform_1, window_bounds = array<i64: 1, 16>}, {pipeline_mode = #tpu.pipeline_mode<synchronous>, transform_indices = @transform_2, window_bounds = array<i64: 1, 16>}, {transform_indices = @transform_3, window_bounds = array<i64: 16, 1024>}, {transform_indices = @transform_4, window_bounds = array<i64: 16, 1024>}]} {
    %c0 = arith.constant 0 : index
    %c0_0 = arith.constant 0 : index
    %0 = vector.load %arg2[%c0, %c0_0] : memref<16x16xbf16, #tpu.memory_space<vmem>>, vector<16x16xbf16>
    %c0_1 = arith.constant 0 : index
    %c0_2 = arith.constant 0 : index
    %1 = vector.load %arg5[%c0_1, %c0_2] : memref<16x1024xbf16, #tpu.memory_space<vmem>>, vector<16x1024xbf16>
    %cst = arith.constant dense<0.000000e+00> : vector<16x1024xf32>
    %2 = tpu.matmul %0, %1, %cst {dimension_numbers = #tpu.dot_dimension_numbers<[1], [0], [0], [1], [0, 0, 1, 1], [], []>} : vector<16x16xbf16>, vector<16x1024xbf16>, vector<16x1024xf32> -> vector<16x1024xf32>
    %c0_3 = arith.constant 0 : index
    %c0_4 = arith.constant 0 : index
    %3 = vector.load %arg6[%c0_3, %c0_4] : memref<16x1024xf32, #tpu.memory_space<vmem>>, vector<16x1024xf32>
    tpu.vector_store %arg6[%c0_3, %c0_4], %2 {strides = array<i32>} : memref<16x1024xf32, #tpu.memory_space<vmem>>, vector<16x1024xf32>,
    return
  }
  func.func @transform_0(%arg0: i32, %arg1: i32) -> (i32, i32) {
    %c0_i32 = arith.constant 0 : i32
    %c0_i32_0 = arith.constant 0 : i32
    return %arg1, %c0_i32 : i32, i32
  }
  func.func @transform_1(%arg0: i32, %arg1: i32) -> (i32, i32) {
    %c0_i32 = arith.constant 0 : i32
    %c0_i32_0 = arith.constant 0 : i32
    %c0_i32_1 = arith.constant 0 : i32
    return %c0_i32, %c0_i32_0 : i32, i32
  }
  func.func @transform_2(%arg0: i32, %arg1: i32) -> (i32, i32) {
    %c0_i32 = arith.constant 0 : i32
    %c0_i32_0 = arith.constant 0 : i32
    %c0_i32_1 = arith.constant 0 : i32
    return %c0_i32, %c0_i32_0 : i32, i32
  }
  func.func @transform_3(%arg0: i32, %arg1: i32) -> (i32, i32) {
    %c0_i32 = arith.constant 0 : i32
    %c0_i32_0 = arith.constant 0 : i32
    return %c0_i32, %arg0 : i32, i32
  }
  func.func @transform_4(%arg0: i32, %arg1: i32) -> (i32, i32) {
    %c0_i32 = arith.constant 0 : i32
    return %arg1, %arg0 : i32, i32
  }
}

module attributes {stable_mosaic.version = 11 : i64} {
  func.func @_col_stats_kernel(%arg0: i32, %arg1: memref<16x1024xf32, #tpu.memory_space<vmem>>, %arg2: memref<1x1024xf32, #tpu.memory_space<vmem>>, %arg3: memref<1x1024xf32, #tpu.memory_space<vmem>>) attributes {dimension_semantics = [#tpu.dimension_semantics<arbitrary>], iteration_bounds = array<i64: 1>, scalar_prefetch = 0 : i64, scratch_operands = 0 : i64, tpu.core_type = #tpu.core_type<tc>, window_params = [{transform_indices = @transform_0, window_bounds = array<i64: 16, 1024>}, {pipeline_mode = #tpu.pipeline_mode<synchronous>, transform_indices = @transform_1, window_bounds = array<i64: 1, 1024>}, {pipeline_mode = #tpu.pipeline_mode<synchronous>, transform_indices = @transform_2, window_bounds = array<i64: 1, 1024>}]} {
    %c0_i32 = arith.constant 0 : i32
    %0 = arith.cmpi eq, %arg0, %c0_i32 : i32
    %1 = arith.extui %0 : i1 to i32
    %c0_i32_0 = arith.constant 0 : i32
    %2 = arith.cmpi ne, %1, %c0_i32_0 : i32
    scf.if %2 {
      %cst_11 = arith.constant 0.000000e+00 : f32
      %15 = vector.broadcast %cst_11 : f32 to vector<1x1024xf32>
      %c0_12 = arith.constant 0 : index
      %c0_13 = arith.constant 0 : index
      %16 = vector.load %arg2[%c0_12, %c0_13] : memref<1x1024xf32, #tpu.memory_space<vmem>>, vector<1x1024xf32>
      tpu.vector_store %arg2[%c0_12, %c0_13], %15 {strides = array<i32>} : memref<1x1024xf32, #tpu.memory_space<vmem>>, vector<1x1024xf32>,
      %cst_14 = arith.constant 0.000000e+00 : f32
      %17 = vector.broadcast %cst_14 : f32 to vector<1x1024xf32>
      %c0_15 = arith.constant 0 : index
      %c0_16 = arith.constant 0 : index
      %18 = vector.load %arg3[%c0_15, %c0_16] : memref<1x1024xf32, #tpu.memory_space<vmem>>, vector<1x1024xf32>
      tpu.vector_store %arg3[%c0_15, %c0_16], %17 {strides = array<i32>} : memref<1x1024xf32, #tpu.memory_space<vmem>>, vector<1x1024xf32>,
    } else {
    }
    %c0 = arith.constant 0 : index
    %c0_1 = arith.constant 0 : index
    %3 = vector.load %arg1[%c0, %c0_1] : memref<16x1024xf32, #tpu.memory_space<vmem>>, vector<16x1024xf32>
    %c0_2 = arith.constant 0 : index
    %c0_3 = arith.constant 0 : index
    %4 = vector.load %arg2[%c0_2, %c0_3] : memref<1x1024xf32, #tpu.memory_space<vmem>>, vector<1x1024xf32>
    %cst = arith.constant dense<0.000000e+00> : vector<1024xf32>
    %5 = vector.multi_reduction <add>, %3, %cst [0] : vector<16x1024xf32> to vector<1024xf32>
    %6 = vector.shape_cast %5 : vector<1024xf32> to vector<1x1024xf32>
    %7 = arith.addf %4, %6 : vector<1x1024xf32>
    %c0_4 = arith.constant 0 : index
    %c0_5 = arith.constant 0 : index
    %8 = vector.load %arg2[%c0_4, %c0_5] : memref<1x1024xf32, #tpu.memory_space<vmem>>, vector<1x1024xf32>
    tpu.vector_store %arg2[%c0_4, %c0_5], %7 {strides = array<i32>} : memref<1x1024xf32, #tpu.memory_space<vmem>>, vector<1x1024xf32>,
    %c0_6 = arith.constant 0 : index
    %c0_7 = arith.constant 0 : index
    %9 = vector.load %arg3[%c0_6, %c0_7] : memref<1x1024xf32, #tpu.memory_space<vmem>>, vector<1x1024xf32>
    %10 = arith.mulf %3, %3 : vector<16x1024xf32>
    %cst_8 = arith.constant dense<0.000000e+00> : vector<1024xf32>
    %11 = vector.multi_reduction <add>, %10, %cst_8 [0] : vector<16x1024xf32> to vector<1024xf32>
    %12 = vector.shape_cast %11 : vector<1024xf32> to vector<1x1024xf32>
    %13 = arith.addf %9, %12 : vector<1x1024xf32>
    %c0_9 = arith.constant 0 : index
    %c0_10 = arith.constant 0 : index
    %14 = vector.load %arg3[%c0_9, %c0_10] : memref<1x1024xf32, #tpu.memory_space<vmem>>, vector<1x1024xf32>
    tpu.vector_store %arg3[%c0_9, %c0_10], %13 {strides = array<i32>} : memref<1x1024xf32, #tpu.memory_space<vmem>>, vector<1x1024xf32>,
    return
  }
  func.func @transform_0(%arg0: i32) -> (i32, i32) {
    %c0_i32 = arith.constant 0 : i32
    %c0_i32_0 = arith.constant 0 : i32
    return %arg0, %c0_i32 : i32, i32
  }
  func.func @transform_1(%arg0: i32) -> (i32, i32) {
    %c0_i32 = arith.constant 0 : i32
    %c0_i32_0 = arith.constant 0 : i32
    %c0_i32_1 = arith.constant 0 : i32
    return %c0_i32, %c0_i32_0 : i32, i32
  }
  func.func @transform_2(%arg0: i32) -> (i32, i32) {
    %c0_i32 = arith.constant 0 : i32
    %c0_i32_0 = arith.constant 0 : i32
    %c0_i32_1 = arith.constant 0 : i32
    return %c0_i32, %c0_i32_0 : i32, i32
  }
}

module attributes {stable_mosaic.version = 11 : i64} {
  func.func @_affine_relu_kernel(%arg0: i32, %arg1: memref<16x1024xf32, #tpu.memory_space<vmem>>, %arg2: memref<1x1024xf32, #tpu.memory_space<vmem>>, %arg3: memref<1x1024xf32, #tpu.memory_space<vmem>>, %arg4: memref<16x1024xbf16, #tpu.memory_space<vmem>>) attributes {dimension_semantics = [#tpu.dimension_semantics<parallel>], iteration_bounds = array<i64: 1>, scalar_prefetch = 0 : i64, scratch_operands = 0 : i64, tpu.core_type = #tpu.core_type<tc>, window_params = [{transform_indices = @transform_0, window_bounds = array<i64: 16, 1024>}, {pipeline_mode = #tpu.pipeline_mode<synchronous>, transform_indices = @transform_1, window_bounds = array<i64: 1, 1024>}, {pipeline_mode = #tpu.pipeline_mode<synchronous>, transform_indices = @transform_2, window_bounds = array<i64: 1, 1024>}, {transform_indices = @transform_3, window_bounds = array<i64: 16, 1024>}]} {
    %c0 = arith.constant 0 : index
    %c0_0 = arith.constant 0 : index
    %0 = vector.load %arg1[%c0, %c0_0] : memref<16x1024xf32, #tpu.memory_space<vmem>>, vector<16x1024xf32>
    %c0_1 = arith.constant 0 : index
    %c0_2 = arith.constant 0 : index
    %1 = vector.load %arg2[%c0_1, %c0_2] : memref<1x1024xf32, #tpu.memory_space<vmem>>, vector<1x1024xf32>
    %2 = vector.broadcast %1 : vector<1x1024xf32> to vector<16x1024xf32>
    %3 = arith.mulf %0, %2 : vector<16x1024xf32>
    %c0_3 = arith.constant 0 : index
    %c0_4 = arith.constant 0 : index
    %4 = vector.load %arg3[%c0_3, %c0_4] : memref<1x1024xf32, #tpu.memory_space<vmem>>, vector<1x1024xf32>
    %5 = vector.broadcast %4 : vector<1x1024xf32> to vector<16x1024xf32>
    %6 = arith.addf %3, %5 : vector<16x1024xf32>
    %cst = arith.constant 0.000000e+00 : f32
    %7 = vector.broadcast %cst : f32 to vector<16x1024xf32>
    %8 = arith.maximumf %6, %7 : vector<16x1024xf32>
    %9 = arith.truncf %8 : vector<16x1024xf32> to vector<16x1024xbf16>
    %c0_5 = arith.constant 0 : index
    %c0_6 = arith.constant 0 : index
    %10 = vector.load %arg4[%c0_5, %c0_6] : memref<16x1024xbf16, #tpu.memory_space<vmem>>, vector<16x1024xbf16>
    tpu.vector_store %arg4[%c0_5, %c0_6], %9 {strides = array<i32>} : memref<16x1024xbf16, #tpu.memory_space<vmem>>, vector<16x1024xbf16>,
    return
  }
  func.func @transform_0(%arg0: i32) -> (i32, i32) {
    %c0_i32 = arith.constant 0 : i32
    %c0_i32_0 = arith.constant 0 : i32
    return %arg0, %c0_i32 : i32, i32
  }
  func.func @transform_1(%arg0: i32) -> (i32, i32) {
    %c0_i32 = arith.constant 0 : i32
    %c0_i32_0 = arith.constant 0 : i32
    %c0_i32_1 = arith.constant 0 : i32
    return %c0_i32, %c0_i32_0 : i32, i32
  }
  func.func @transform_2(%arg0: i32) -> (i32, i32) {
    %c0_i32 = arith.constant 0 : i32
    %c0_i32_0 = arith.constant 0 : i32
    %c0_i32_1 = arith.constant 0 : i32
    return %c0_i32, %c0_i32_0 : i32, i32
  }
  func.func @transform_3(%arg0: i32) -> (i32, i32) {
    %c0_i32 = arith.constant 0 : i32
    %c0_i32_0 = arith.constant 0 : i32
    return %arg0, %c0_i32 : i32, i32
  }
}

module attributes {stable_mosaic.version = 11 : i64} {
  func.func @_gemm_kernel(%arg0: i32, %arg1: i32, %arg2: memref<64x64xbf16, #tpu.memory_space<vmem>>, %arg3: memref<1x64xf32, #tpu.memory_space<vmem>>, %arg4: memref<1x64xf32, #tpu.memory_space<vmem>>, %arg5: memref<64x800xbf16, #tpu.memory_space<vmem>>, %arg6: memref<64x800xf32, #tpu.memory_space<vmem>>) attributes {dimension_semantics = [#tpu.dimension_semantics<parallel>, #tpu.dimension_semantics<parallel>], iteration_bounds = array<i64: 1, 1>, scalar_prefetch = 0 : i64, scratch_operands = 0 : i64, tpu.core_type = #tpu.core_type<tc>, window_params = [{transform_indices = @transform_0, window_bounds = array<i64: 64, 64>}, {pipeline_mode = #tpu.pipeline_mode<synchronous>, transform_indices = @transform_1, window_bounds = array<i64: 1, 64>}, {pipeline_mode = #tpu.pipeline_mode<synchronous>, transform_indices = @transform_2, window_bounds = array<i64: 1, 64>}, {transform_indices = @transform_3, window_bounds = array<i64: 64, 800>}, {transform_indices = @transform_4, window_bounds = array<i64: 64, 800>}]} {
    %c0 = arith.constant 0 : index
    %c0_0 = arith.constant 0 : index
    %0 = vector.load %arg2[%c0, %c0_0] : memref<64x64xbf16, #tpu.memory_space<vmem>>, vector<64x64xbf16>
    %c0_1 = arith.constant 0 : index
    %c0_2 = arith.constant 0 : index
    %1 = vector.load %arg5[%c0_1, %c0_2] : memref<64x800xbf16, #tpu.memory_space<vmem>>, vector<64x800xbf16>
    %cst = arith.constant dense<0.000000e+00> : vector<64x800xf32>
    %2 = tpu.matmul %0, %1, %cst {dimension_numbers = #tpu.dot_dimension_numbers<[1], [0], [0], [1], [0, 0, 1, 1], [], []>} : vector<64x64xbf16>, vector<64x800xbf16>, vector<64x800xf32> -> vector<64x800xf32>
    %c0_3 = arith.constant 0 : index
    %c0_4 = arith.constant 0 : index
    %3 = vector.load %arg6[%c0_3, %c0_4] : memref<64x800xf32, #tpu.memory_space<vmem>>, vector<64x800xf32>
    tpu.vector_store %arg6[%c0_3, %c0_4], %2 {strides = array<i32>} : memref<64x800xf32, #tpu.memory_space<vmem>>, vector<64x800xf32>,
    return
  }
  func.func @transform_0(%arg0: i32, %arg1: i32) -> (i32, i32) {
    %c0_i32 = arith.constant 0 : i32
    %c0_i32_0 = arith.constant 0 : i32
    return %arg1, %c0_i32 : i32, i32
  }
  func.func @transform_1(%arg0: i32, %arg1: i32) -> (i32, i32) {
    %c0_i32 = arith.constant 0 : i32
    %c0_i32_0 = arith.constant 0 : i32
    %c0_i32_1 = arith.constant 0 : i32
    return %c0_i32, %c0_i32_0 : i32, i32
  }
  func.func @transform_2(%arg0: i32, %arg1: i32) -> (i32, i32) {
    %c0_i32 = arith.constant 0 : i32
    %c0_i32_0 = arith.constant 0 : i32
    %c0_i32_1 = arith.constant 0 : i32
    return %c0_i32, %c0_i32_0 : i32, i32
  }
  func.func @transform_3(%arg0: i32, %arg1: i32) -> (i32, i32) {
    %c0_i32 = arith.constant 0 : i32
    %c0_i32_0 = arith.constant 0 : i32
    return %c0_i32, %arg0 : i32, i32
  }
  func.func @transform_4(%arg0: i32, %arg1: i32) -> (i32, i32) {
    %c0_i32 = arith.constant 0 : i32
    return %arg1, %arg0 : i32, i32
  }
}

module attributes {stable_mosaic.version = 11 : i64} {
  func.func @_col_stats_kernel(%arg0: i32, %arg1: memref<32x256xbf16, #tpu.memory_space<vmem>>, %arg2: memref<1x256xf32, #tpu.memory_space<vmem>>, %arg3: memref<1x256xf32, #tpu.memory_space<vmem>>) attributes {dimension_semantics = [#tpu.dimension_semantics<arbitrary>], iteration_bounds = array<i64: 1>, scalar_prefetch = 0 : i64, scratch_operands = 0 : i64, tpu.core_type = #tpu.core_type<tc>, window_params = [{transform_indices = @transform_0, window_bounds = array<i64: 32, 256>}, {pipeline_mode = #tpu.pipeline_mode<synchronous>, transform_indices = @transform_1, window_bounds = array<i64: 1, 256>}, {pipeline_mode = #tpu.pipeline_mode<synchronous>, transform_indices = @transform_2, window_bounds = array<i64: 1, 256>}]} {
    %c0_i32 = arith.constant 0 : i32
    %0 = arith.cmpi eq, %arg0, %c0_i32 : i32
    %1 = arith.extui %0 : i1 to i32
    %c0_i32_0 = arith.constant 0 : i32
    %2 = arith.cmpi ne, %1, %c0_i32_0 : i32
    scf.if %2 {
      %cst_11 = arith.constant 0.000000e+00 : f32
      %16 = vector.broadcast %cst_11 : f32 to vector<1x256xf32>
      %c0_12 = arith.constant 0 : index
      %c0_13 = arith.constant 0 : index
      %17 = vector.load %arg2[%c0_12, %c0_13] : memref<1x256xf32, #tpu.memory_space<vmem>>, vector<1x256xf32>
      tpu.vector_store %arg2[%c0_12, %c0_13], %16 {strides = array<i32>} : memref<1x256xf32, #tpu.memory_space<vmem>>, vector<1x256xf32>,
      %cst_14 = arith.constant 0.000000e+00 : f32
      %18 = vector.broadcast %cst_14 : f32 to vector<1x256xf32>
      %c0_15 = arith.constant 0 : index
      %c0_16 = arith.constant 0 : index
      %19 = vector.load %arg3[%c0_15, %c0_16] : memref<1x256xf32, #tpu.memory_space<vmem>>, vector<1x256xf32>
      tpu.vector_store %arg3[%c0_15, %c0_16], %18 {strides = array<i32>} : memref<1x256xf32, #tpu.memory_space<vmem>>, vector<1x256xf32>,
    } else {
    }
    %c0 = arith.constant 0 : index
    %c0_1 = arith.constant 0 : index
    %3 = vector.load %arg1[%c0, %c0_1] : memref<32x256xbf16, #tpu.memory_space<vmem>>, vector<32x256xbf16>
    %4 = arith.extf %3 : vector<32x256xbf16> to vector<32x256xf32>
    %c0_2 = arith.constant 0 : index
    %c0_3 = arith.constant 0 : index
    %5 = vector.load %arg2[%c0_2, %c0_3] : memref<1x256xf32, #tpu.memory_space<vmem>>, vector<1x256xf32>
    %cst = arith.constant dense<0.000000e+00> : vector<256xf32>
    %6 = vector.multi_reduction <add>, %4, %cst [0] : vector<32x256xf32> to vector<256xf32>
    %7 = vector.shape_cast %6 : vector<256xf32> to vector<1x256xf32>
    %8 = arith.addf %5, %7 : vector<1x256xf32>
    %c0_4 = arith.constant 0 : index
    %c0_5 = arith.constant 0 : index
    %9 = vector.load %arg2[%c0_4, %c0_5] : memref<1x256xf32, #tpu.memory_space<vmem>>, vector<1x256xf32>
    tpu.vector_store %arg2[%c0_4, %c0_5], %8 {strides = array<i32>} : memref<1x256xf32, #tpu.memory_space<vmem>>, vector<1x256xf32>,
    %c0_6 = arith.constant 0 : index
    %c0_7 = arith.constant 0 : index
    %10 = vector.load %arg3[%c0_6, %c0_7] : memref<1x256xf32, #tpu.memory_space<vmem>>, vector<1x256xf32>
    %11 = arith.mulf %4, %4 : vector<32x256xf32>
    %cst_8 = arith.constant dense<0.000000e+00> : vector<256xf32>
    %12 = vector.multi_reduction <add>, %11, %cst_8 [0] : vector<32x256xf32> to vector<256xf32>
    %13 = vector.shape_cast %12 : vector<256xf32> to vector<1x256xf32>
    %14 = arith.addf %10, %13 : vector<1x256xf32>
    %c0_9 = arith.constant 0 : index
    %c0_10 = arith.constant 0 : index
    %15 = vector.load %arg3[%c0_9, %c0_10] : memref<1x256xf32, #tpu.memory_space<vmem>>, vector<1x256xf32>
    tpu.vector_store %arg3[%c0_9, %c0_10], %14 {strides = array<i32>} : memref<1x256xf32, #tpu.memory_space<vmem>>, vector<1x256xf32>,
    return
  }
  func.func @transform_0(%arg0: i32) -> (i32, i32) {
    %c0_i32 = arith.constant 0 : i32
    %c0_i32_0 = arith.constant 0 : i32
    return %arg0, %c0_i32 : i32, i32
  }
  func.func @transform_1(%arg0: i32) -> (i32, i32) {
    %c0_i32 = arith.constant 0 : i32
    %c0_i32_0 = arith.constant 0 : i32
    %c0_i32_1 = arith.constant 0 : i32
    return %c0_i32, %c0_i32_0 : i32, i32
  }
  func.func @transform_2(%arg0: i32) -> (i32, i32) {
    %c0_i32 = arith.constant 0 : i32
    %c0_i32_0 = arith.constant 0 : i32
    %c0_i32_1 = arith.constant 0 : i32
    return %c0_i32, %c0_i32_0 : i32, i32
  }
}

module attributes {stable_mosaic.version = 11 : i64} {
  func.func @_gemm_kernel(%arg0: i32, %arg1: i32, %arg2: memref<256x32xbf16, #tpu.memory_space<vmem>>, %arg3: memref<1x32xf32, #tpu.memory_space<vmem>>, %arg4: memref<1x32xf32, #tpu.memory_space<vmem>>, %arg5: memref<32x400xbf16, #tpu.memory_space<vmem>>, %arg6: memref<256x400xf32, #tpu.memory_space<vmem>>) attributes {dimension_semantics = [#tpu.dimension_semantics<parallel>, #tpu.dimension_semantics<parallel>], iteration_bounds = array<i64: 1, 1>, scalar_prefetch = 0 : i64, scratch_operands = 0 : i64, tpu.core_type = #tpu.core_type<tc>, window_params = [{transform_indices = @transform_0, window_bounds = array<i64: 256, 32>}, {pipeline_mode = #tpu.pipeline_mode<synchronous>, transform_indices = @transform_1, window_bounds = array<i64: 1, 32>}, {pipeline_mode = #tpu.pipeline_mode<synchronous>, transform_indices = @transform_2, window_bounds = array<i64: 1, 32>}, {transform_indices = @transform_3, window_bounds = array<i64: 32, 400>}, {transform_indices = @transform_4, window_bounds = array<i64: 256, 400>}]} {
    %c0 = arith.constant 0 : index
    %c0_0 = arith.constant 0 : index
    %0 = vector.load %arg2[%c0, %c0_0] : memref<256x32xbf16, #tpu.memory_space<vmem>>, vector<256x32xbf16>
    %1 = arith.extf %0 : vector<256x32xbf16> to vector<256x32xf32>
    %c0_1 = arith.constant 0 : index
    %c0_2 = arith.constant 0 : index
    %2 = vector.load %arg3[%c0_1, %c0_2] : memref<1x32xf32, #tpu.memory_space<vmem>>, vector<1x32xf32>
    %3 = vector.broadcast %2 : vector<1x32xf32> to vector<256x32xf32>
    %4 = arith.mulf %1, %3 : vector<256x32xf32>
    %c0_3 = arith.constant 0 : index
    %c0_4 = arith.constant 0 : index
    %5 = vector.load %arg4[%c0_3, %c0_4] : memref<1x32xf32, #tpu.memory_space<vmem>>, vector<1x32xf32>
    %6 = vector.broadcast %5 : vector<1x32xf32> to vector<256x32xf32>
    %7 = arith.addf %4, %6 : vector<256x32xf32>
    %cst = arith.constant 0.000000e+00 : f32
    %8 = vector.broadcast %cst : f32 to vector<256x32xf32>
    %9 = arith.maximumf %7, %8 : vector<256x32xf32>
    %10 = arith.truncf %9 : vector<256x32xf32> to vector<256x32xbf16>
    %c0_5 = arith.constant 0 : index
    %c0_6 = arith.constant 0 : index
    %11 = vector.load %arg5[%c0_5, %c0_6] : memref<32x400xbf16, #tpu.memory_space<vmem>>, vector<32x400xbf16>
    %cst_7 = arith.constant dense<0.000000e+00> : vector<256x400xf32>
    %12 = tpu.matmul %10, %11, %cst_7 {dimension_numbers = #tpu.dot_dimension_numbers<[1], [0], [0], [1], [0, 0, 1, 1], [], []>} : vector<256x32xbf16>, vector<32x400xbf16>, vector<256x400xf32> -> vector<256x400xf32>
    %c0_8 = arith.constant 0 : index
    %c0_9 = arith.constant 0 : index
    %13 = vector.load %arg6[%c0_8, %c0_9] : memref<256x400xf32, #tpu.memory_space<vmem>>, vector<256x400xf32>
    tpu.vector_store %arg6[%c0_8, %c0_9], %12 {strides = array<i32>} : memref<256x400xf32, #tpu.memory_space<vmem>>, vector<256x400xf32>,
    return
  }
  func.func @transform_0(%arg0: i32, %arg1: i32) -> (i32, i32) {
    %c0_i32 = arith.constant 0 : i32
    %c0_i32_0 = arith.constant 0 : i32
    return %arg1, %c0_i32 : i32, i32
  }
  func.func @transform_1(%arg0: i32, %arg1: i32) -> (i32, i32) {
    %c0_i32 = arith.constant 0 : i32
    %c0_i32_0 = arith.constant 0 : i32
    %c0_i32_1 = arith.constant 0 : i32
    return %c0_i32, %c0_i32_0 : i32, i32
  }
  func.func @transform_2(%arg0: i32, %arg1: i32) -> (i32, i32) {
    %c0_i32 = arith.constant 0 : i32
    %c0_i32_0 = arith.constant 0 : i32
    %c0_i32_1 = arith.constant 0 : i32
    return %c0_i32, %c0_i32_0 : i32, i32
  }
  func.func @transform_3(%arg0: i32, %arg1: i32) -> (i32, i32) {
    %c0_i32 = arith.constant 0 : i32
    %c0_i32_0 = arith.constant 0 : i32
    return %c0_i32, %arg0 : i32, i32
  }
  func.func @transform_4(%arg0: i32, %arg1: i32) -> (i32, i32) {
    %c0_i32 = arith.constant 0 : i32
    return %arg1, %arg0 : i32, i32
  }
}

module attributes {stable_mosaic.version = 11 : i64} {
  func.func @_col_stats_kernel(%arg0: i32, %arg1: memref<64x256xbf16, #tpu.memory_space<vmem>>, %arg2: memref<1x256xf32, #tpu.memory_space<vmem>>, %arg3: memref<1x256xf32, #tpu.memory_space<vmem>>) attributes {dimension_semantics = [#tpu.dimension_semantics<arbitrary>], iteration_bounds = array<i64: 1>, scalar_prefetch = 0 : i64, scratch_operands = 0 : i64, tpu.core_type = #tpu.core_type<tc>, window_params = [{transform_indices = @transform_0, window_bounds = array<i64: 64, 256>}, {pipeline_mode = #tpu.pipeline_mode<synchronous>, transform_indices = @transform_1, window_bounds = array<i64: 1, 256>}, {pipeline_mode = #tpu.pipeline_mode<synchronous>, transform_indices = @transform_2, window_bounds = array<i64: 1, 256>}]} {
    %c0_i32 = arith.constant 0 : i32
    %0 = arith.cmpi eq, %arg0, %c0_i32 : i32
    %1 = arith.extui %0 : i1 to i32
    %c0_i32_0 = arith.constant 0 : i32
    %2 = arith.cmpi ne, %1, %c0_i32_0 : i32
    scf.if %2 {
      %cst_11 = arith.constant 0.000000e+00 : f32
      %16 = vector.broadcast %cst_11 : f32 to vector<1x256xf32>
      %c0_12 = arith.constant 0 : index
      %c0_13 = arith.constant 0 : index
      %17 = vector.load %arg2[%c0_12, %c0_13] : memref<1x256xf32, #tpu.memory_space<vmem>>, vector<1x256xf32>
      tpu.vector_store %arg2[%c0_12, %c0_13], %16 {strides = array<i32>} : memref<1x256xf32, #tpu.memory_space<vmem>>, vector<1x256xf32>,
      %cst_14 = arith.constant 0.000000e+00 : f32
      %18 = vector.broadcast %cst_14 : f32 to vector<1x256xf32>
      %c0_15 = arith.constant 0 : index
      %c0_16 = arith.constant 0 : index
      %19 = vector.load %arg3[%c0_15, %c0_16] : memref<1x256xf32, #tpu.memory_space<vmem>>, vector<1x256xf32>
      tpu.vector_store %arg3[%c0_15, %c0_16], %18 {strides = array<i32>} : memref<1x256xf32, #tpu.memory_space<vmem>>, vector<1x256xf32>,
    } else {
    }
    %c0 = arith.constant 0 : index
    %c0_1 = arith.constant 0 : index
    %3 = vector.load %arg1[%c0, %c0_1] : memref<64x256xbf16, #tpu.memory_space<vmem>>, vector<64x256xbf16>
    %4 = arith.extf %3 : vector<64x256xbf16> to vector<64x256xf32>
    %c0_2 = arith.constant 0 : index
    %c0_3 = arith.constant 0 : index
    %5 = vector.load %arg2[%c0_2, %c0_3] : memref<1x256xf32, #tpu.memory_space<vmem>>, vector<1x256xf32>
    %cst = arith.constant dense<0.000000e+00> : vector<256xf32>
    %6 = vector.multi_reduction <add>, %4, %cst [0] : vector<64x256xf32> to vector<256xf32>
    %7 = vector.shape_cast %6 : vector<256xf32> to vector<1x256xf32>
    %8 = arith.addf %5, %7 : vector<1x256xf32>
    %c0_4 = arith.constant 0 : index
    %c0_5 = arith.constant 0 : index
    %9 = vector.load %arg2[%c0_4, %c0_5] : memref<1x256xf32, #tpu.memory_space<vmem>>, vector<1x256xf32>
    tpu.vector_store %arg2[%c0_4, %c0_5], %8 {strides = array<i32>} : memref<1x256xf32, #tpu.memory_space<vmem>>, vector<1x256xf32>,
    %c0_6 = arith.constant 0 : index
    %c0_7 = arith.constant 0 : index
    %10 = vector.load %arg3[%c0_6, %c0_7] : memref<1x256xf32, #tpu.memory_space<vmem>>, vector<1x256xf32>
    %11 = arith.mulf %4, %4 : vector<64x256xf32>
    %cst_8 = arith.constant dense<0.000000e+00> : vector<256xf32>
    %12 = vector.multi_reduction <add>, %11, %cst_8 [0] : vector<64x256xf32> to vector<256xf32>
    %13 = vector.shape_cast %12 : vector<256xf32> to vector<1x256xf32>
    %14 = arith.addf %10, %13 : vector<1x256xf32>
    %c0_9 = arith.constant 0 : index
    %c0_10 = arith.constant 0 : index
    %15 = vector.load %arg3[%c0_9, %c0_10] : memref<1x256xf32, #tpu.memory_space<vmem>>, vector<1x256xf32>
    tpu.vector_store %arg3[%c0_9, %c0_10], %14 {strides = array<i32>} : memref<1x256xf32, #tpu.memory_space<vmem>>, vector<1x256xf32>,
    return
  }
  func.func @transform_0(%arg0: i32) -> (i32, i32) {
    %c0_i32 = arith.constant 0 : i32
    %c0_i32_0 = arith.constant 0 : i32
    return %arg0, %c0_i32 : i32, i32
  }
  func.func @transform_1(%arg0: i32) -> (i32, i32) {
    %c0_i32 = arith.constant 0 : i32
    %c0_i32_0 = arith.constant 0 : i32
    %c0_i32_1 = arith.constant 0 : i32
    return %c0_i32, %c0_i32_0 : i32, i32
  }
  func.func @transform_2(%arg0: i32) -> (i32, i32) {
    %c0_i32 = arith.constant 0 : i32
    %c0_i32_0 = arith.constant 0 : i32
    %c0_i32_1 = arith.constant 0 : i32
    return %c0_i32, %c0_i32_0 : i32, i32
  }
}

module attributes {stable_mosaic.version = 11 : i64} {
  func.func @_gemm_kernel(%arg0: i32, %arg1: i32, %arg2: memref<512x16xbf16, #tpu.memory_space<vmem>>, %arg3: memref<1x16xf32, #tpu.memory_space<vmem>>, %arg4: memref<1x16xf32, #tpu.memory_space<vmem>>, %arg5: memref<16x200xbf16, #tpu.memory_space<vmem>>, %arg6: memref<512x200xf32, #tpu.memory_space<vmem>>) attributes {dimension_semantics = [#tpu.dimension_semantics<parallel>, #tpu.dimension_semantics<parallel>], iteration_bounds = array<i64: 1, 2>, scalar_prefetch = 0 : i64, scratch_operands = 0 : i64, tpu.core_type = #tpu.core_type<tc>, window_params = [{transform_indices = @transform_0, window_bounds = array<i64: 512, 16>}, {pipeline_mode = #tpu.pipeline_mode<synchronous>, transform_indices = @transform_1, window_bounds = array<i64: 1, 16>}, {pipeline_mode = #tpu.pipeline_mode<synchronous>, transform_indices = @transform_2, window_bounds = array<i64: 1, 16>}, {transform_indices = @transform_3, window_bounds = array<i64: 16, 200>}, {transform_indices = @transform_4, window_bounds = array<i64: 512, 200>}]} {
    %c0 = arith.constant 0 : index
    %c0_0 = arith.constant 0 : index
    %0 = vector.load %arg2[%c0, %c0_0] : memref<512x16xbf16, #tpu.memory_space<vmem>>, vector<512x16xbf16>
    %1 = arith.extf %0 : vector<512x16xbf16> to vector<512x16xf32>
    %c0_1 = arith.constant 0 : index
    %c0_2 = arith.constant 0 : index
    %2 = vector.load %arg3[%c0_1, %c0_2] : memref<1x16xf32, #tpu.memory_space<vmem>>, vector<1x16xf32>
    %3 = vector.broadcast %2 : vector<1x16xf32> to vector<512x16xf32>
    %4 = arith.mulf %1, %3 : vector<512x16xf32>
    %c0_3 = arith.constant 0 : index
    %c0_4 = arith.constant 0 : index
    %5 = vector.load %arg4[%c0_3, %c0_4] : memref<1x16xf32, #tpu.memory_space<vmem>>, vector<1x16xf32>
    %6 = vector.broadcast %5 : vector<1x16xf32> to vector<512x16xf32>
    %7 = arith.addf %4, %6 : vector<512x16xf32>
    %cst = arith.constant 0.000000e+00 : f32
    %8 = vector.broadcast %cst : f32 to vector<512x16xf32>
    %9 = arith.maximumf %7, %8 : vector<512x16xf32>
    %10 = arith.truncf %9 : vector<512x16xf32> to vector<512x16xbf16>
    %c0_5 = arith.constant 0 : index
    %c0_6 = arith.constant 0 : index
    %11 = vector.load %arg5[%c0_5, %c0_6] : memref<16x200xbf16, #tpu.memory_space<vmem>>, vector<16x200xbf16>
    %cst_7 = arith.constant dense<0.000000e+00> : vector<512x200xf32>
    %12 = tpu.matmul %10, %11, %cst_7 {dimension_numbers = #tpu.dot_dimension_numbers<[1], [0], [0], [1], [0, 0, 1, 1], [], []>} : vector<512x16xbf16>, vector<16x200xbf16>, vector<512x200xf32> -> vector<512x200xf32>
    %c0_8 = arith.constant 0 : index
    %c0_9 = arith.constant 0 : index
    %13 = vector.load %arg6[%c0_8, %c0_9] : memref<512x200xf32, #tpu.memory_space<vmem>>, vector<512x200xf32>
    tpu.vector_store %arg6[%c0_8, %c0_9], %12 {strides = array<i32>} : memref<512x200xf32, #tpu.memory_space<vmem>>, vector<512x200xf32>,
    return
  }
  func.func @transform_0(%arg0: i32, %arg1: i32) -> (i32, i32) {
    %c0_i32 = arith.constant 0 : i32
    %c0_i32_0 = arith.constant 0 : i32
    return %arg1, %c0_i32 : i32, i32
  }
  func.func @transform_1(%arg0: i32, %arg1: i32) -> (i32, i32) {
    %c0_i32 = arith.constant 0 : i32
    %c0_i32_0 = arith.constant 0 : i32
    %c0_i32_1 = arith.constant 0 : i32
    return %c0_i32, %c0_i32_0 : i32, i32
  }
  func.func @transform_2(%arg0: i32, %arg1: i32) -> (i32, i32) {
    %c0_i32 = arith.constant 0 : i32
    %c0_i32_0 = arith.constant 0 : i32
    %c0_i32_1 = arith.constant 0 : i32
    return %c0_i32, %c0_i32_0 : i32, i32
  }
  func.func @transform_3(%arg0: i32, %arg1: i32) -> (i32, i32) {
    %c0_i32 = arith.constant 0 : i32
    %c0_i32_0 = arith.constant 0 : i32
    return %c0_i32, %arg0 : i32, i32
  }
  func.func @transform_4(%arg0: i32, %arg1: i32) -> (i32, i32) {
    %c0_i32 = arith.constant 0 : i32
    return %arg1, %arg0 : i32, i32
  }
}

module attributes {stable_mosaic.version = 11 : i64} {
  func.func @_col_stats_kernel(%arg0: i32, %arg1: memref<128x256xbf16, #tpu.memory_space<vmem>>, %arg2: memref<1x256xf32, #tpu.memory_space<vmem>>, %arg3: memref<1x256xf32, #tpu.memory_space<vmem>>) attributes {dimension_semantics = [#tpu.dimension_semantics<arbitrary>], iteration_bounds = array<i64: 1>, scalar_prefetch = 0 : i64, scratch_operands = 0 : i64, tpu.core_type = #tpu.core_type<tc>, window_params = [{transform_indices = @transform_0, window_bounds = array<i64: 128, 256>}, {pipeline_mode = #tpu.pipeline_mode<synchronous>, transform_indices = @transform_1, window_bounds = array<i64: 1, 256>}, {pipeline_mode = #tpu.pipeline_mode<synchronous>, transform_indices = @transform_2, window_bounds = array<i64: 1, 256>}]} {
    %c0_i32 = arith.constant 0 : i32
    %0 = arith.cmpi eq, %arg0, %c0_i32 : i32
    %1 = arith.extui %0 : i1 to i32
    %c0_i32_0 = arith.constant 0 : i32
    %2 = arith.cmpi ne, %1, %c0_i32_0 : i32
    scf.if %2 {
      %cst_11 = arith.constant 0.000000e+00 : f32
      %16 = vector.broadcast %cst_11 : f32 to vector<1x256xf32>
      %c0_12 = arith.constant 0 : index
      %c0_13 = arith.constant 0 : index
      %17 = vector.load %arg2[%c0_12, %c0_13] : memref<1x256xf32, #tpu.memory_space<vmem>>, vector<1x256xf32>
      tpu.vector_store %arg2[%c0_12, %c0_13], %16 {strides = array<i32>} : memref<1x256xf32, #tpu.memory_space<vmem>>, vector<1x256xf32>,
      %cst_14 = arith.constant 0.000000e+00 : f32
      %18 = vector.broadcast %cst_14 : f32 to vector<1x256xf32>
      %c0_15 = arith.constant 0 : index
      %c0_16 = arith.constant 0 : index
      %19 = vector.load %arg3[%c0_15, %c0_16] : memref<1x256xf32, #tpu.memory_space<vmem>>, vector<1x256xf32>
      tpu.vector_store %arg3[%c0_15, %c0_16], %18 {strides = array<i32>} : memref<1x256xf32, #tpu.memory_space<vmem>>, vector<1x256xf32>,
    } else {
    }
    %c0 = arith.constant 0 : index
    %c0_1 = arith.constant 0 : index
    %3 = vector.load %arg1[%c0, %c0_1] : memref<128x256xbf16, #tpu.memory_space<vmem>>, vector<128x256xbf16>
    %4 = arith.extf %3 : vector<128x256xbf16> to vector<128x256xf32>
    %c0_2 = arith.constant 0 : index
    %c0_3 = arith.constant 0 : index
    %5 = vector.load %arg2[%c0_2, %c0_3] : memref<1x256xf32, #tpu.memory_space<vmem>>, vector<1x256xf32>
    %cst = arith.constant dense<0.000000e+00> : vector<256xf32>
    %6 = vector.multi_reduction <add>, %4, %cst [0] : vector<128x256xf32> to vector<256xf32>
    %7 = vector.shape_cast %6 : vector<256xf32> to vector<1x256xf32>
    %8 = arith.addf %5, %7 : vector<1x256xf32>
    %c0_4 = arith.constant 0 : index
    %c0_5 = arith.constant 0 : index
    %9 = vector.load %arg2[%c0_4, %c0_5] : memref<1x256xf32, #tpu.memory_space<vmem>>, vector<1x256xf32>
    tpu.vector_store %arg2[%c0_4, %c0_5], %8 {strides = array<i32>} : memref<1x256xf32, #tpu.memory_space<vmem>>, vector<1x256xf32>,
    %c0_6 = arith.constant 0 : index
    %c0_7 = arith.constant 0 : index
    %10 = vector.load %arg3[%c0_6, %c0_7] : memref<1x256xf32, #tpu.memory_space<vmem>>, vector<1x256xf32>
    %11 = arith.mulf %4, %4 : vector<128x256xf32>
    %cst_8 = arith.constant dense<0.000000e+00> : vector<256xf32>
    %12 = vector.multi_reduction <add>, %11, %cst_8 [0] : vector<128x256xf32> to vector<256xf32>
    %13 = vector.shape_cast %12 : vector<256xf32> to vector<1x256xf32>
    %14 = arith.addf %10, %13 : vector<1x256xf32>
    %c0_9 = arith.constant 0 : index
    %c0_10 = arith.constant 0 : index
    %15 = vector.load %arg3[%c0_9, %c0_10] : memref<1x256xf32, #tpu.memory_space<vmem>>, vector<1x256xf32>
    tpu.vector_store %arg3[%c0_9, %c0_10], %14 {strides = array<i32>} : memref<1x256xf32, #tpu.memory_space<vmem>>, vector<1x256xf32>,
    return
  }
  func.func @transform_0(%arg0: i32) -> (i32, i32) {
    %c0_i32 = arith.constant 0 : i32
    %c0_i32_0 = arith.constant 0 : i32
    return %arg0, %c0_i32 : i32, i32
  }
  func.func @transform_1(%arg0: i32) -> (i32, i32) {
    %c0_i32 = arith.constant 0 : i32
    %c0_i32_0 = arith.constant 0 : i32
    %c0_i32_1 = arith.constant 0 : i32
    return %c0_i32, %c0_i32_0 : i32, i32
  }
  func.func @transform_2(%arg0: i32) -> (i32, i32) {
    %c0_i32 = arith.constant 0 : i32
    %c0_i32_0 = arith.constant 0 : i32
    %c0_i32_1 = arith.constant 0 : i32
    return %c0_i32, %c0_i32_0 : i32, i32
  }
}

module attributes {stable_mosaic.version = 11 : i64} {
  func.func @_gemm_kernel(%arg0: i32, %arg1: i32, %arg2: memref<512x8xbf16, #tpu.memory_space<vmem>>, %arg3: memref<1x8xf32, #tpu.memory_space<vmem>>, %arg4: memref<1x8xf32, #tpu.memory_space<vmem>>, %arg5: memref<8x128xbf16, #tpu.memory_space<vmem>>, %arg6: memref<512x128xf32, #tpu.memory_space<vmem>>) attributes {dimension_semantics = [#tpu.dimension_semantics<parallel>, #tpu.dimension_semantics<parallel>], iteration_bounds = array<i64: 1, 8>, scalar_prefetch = 0 : i64, scratch_operands = 0 : i64, tpu.core_type = #tpu.core_type<tc>, window_params = [{transform_indices = @transform_0, window_bounds = array<i64: 512, 8>}, {pipeline_mode = #tpu.pipeline_mode<synchronous>, transform_indices = @transform_1, window_bounds = array<i64: 1, 8>}, {pipeline_mode = #tpu.pipeline_mode<synchronous>, transform_indices = @transform_2, window_bounds = array<i64: 1, 8>}, {transform_indices = @transform_3, window_bounds = array<i64: 8, 128>}, {transform_indices = @transform_4, window_bounds = array<i64: 512, 128>}]} {
    %c0 = arith.constant 0 : index
    %c0_0 = arith.constant 0 : index
    %0 = vector.load %arg2[%c0, %c0_0] : memref<512x8xbf16, #tpu.memory_space<vmem>>, vector<512x8xbf16>
    %1 = arith.extf %0 : vector<512x8xbf16> to vector<512x8xf32>
    %c0_1 = arith.constant 0 : index
    %c0_2 = arith.constant 0 : index
    %2 = vector.load %arg3[%c0_1, %c0_2] : memref<1x8xf32, #tpu.memory_space<vmem>>, vector<1x8xf32>
    %3 = vector.broadcast %2 : vector<1x8xf32> to vector<512x8xf32>
    %4 = arith.mulf %1, %3 : vector<512x8xf32>
    %c0_3 = arith.constant 0 : index
    %c0_4 = arith.constant 0 : index
    %5 = vector.load %arg4[%c0_3, %c0_4] : memref<1x8xf32, #tpu.memory_space<vmem>>, vector<1x8xf32>
    %6 = vector.broadcast %5 : vector<1x8xf32> to vector<512x8xf32>
    %7 = arith.addf %4, %6 : vector<512x8xf32>
    %cst = arith.constant 0.000000e+00 : f32
    %8 = vector.broadcast %cst : f32 to vector<512x8xf32>
    %9 = arith.maximumf %7, %8 : vector<512x8xf32>
    %10 = arith.truncf %9 : vector<512x8xf32> to vector<512x8xbf16>
    %c0_5 = arith.constant 0 : index
    %c0_6 = arith.constant 0 : index
    %11 = vector.load %arg5[%c0_5, %c0_6] : memref<8x128xbf16, #tpu.memory_space<vmem>>, vector<8x128xbf16>
    %cst_7 = arith.constant dense<0.000000e+00> : vector<512x128xf32>
    %12 = tpu.matmul %10, %11, %cst_7 {dimension_numbers = #tpu.dot_dimension_numbers<[1], [0], [0], [1], [0, 0, 1, 1], [], []>} : vector<512x8xbf16>, vector<8x128xbf16>, vector<512x128xf32> -> vector<512x128xf32>
    %c0_8 = arith.constant 0 : index
    %c0_9 = arith.constant 0 : index
    %13 = vector.load %arg6[%c0_8, %c0_9] : memref<512x128xf32, #tpu.memory_space<vmem>>, vector<512x128xf32>
    tpu.vector_store %arg6[%c0_8, %c0_9], %12 {strides = array<i32>} : memref<512x128xf32, #tpu.memory_space<vmem>>, vector<512x128xf32>,
    return
  }
  func.func @transform_0(%arg0: i32, %arg1: i32) -> (i32, i32) {
    %c0_i32 = arith.constant 0 : i32
    %c0_i32_0 = arith.constant 0 : i32
    return %arg1, %c0_i32 : i32, i32
  }
  func.func @transform_1(%arg0: i32, %arg1: i32) -> (i32, i32) {
    %c0_i32 = arith.constant 0 : i32
    %c0_i32_0 = arith.constant 0 : i32
    %c0_i32_1 = arith.constant 0 : i32
    return %c0_i32, %c0_i32_0 : i32, i32
  }
  func.func @transform_2(%arg0: i32, %arg1: i32) -> (i32, i32) {
    %c0_i32 = arith.constant 0 : i32
    %c0_i32_0 = arith.constant 0 : i32
    %c0_i32_1 = arith.constant 0 : i32
    return %c0_i32, %c0_i32_0 : i32, i32
  }
  func.func @transform_3(%arg0: i32, %arg1: i32) -> (i32, i32) {
    %c0_i32 = arith.constant 0 : i32
    %c0_i32_0 = arith.constant 0 : i32
    return %c0_i32, %arg0 : i32, i32
  }
  func.func @transform_4(%arg0: i32, %arg1: i32) -> (i32, i32) {
    %c0_i32 = arith.constant 0 : i32
    return %arg1, %arg0 : i32, i32
  }
}

module attributes {stable_mosaic.version = 11 : i64} {
  func.func @_tanh_kernel(%arg0: i32, %arg1: memref<256x192xf32, #tpu.memory_space<vmem>>, %arg2: memref<256x192xf32, #tpu.memory_space<vmem>>) attributes {dimension_semantics = [#tpu.dimension_semantics<parallel>], iteration_bounds = array<i64: 1>, scalar_prefetch = 0 : i64, scratch_operands = 0 : i64, tpu.core_type = #tpu.core_type<tc>, window_params = [{transform_indices = @transform_0, window_bounds = array<i64: 256, 192>}, {transform_indices = @transform_1, window_bounds = array<i64: 256, 192>}]} {
    %c0 = arith.constant 0 : index
    %c0_0 = arith.constant 0 : index
    %0 = vector.load %arg1[%c0, %c0_0] : memref<256x192xf32, #tpu.memory_space<vmem>>, vector<256x192xf32>
    %1 = math.tanh %0 : vector<256x192xf32>
    %c0_1 = arith.constant 0 : index
    %c0_2 = arith.constant 0 : index
    %2 = vector.load %arg2[%c0_1, %c0_2] : memref<256x192xf32, #tpu.memory_space<vmem>>, vector<256x192xf32>
    tpu.vector_store %arg2[%c0_1, %c0_2], %1 {strides = array<i32>} : memref<256x192xf32, #tpu.memory_space<vmem>>, vector<256x192xf32>,
    return
  }
  func.func @transform_0(%arg0: i32) -> (i32, i32) {
    %c0_i32 = arith.constant 0 : i32
    %c0_i32_0 = arith.constant 0 : i32
    return %arg0, %c0_i32 : i32, i32
  }
  func.func @transform_1(%arg0: i32) -> (i32, i32) {
    %c0_i32 = arith.constant 0 : i32
    %c0_i32_0 = arith.constant 0 : i32
    return %arg0, %c0_i32 : i32, i32
  }
}

</mosaic_0001>

<bundles_post_ra>
// kernel: generator_forward.12
= control target key start
LH: loop header
LB: loop body
LE: loop exit
PB: predicated region body
PF: predicated region fallthrough
CT: control target
= control target key end

     0   :  { %v104_v0 = vlaneseq  ;;  %v292_v4 = vmov 1966171168   ;;  %s438_s0 = inlined_call_operand.vmem [shape: f32[16,1024], index: 0, kind: input, shape index: {}]   ;;  %s439_s1 = inlined_call_operand.vmem [shape: f32[1,1024], index: 1, kind: output, shape index: {0}]   ;;  %s440_s2 = inlined_call_operand.vmem [shape: f32[1,1024], index: 2, kind: output, shape index: {1}]  }
   0x1   :  { %v16_v1 = vld [vmem:[%s438_s0] sm:$0xff]  ;;  %v17_v2 = vld [vmem:[%s438_s0 + $0x8] sm:$0xff]  ;;  %v18_v3 = vld [vmem:[%s438_s0 + $0x10] sm:$0xff]  ;;  %v102_v5 = vunpack.c.l.s4 %v292_v4 }
   0x2   :  { %v19_v6 = vld [vmem:[%s438_s0 + $0x18] sm:$0xff]  ;;  %v20_v7 = vld [vmem:[%s438_s0 + $0x20] sm:$0xff]  ;;  %v21_v8 = vld [vmem:[%s438_s0 + $0x28] sm:$0xff]  ;;  %v105_v9 = vshrl.u32 %v104_v0, 7  ;;  %v326_v10 = vmul.f32 %v16_v1, %v16_v1  ;;  %v328_v11 = vmul.f32 %v17_v2, %v17_v2  ;;  %v330_v12 = vmul.f32 %v18_v3, %v18_v3 }
   0x3   :  { %v22_v13 = vld [vmem:[%s438_s0 + $0x30] sm:$0xff]  ;;  %v23_v14 = vld [vmem:[%s438_s0 + $0x38] sm:$0xff]  ;;  %v24_v15 = vld [vmem:[%s438_s0 + $0x40] sm:$0xff]  ;;  %v103_v16 = vunpack.c.0.s8 %v102_v5  ;;  %v341_v17 = vmul.f32 %v19_v6, %v19_v6  ;;  %v343_v18 = vmul.f32 %v20_v7, %v20_v7  ;;  %v345_v19 = vmul.f32 %v21_v8, %v21_v8 }
   0x4   :  { %v350_v20 = vld [vmem:[%s438_s0 + $0x48] sm:$0xff]  ;;  %v355_v21 = vld [vmem:[%s438_s0 + $0x50] sm:$0xff]  ;;  %v360_v22 = vld [vmem:[%s438_s0 + $0x58] sm:$0xff]  ;;  %v33_v23 = vadd.f32 %v24_v15, %v16_v1  ;;  %v362_v24 = vmul.f32 %v22_v13, %v22_v13  ;;  %v364_v25 = vmul.f32 %v23_v14, %v23_v14  ;;  %v366_v26 = vmul.f32 %v24_v15, %v24_v15 }
   0x5   :  { %v371_v27 = vld [vmem:[%s438_s0 + $0x60] sm:$0xff]  ;;  %v376_v28 = vld [vmem:[%s438_s0 + $0x68] sm:$0xff]  ;;  %v381_v29 = vld [vmem:[%s438_s0 + $0x70] sm:$0xff]  ;;  %v40_v30 = vadd.f32 %v350_v20, %v17_v2  ;;  %v47_v31 = vadd.f32 %v355_v21, %v18_v3  ;;  %v54_v32 = vadd.f32 %v360_v22, %v19_v6  ;;  %v386_v33 = vsub.s32 %v103_v16, %v105_v9 }
   0x6   :  { %v391_v34 = vld [vmem:[%s438_s0 + $0x78] sm:$0xff]  ;;  %v34_v35 = vrot.slane %v33_v23, 4  ;;  %v61_v36 = vadd.f32 %v371_v27, %v20_v7  ;;  %v68_v37 = vadd.f32 %v376_v28, %v21_v8  ;;  %v75_v38 = vadd.f32 %v381_v29, %v22_v13 }
   0x7   :  { %v41_v39 = vrot.slane %v40_v30, 4  ;;  %v48_v40 = vrot.slane %v47_v31, 4  ;;  %v55_v41 = vrot.slane %v54_v32, 4  ;;  %v82_v42 = vadd.f32 %v391_v34, %v23_v14 }
   0x8   :  { %v35_v43 = vadd.f32 %v34_v35, %v33_v23  ;;  %v62_v44 = vrot.slane %v61_v36, 4  ;;  %v69_v45 = vrot.slane %v68_v37, 4  ;;  %v76_v46 = vrot.slane %v75_v38, 4 }
   0x9   :  { %v42_v47 = vadd.f32 %v41_v39, %v40_v30  ;;  %v49_v48 = vadd.f32 %v48_v40, %v47_v31  ;;  %v56_v49 = vadd.f32 %v55_v41, %v54_v32  ;;  %v83_v50 = vrot.slane %v82_v42, 4 }
   0xa   :  { %v36_v51 = vrot.slane %v35_v43, 2  ;;  %v63_v52 = vadd.f32 %v62_v44, %v61_v36  ;;  %v70_v53 = vadd.f32 %v69_v45, %v68_v37  ;;  %v77_v54 = vadd.f32 %v76_v46, %v75_v38 }
   0xb   :  { %v43_v55 = vrot.slane %v42_v47, 2  ;;  %v50_v56 = vrot.slane %v49_v48, 2  ;;  %v57_v57 = vrot.slane %v56_v49, 2  ;;  %v84_v58 = vadd.f32 %v83_v50, %v82_v42 }
   0xc   :  { %v37_v59 = vadd.f32 %v36_v51, %v35_v43  ;;  %v64_v60 = vrot.slane %v63_v52, 2  ;;  %v71_v61 = vrot.slane %v70_v53, 2  ;;  %v78_v62 = vrot.slane %v77_v54, 2 }
   0xd   :  { %v44_v63 = vadd.f32 %v43_v55, %v42_v47  ;;  %v51_v0 = vadd.f32 %v50_v56, %v49_v48  ;;  %v58_v1 = vadd.f32 %v57_v57, %v56_v49  ;;  %v85_v2 = vrot.slane %v84_v58, 2 }
   0xe   :  { %v38_v3 = vrot.slane %v37_v59, 1  ;;  %v65_v4 = vadd.f32 %v64_v60, %v63_v52  ;;  %v72_v5 = vadd.f32 %v71_v61, %v70_v53  ;;  %v79_v6 = vadd.f32 %v78_v62, %v77_v54 }
   0xf   :  { %v45_v7 = vrot.slane %v44_v63, 1  ;;  %v52_v8 = vrot.slane %v51_v0, 1  ;;  %v59_v9 = vrot.slane %v58_v1, 1  ;;  %v86_v13 = vadd.f32 %v85_v2, %v84_v58 }
  0x10   :  { %v39_v14 = vadd.f32 %v38_v3, %v37_v59  ;;  %v66_v15 = vrot.slane %v65_v4, 1  ;;  %v73_v16 = vrot.slane %v72_v5, 1  ;;  %v80_v23 = vrot.slane %v79_v6, 1 }
  0x11   :  { %v46_v30 = vadd.f32 %v45_v7, %v44_v63  ;;  %v53_v31 = vadd.f32 %v52_v8, %v51_v0  ;;  %v60_v32 = vadd.f32 %v59_v9, %v58_v1  ;;  %v87_v35 = vrot.slane %v86_v13, 1 }
  0x12   :  { %v67_v36 = vadd.f32 %v66_v15, %v65_v4  ;;  %v74_v37 = vadd.f32 %v73_v16, %v72_v5  ;;  %v81_v38 = vadd.f32 %v80_v23, %v79_v6  ;;  %v159_v39 = vmul.f32 %v350_v20, %v350_v20 }
  0x13   :  { %v88_v40 = vadd.f32 %v87_v35, %v86_v13  ;;  %v97_v41 = vcombine.low %v39_v14, %v46_v30  ;;  %v98_v42 = vcombine.low %v53_v31, %v60_v32  ;;  %v160_v43 = vmul.f32 %v355_v21, %v355_v21 }
  0x14   :  { %v99_v44 = vcombine.low %v67_v36, %v74_v37  ;;  %v161_v45 = vmul.f32 %v360_v22, %v360_v22  ;;  %v162_v46 = vmul.f32 %v371_v27, %v371_v27  ;;  %v163_v47 = vmul.f32 %v376_v28, %v376_v28 }
  0x15   :  { %v100_v48 = vcombine.low %v81_v38, %v88_v40  ;;  %v107_v49 = vrot.slane %v97_v41, %v386_v33  ;;  %v114_v20 = vrot.slane %v98_v42, %v386_v33  ;;  %v164_v50 = vmul.f32 %v381_v29, %v381_v29 }
  0x16   :  { %v121_v21 = vrot.slane %v99_v44, %v386_v33  ;;  %v165_v51 = vmul.f32 %v391_v34, %v391_v34  ;;  %v166_v22 = vadd.f32 %v366_v26, %v326_v10  ;;  %v173_v27 = vadd.f32 %v159_v39, %v328_v11 }
  0x17   :  { %v128_v28 = vrot.slane %v100_v48, %v386_v33  ;;  %v129_v52 = vcombine.low %v107_v49, %v114_v20  ;;  %v180_v53 = vadd.f32 %v160_v43, %v330_v12  ;;  %v187_v54 = vadd.f32 %v161_v45, %v341_v17 }
  0x18   :  { %v167_v55 = vrot.slane %v166_v22, 4  ;;  %v174_v56 = vrot.slane %v173_v27, 4  ;;  %v194_v29 = vadd.f32 %v162_v46, %v343_v18  ;;  %v201_v57 = vadd.f32 %v163_v47, %v345_v19 }
  0x19   :  { %v130_v58 = vcombine.low %v121_v21, %v128_v28  ;;  %v137_v34 = vrot.slane %v129_v52, %v386_v33  ;;  %v181_v59 = vrot.slane %v180_v53, 4  ;;  %v188_v10 = vrot.slane %v187_v54, 4 }
  0x1a   :  { %v168_v26 = vadd.f32 %v167_v55, %v166_v22  ;;  %v175_v11 = vadd.f32 %v174_v56, %v173_v27  ;;  %v195_v60 = vrot.slane %v194_v29, 4  ;;  %v202_v61 = vrot.slane %v201_v57, 4 }
  0x1b   :  { %v144_v62 = vrot.slane %v130_v58, %v386_v33  ;;  %v182_v12 = vadd.f32 %v181_v59, %v180_v53  ;;  %v189_v63 = vadd.f32 %v188_v10, %v187_v54  ;;  %v208_v17 = vadd.f32 %v164_v50, %v362_v24 }
  0x1c   :  { %v169_v0 = vrot.slane %v168_v26, 2  ;;  %v176_v1 = vrot.slane %v175_v11, 2  ;;  %v196_v18 = vadd.f32 %v195_v60, %v194_v29  ;;  %v203_v2 = vadd.f32 %v202_v61, %v201_v57 }
  0x1d   :  { %v145_v19 = vcombine.low %v137_v34, %v144_v62  ;;  %v183_v3 = vrot.slane %v182_v12, 2  ;;  %v190_v4 = vrot.slane %v189_v63, 2  ;;  %v209_v5 = vrot.slane %v208_v17, 4 }
  0x1e   :  { %v170_v6 = vadd.f32 %v169_v0, %v168_v26  ;;  %v177_v7 = vadd.f32 %v176_v1, %v175_v11  ;;  %v197_v8 = vrot.slane %v196_v18, 2  ;;  %v204_v9 = vrot.slane %v203_v2, 2 }
  0x1f   :  { %v184_v13 = vadd.f32 %v183_v3, %v182_v12  ;;  %v191_v14 = vadd.f32 %v190_v4, %v189_v63  ;;  %v210_v15 = vadd.f32 %v209_v5, %v208_v17  ;;  %148 = vst [vmem:[%s439_s1] sm:$0xff] %v145_v19  ;;  %v215_v36 = vadd.f32 %v165_v51, %v364_v25 }
  0x20   :  { %v171_v16 = vrot.slane %v170_v6, 1  ;;  %v178_v23 = vrot.slane %v177_v7, 1  ;;  %v198_v30 = vadd.f32 %v197_v8, %v196_v18  ;;  %v205_v31 = vadd.f32 %v204_v9, %v203_v2 }
  0x21   :  { %v185_v24 = vrot.slane %v184_v13, 1  ;;  %v192_v32 = vrot.slane %v191_v14, 1  ;;  %v211_v35 = vrot.slane %v210_v15, 2  ;;  %v216_v44 = vrot.slane %v215_v36, 4 }
  0x22   :  { %v172_v37 = vadd.f32 %v171_v16, %v170_v6  ;;  %v179_v38 = vadd.f32 %v178_v23, %v177_v7  ;;  %v199_v39 = vrot.slane %v198_v30, 1  ;;  %v206_v40 = vrot.slane %v205_v31, 1 }
  0x23   :  { %v186_v41 = vadd.f32 %v185_v24, %v184_v13  ;;  %v193_v42 = vadd.f32 %v192_v32, %v191_v14  ;;  %v212_v43 = vadd.f32 %v211_v35, %v210_v15  ;;  %v217_v45 = vadd.f32 %v216_v44, %v215_v36 }
  0x24   :  { %v200_v46 = vadd.f32 %v199_v39, %v198_v30  ;;  %v207_v47 = vadd.f32 %v206_v40, %v205_v31  ;;  %v230_v20 = vcombine.low %v172_v37, %v179_v38 }
  0x25   :  { %v213_v48 = vrot.slane %v212_v43, 1  ;;  %v218_v49 = vrot.slane %v217_v45, 2  ;;  %v231_v50 = vcombine.low %v186_v41, %v193_v42 }
  0x26   :  { %v232_v22 = vcombine.low %v200_v46, %v207_v47  ;;  %v240_v25 = vrot.slane %v230_v20, %v386_v33 }
  0x27   :  { %v219_v21 = vadd.f32 %v218_v49, %v217_v45  ;;  %v214_v27 = vadd.f32 %v213_v48, %v212_v43  ;;  %v247_v51 = vrot.slane %v231_v50, %v386_v33 }
  0x28   :  { %v254_v54 = vrot.slane %v232_v22, %v386_v33 }
  0x29   :  { %v220_v28 = vrot.slane %v219_v21, 1  ;;  %v262_v55 = vcombine.low %v240_v25, %v247_v51 }
  0x2b   :  { %v221_v52 = vadd.f32 %v220_v28, %v219_v21  ;;  %v270_v57 = vrot.slane %v262_v55, %v386_v33 }
  0x2d   :  { %v233_v53 = vcombine.low %v214_v27, %v221_v52 }
  0x2f   :  { %v261_v56 = vrot.slane %v233_v53, %v386_v33 }
  0x31   :  { %v263_v29 = vcombine.low %v254_v54, %v261_v56 }
  0x33   :  { %v277_v58 = vrot.slane %v263_v29, %v386_v33 }
  0x35   :  { %v278_v34 = vcombine.low %v270_v57, %v277_v58 }
  0x37   :  { %281 = vst [vmem:[%s440_s2] sm:$0xff] %v278_v34 }

// kernel: generator_forward.13
= control target key start
LH: loop header
LB: loop body
LE: loop exit
PB: predicated region body
PF: predicated region fallthrough
CT: control target
= control target key end

     0   :  { %v32_v0 = vlaneseq  ;;  %s346_s1 = inlined_call_operand.vmem [shape: f32[1,1024], index: 1, kind: input, shape index: {}]   ;;  %s347_s2 = inlined_call_operand.vmem [shape: f32[1,1024], index: 2, kind: input, shape index: {}]   ;;  %s348_s0 = inlined_call_operand.vmem [shape: f32[16,1024], index: 0, kind: input, shape index: {}]   ;;  %s349_s3 = inlined_call_operand.vmem [shape: bf16[16,1024], index: 3, kind: output, shape index: {}]  }
   0x1   :  { %v30_v2 = vld [vmem:[%s346_s1] sm:$0xff]  ;;  %v15_v9 = vld [vmem:[%s348_s0 + $0x8] sm:$0xff]  ;;  %v16_v18 = vld [vmem:[%s348_s0 + $0x10] sm:$0xff] }
   0x2   :  { %v258_v1 = vshrl.u32 %v32_v0, 7  ;;  %v88_v3 = vld [vmem:[%s347_s2] sm:$0xff]  ;;  %v17_v19 = vld [vmem:[%s348_s0 + $0x18] sm:$0xff]  ;;  %v19_v25 = vld [vmem:[%s348_s0 + $0x28] sm:$0xff] }
   0x3   :  { %v14_v8 = vld [vmem:[%s348_s0] sm:$0xff]  ;;  %v20_v38 = vld [vmem:[%s348_s0 + $0x30] sm:$0xff]  ;;  %v21_v39 = vld [vmem:[%s348_s0 + $0x38] sm:$0xff] }
   0x4   :  { %v34_v4 = vsub.s32 0, %v258_v1  ;;  %v38_v5 = vsub.s32 1, %v258_v1  ;;  %v42_v6 = vsub.s32 2, %v258_v1  ;;  %v46_v7 = vsub.s32 3, %v258_v1  ;;  %v18_v24 = vld [vmem:[%s348_s0 + $0x20] sm:$0xff]  ;;  %v23_v49 = vld [vmem:[%s348_s0 + $0x48] sm:$0xff] }
   0x5   :  { %v50_v10 = vsub.s32 4, %v258_v1  ;;  %v54_v11 = vsub.s32 5, %v258_v1  ;;  %v58_v12 = vsub.s32 6, %v258_v1  ;;  %v62_v13 = vsub.s32 7, %v258_v1  ;;  %v22_v48 = vld [vmem:[%s348_s0 + $0x40] sm:$0xff]  ;;  %v24_v54 = vld [vmem:[%s348_s0 + $0x50] sm:$0xff] }
   0x6   :  { %v35_v14 = vrot.slane %v30_v2, %v34_v4  ;;  %v39_v15 = vrot.slane %v30_v2, %v38_v5  ;;  %v93_v16 = vrot.slane %v88_v3, %v34_v4  ;;  %v97_v17 = vrot.slane %v88_v3, %v38_v5  ;;  %v25_v55 = vld [vmem:[%s348_s0 + $0x58] sm:$0xff]  ;;  %v26_v60 = vld [vmem:[%s348_s0 + $0x60] sm:$0xff]  ;;  %v27_v1 = vld [vmem:[%s348_s0 + $0x68] sm:$0xff] }
   0x7   :  { %v43_v20 = vrot.slane %v30_v2, %v42_v6  ;;  %v47_v21 = vrot.slane %v30_v2, %v46_v7  ;;  %v101_v22 = vrot.slane %v88_v3, %v42_v6  ;;  %v105_v23 = vrot.slane %v88_v3, %v46_v7 }
   0x8   :  { %v72_v26 = vmul.f32 %v35_v14, %v14_v8  ;;  %v73_v27 = vmul.f32 %v39_v15, %v15_v9  ;;  %v51_v28 = vrot.slane %v30_v2, %v50_v10  ;;  %v55_v29 = vrot.slane %v30_v2, %v54_v11 }
   0x9   :  { %v74_v30 = vmul.f32 %v43_v20, %v16_v18  ;;  %v75_v31 = vmul.f32 %v47_v21, %v17_v19  ;;  %v109_v32 = vrot.slane %v88_v3, %v50_v10  ;;  %v113_v33 = vrot.slane %v88_v3, %v54_v11  ;;  %v28_v10 = vld [vmem:[%s348_s0 + $0x70] sm:$0xff] }
   0xa   :  { %v130_v34 = vadd.f32 %v93_v16, %v72_v26  ;;  %v131_v35 = vadd.f32 %v97_v17, %v73_v27  ;;  %v76_v36 = vmul.f32 %v51_v28, %v18_v24  ;;  %v77_v37 = vmul.f32 %v55_v29, %v19_v25 }
   0xb   :  { %v132_v40 = vadd.f32 %v101_v22, %v74_v30  ;;  %v133_v41 = vadd.f32 %v105_v23, %v75_v31  ;;  %v59_v42 = vrot.slane %v30_v2, %v58_v12  ;;  %v63_v43 = vrot.slane %v30_v2, %v62_v13 }
   0xc   :  { %v146_v44 = vmax.f32 %v130_v34, 0.0  ;;  %v147_v45 = vmax.f32 %v131_v35, 0.0  ;;  %v134_v46 = vadd.f32 %v109_v32, %v76_v36  ;;  %v135_v47 = vadd.f32 %v113_v33, %v77_v37 }
   0xd   :  { %v148_v50 = vmax.f32 %v132_v40, 0.0  ;;  %v149_v51 = vmax.f32 %v133_v41, 0.0  ;;  %v78_v52 = vmul.f32 %v59_v42, %v20_v38  ;;  %v79_v53 = vmul.f32 %v63_v43, %v21_v39 }
   0xe   :  { %v230_v56 = vpack.c.bf16 %v147_v45, %v146_v44  ;;  %v150_v57 = vmax.f32 %v134_v46, 0.0  ;;  %v151_v58 = vmax.f32 %v135_v47, 0.0  ;;  %v117_v59 = vrot.slane %v88_v3, %v58_v12 }
   0xf   :  { %v231_v61 = vpack.c.bf16 %v149_v51, %v148_v50  ;;  %v121_v62 = vrot.slane %v88_v3, %v62_v13  ;;  %v80_v63 = vmul.f32 %v35_v14, %v22_v48  ;;  %v81_v0 = vmul.f32 %v39_v15, %v23_v49  ;;  %v29_v15 = vld [vmem:[%s348_s0 + $0x78] sm:$0xff] }
  0x10   :  { %210 = vst [vmem:[%s349_s3] sm:$0xff] %v230_v56  ;;  %v232_v2 = vpack.c.bf16 %v151_v58, %v150_v57  ;;  %v136_v4 = vadd.f32 %v117_v59, %v78_v52  ;;  %v82_v5 = vmul.f32 %v43_v20, %v24_v54  ;;  %v83_v6 = vmul.f32 %v47_v21, %v25_v55 }
  0x11   :  { %211 = vst [vmem:[%s349_s3 + $0x8] sm:$0xff] %v231_v61  ;;  %v137_v7 = vadd.f32 %v121_v62, %v79_v53  ;;  %v138_v3 = vadd.f32 %v93_v16, %v80_v63  ;;  %v139_v8 = vadd.f32 %v97_v17, %v81_v0  ;;  %v84_v9 = vmul.f32 %v51_v28, %v26_v60 }
  0x12   :  { %212 = vst [vmem:[%s349_s3 + $0x10] sm:$0xff] %v232_v2  ;;  %v152_v11 = vmax.f32 %v136_v4, 0.0  ;;  %v140_v12 = vadd.f32 %v101_v22, %v82_v5  ;;  %v141_v13 = vadd.f32 %v105_v23, %v83_v6  ;;  %v85_v14 = vmul.f32 %v55_v29, %v27_v1 }
  0x13   :  { %v153_v18 = vmax.f32 %v137_v7, 0.0  ;;  %v154_v16 = vmax.f32 %v138_v3, 0.0  ;;  %v155_v17 = vmax.f32 %v139_v8, 0.0  ;;  %v142_v19 = vadd.f32 %v109_v32, %v84_v9 }
  0x14   :  { %v156_v20 = vmax.f32 %v140_v12, 0.0  ;;  %v157_v21 = vmax.f32 %v141_v13, 0.0  ;;  %v143_v24 = vadd.f32 %v113_v33, %v85_v14  ;;  %v86_v25 = vmul.f32 %v59_v42, %v28_v10 }
  0x15   :  { %v233_v26 = vpack.c.bf16 %v153_v18, %v152_v11  ;;  %v234_v27 = vpack.c.bf16 %v155_v17, %v154_v16  ;;  %v158_v28 = vmax.f32 %v142_v19, 0.0  ;;  %v87_v30 = vmul.f32 %v63_v43, %v29_v15 }
  0x16   :  { %v235_v31 = vpack.c.bf16 %v157_v21, %v156_v20  ;;  %v159_v22 = vmax.f32 %v143_v24, 0.0  ;;  %v144_v23 = vadd.f32 %v117_v59, %v86_v25 }
  0x17   :  { %213 = vst [vmem:[%s349_s3 + $0x18] sm:$0xff] %v233_v26  ;;  %214 = vst [vmem:[%s349_s3 + $0x20] sm:$0xff] %v234_v27  ;;  %v145_v29 = vadd.f32 %v121_v62, %v87_v30 }
  0x18   :  { %215 = vst [vmem:[%s349_s3 + $0x28] sm:$0xff] %v235_v31  ;;  %v236_v32 = vpack.c.bf16 %v159_v22, %v158_v28  ;;  %v160_v33 = vmax.f32 %v144_v23, 0.0 }
  0x19   :  { %v161_v34 = vmax.f32 %v145_v29, 0.0 }
  0x1a   :  { %216 = vst [vmem:[%s349_s3 + $0x30] sm:$0xff] %v236_v32 }
  0x1b   :  { %v237_v35 = vpack.c.bf16 %v161_v34, %v160_v33 }
  0x1d   :  { %217 = vst [vmem:[%s349_s3 + $0x38] sm:$0xff] %v237_v35 }

// kernel: generator_forward.11
= control target key start
LH: loop header
LB: loop body
LE: loop exit
PB: predicated region body
PF: predicated region fallthrough
CT: control target
= control target key end

     0   :  { %v284_v3 = vmov 0   ;;  %vm73_vm0 = vcmask 130048   ;;  %s385_s1 = inlined_call_operand.vmem [shape: f32[1,16], index: 1, kind: input, shape index: {}]   ;;  %s386_s2 = inlined_call_operand.vmem [shape: f32[1,16], index: 2, kind: input, shape index: {}]   ;;  %s387_s3 = inlined_call_operand.vmem [shape: bf16[16,1024], index: 3, kind: input, shape index: {}]   ;;  %s388_s0 = inlined_call_operand.vmem [shape: bf16[16,16], index: 0, kind: input, shape index: {}]   ;;  %s389_s4 = inlined_call_operand.vmem [shape: f32[16,1024], index: 4, kind: output, shape index: {}]  }
   0x1   :  { %v20_v0 = vld [vmem:[%s387_s3] sm:$0xff]  ;;  %v21_v2 = vld [vmem:[%s387_s3 + $0x8] sm:$0xff]  ;;  %109 = vmatprep.mubr.bf16.mxu0 %v284_v3  ;;  %152 = vmatprep.mubr.bf16.mxu1 %v284_v3  ;;  %v22_v9 = vld [vmem:[%s387_s3 + $0x10] sm:$0xff] }
   0x2   :  { %v24_v1 = vld [vmem:[%s387_s3 + $0x20] sm:$0xff]  ;;  %v25_v5 = vld [vmem:[%s387_s3 + $0x28] sm:$0xff]  ;;  %v26_v10 = vld [vmem:[%s387_s3 + $0x30] sm:$0xff] }
   0x3   :  { %v271_v4 = vcombine.high %v20_v0, %v24_v1  ;;  %v270_v6 = vcombine.low %v20_v0, %v24_v1  ;;  %v273_v7 = vcombine.high %v21_v2, %v25_v5  ;;  %v272_v8 = vcombine.low %v21_v2, %v25_v5  ;;  %v283_v11 = vld [vmem:[%s388_s0] sm:$0xff]   ;;  %v23_v13 = vld [vmem:[%s387_s3 + $0x18] sm:$0xff] }
   0x4   :  { %v275_v12 = vcombine.high %v22_v9, %v26_v10  ;;  %v27_v14 = vld [vmem:[%s387_s3 + $0x38] sm:$0xff]  ;;  %v274_v15 = vcombine.low %v22_v9, %v26_v10 }
   0x5   :  { %77 = vmatprep.subr.bf16.mxu0 %v271_v4  ;;  %120 = vmatprep.subr.bf16.mxu1 %v273_v7  ;;  %v277_v16 = vcombine.high %v23_v13, %v27_v14  ;;  %v276_v17 = vcombine.low %v23_v13, %v27_v14 }
   0x6   :  { %78 = vmatpush1.bf16.msra.mxu0 %v270_v6  ;;  %121 = vmatpush1.bf16.msra.mxu1 %v272_v8 }
   0x7   :  { %163 = vmatprep.subr.bf16.mxu0 %v275_v12  ;;  %206 = vmatprep.subr.bf16.mxu1 %v277_v16 }
   0x9   :  { %278 = vmatmul.mubr.msk.bf16.vlgmr.msra.gmra.mrb[0].mxu0 %vm73_vm0, %v283_v11  ;;  %279 = vmatmul.mubr.msk.bf16.vlgmr.msra.gmra.mrb[0].mxu1 %vm73_vm0, %v283_v11 }
   0xa   :  { %164 = vmatpush1.bf16.msra.mxu0 %v274_v15  ;;  %207 = vmatpush1.bf16.msra.mxu1 %v276_v17 }
   0xb   :  { %195 = vmatprep.mubr.bf16.mxu0 %v284_v3  ;;  %238 = vmatprep.mubr.bf16.mxu1 %v284_v3 }
  0x11   :  { %280 = vmatmul.mubr.msk.bf16.vlgmr.msra.gmra.mrb[4].mxu0 %vm73_vm0, %v283_v11  ;;  %281 = vmatmul.mubr.msk.bf16.vlgmr.msra.gmra.mrb[4].mxu1 %vm73_vm0, %v283_v11 }
  0xdc   :  { %v111_v18 = vpop.f32.mrb[0].mxu0  ;;  %v154_v19 = vpop.f32.mrb[0].mxu1 }
  0xdd   :  { %249 = vst [vmem:[%s389_s4] sm:$0xff] %v111_v18  ;;  %v113_v20 = vpop.f32.mrb[1].mxu0  ;;  %251 = vst [vmem:[%s389_s4 + $0x10] sm:$0xff] %v154_v19  ;;  %v156_v21 = vpop.f32.mrb[1].mxu1 }
  0xde   :  { %250 = vst [vmem:[%s389_s4 + $0x8] sm:$0xff] %v113_v20  ;;  %v115_v22 = vpop.f32.mrb[2].mxu0  ;;  %252 = vst [vmem:[%s389_s4 + $0x18] sm:$0xff] %v156_v21  ;;  %v158_v23 = vpop.f32.mrb[2].mxu1 }
  0xdf   :  { %257 = vst [vmem:[%s389_s4 + $0x40] sm:$0xff] %v115_v22  ;;  %v117_v24 = vpop.f32.mrb[3].mxu0  ;;  %259 = vst [vmem:[%s389_s4 + $0x50] sm:$0xff] %v158_v23  ;;  %v160_v25 = vpop.f32.mrb[3].mxu1 }
  0xe0   :  { %258 = vst [vmem:[%s389_s4 + $0x48] sm:$0xff] %v117_v24  ;;  %260 = vst [vmem:[%s389_s4 + $0x58] sm:$0xff] %v160_v25 }
  0xe4   :  { %v197_v26 = vpop.f32.mrb[4].mxu0  ;;  %v240_v27 = vpop.f32.mrb[4].mxu1 }
  0xe5   :  { %253 = vst [vmem:[%s389_s4 + $0x20] sm:$0xff] %v197_v26  ;;  %v199_v28 = vpop.f32.mrb[5].mxu0  ;;  %255 = vst [vmem:[%s389_s4 + $0x30] sm:$0xff] %v240_v27  ;;  %v242_v29 = vpop.f32.mrb[5].mxu1 }
  0xe6   :  { %254 = vst [vmem:[%s389_s4 + $0x28] sm:$0xff] %v199_v28  ;;  %v201_v30 = vpop.f32.mrb[6].mxu0  ;;  %256 = vst [vmem:[%s389_s4 + $0x38] sm:$0xff] %v242_v29  ;;  %v244_v31 = vpop.f32.mrb[6].mxu1 }
  0xe7   :  { %261 = vst [vmem:[%s389_s4 + $0x60] sm:$0xff] %v201_v30  ;;  %v203_v32 = vpop.f32.mrb[7].mxu0  ;;  %263 = vst [vmem:[%s389_s4 + $0x70] sm:$0xff] %v244_v31  ;;  %v246_v33 = vpop.f32.mrb[7].mxu1 }
  0xe8   :  { %262 = vst [vmem:[%s389_s4 + $0x68] sm:$0xff] %v203_v32  ;;  %264 = vst [vmem:[%s389_s4 + $0x78] sm:$0xff] %v246_v33 }

// kernel: generator_forward.14
= control target key start
LH: loop header
LB: loop body
LE: loop exit
PB: predicated region body
PF: predicated region fallthrough
CT: control target
= control target key end

     0   :  { %v697_v1 = vmov 0   ;;  %vm222_vm0 = vcmask 523264   ;;  %vm525_vm1 = vcmask 261120   ;;  %s1023_s1 = inlined_call_operand.vmem [shape: f32[1,64], index: 1, kind: input, shape index: {}]   ;;  %s1024_s2 = inlined_call_operand.vmem [shape: f32[1,64], index: 2, kind: input, shape index: {}]   ;;  %s1025_s3 = inlined_call_operand.vmem [shape: bf16[64,800], index: 3, kind: input, shape index: {}]   ;;  %s1026_s0 = inlined_call_operand.vmem [shape: bf16[64,64], index: 0, kind: input, shape index: {}]   ;;  %s1027_s4 = inlined_call_operand.vmem [shape: f32[64,800], index: 4, kind: output, shape index: {}]  }
   0x1   :  { %v653_v0 = vld [vmem:[%s1025_s3 + $0x4] ss:$28 sps:$4 sm:$0xff]   ;;  %267 = vmatprep.mubr.bf16.mxu0 %v697_v1  ;;  %340 = vmatprep.mubr.bf16.mxu1 %v697_v1  ;;  %v656_v3 = vld [vmem:[%s1025_s3 + $0x3c] ss:$28 sps:$4 sm:$0xff]   ;;  %v659_v5 = vld [vmem:[%s1025_s3 + $0x74] ss:$28 sps:$4 sm:$0xff]  }
   0x2   :  { %v655_v2 = vld [vmem:[%s1025_s3] ss:$28 sps:$4 sm:$0xff]   ;;  %235 = vmatprep.subr.bf16.mxu0 %v653_v0  ;;  %v658_v4 = vld [vmem:[%s1025_s3 + $0x38] ss:$28 sps:$4 sm:$0xff]   ;;  %v665_v6 = vld [vmem:[%s1025_s3 + $0xc] ss:$28 sps:$4 sm:$0xff]  }
   0x3   :  { %236 = vmatpush1.bf16.msra.mxu0 %v655_v2  ;;  %v667_v7 = vld [vmem:[%s1025_s3 + $0x8] ss:$28 sps:$4 sm:$0xff]   ;;  %v661_v8 = vld [vmem:[%s1025_s3 + $0x70] ss:$28 sps:$4 sm:$0xff]   ;;  %308 = vmatprep.subr.bf16.mxu1 %v665_v6  ;;  %v674_v11 = vld [vmem:[%s1025_s3 + $0x40] ss:$28 sps:$4 sm:$0xff]  }
   0x4   :  { %237 = vmatprep.subr.bf16.mxu0 %v656_v3  ;;  %v662_v9 = vld [vmem:[%s1025_s3 + $0xac] ss:$28 sps:$4 sm:$0xff]   ;;  %309 = vmatpush1.bf16.msra.mxu1 %v667_v7  ;;  %v672_v10 = vld [vmem:[%s1025_s3 + $0x44] ss:$28 sps:$4 sm:$0xff]   ;;  %v675_v13 = vld [vmem:[%s1025_s3 + $0x7c] ss:$28 sps:$4 sm:$0xff]  }
   0x5   :  { %v664_v12 = vld [vmem:[%s1025_s3 + $0xa8] ss:$28 sps:$4 sm:$0xff]   ;;  %310 = vmatprep.subr.bf16.mxu1 %v672_v10  ;;  %v671_v14 = vld [vmem:[%s1025_s3 + $0x14] ss:$28 sps:$4 sm:$0xff]   ;;  %v686_v26 = vld [vmem:[%s1025_s3 + $0x80] ss:$28 sps:$4 sm:$0xff]  }
   0x6   :  { %v668_v15 = vld [vmem:[%s1026_s0] sm:$0xff]   ;;  %v677_v16 = vld [vmem:[%s1025_s3 + $0x78] ss:$28 sps:$4 sm:$0xff]   ;;  %v669_v18 = vld [vmem:[%s1025_s3 + $0x10] ss:$28 sps:$4 sm:$0xff]  }
   0x7   :  { %238 = vmatpush1.bf16.msra.mxu0 %v658_v4  ;;  %v682_v17 = vld [vmem:[%s1025_s3 + $0xb4] ss:$28 sps:$4 sm:$0xff]   ;;  %v681_v19 = vld [vmem:[%s1025_s3 + $0x4c] ss:$28 sps:$4 sm:$0xff]   ;;  %v688_v23 = vld [vmem:[%s1025_s3 + $0x84] ss:$28 sps:$4 sm:$0xff]  }
   0x8   :  { %239 = vmatprep.subr.bf16.mxu0 %v659_v5  ;;  %311 = vmatpush1.bf16.msra.mxu1 %v674_v11  ;;  %v684_v20 = vld [vmem:[%s1025_s3 + $0xb0] ss:$28 sps:$4 sm:$0xff]   ;;  %v689_v21 = vld [vmem:[%s1025_s3 + $0x18] ss:$28 sps:$4 sm:$0xff]   ;;  %v679_v22 = vld [vmem:[%s1025_s3 + $0x48] ss:$28 sps:$4 sm:$0xff]  }
   0x9   :  { %312 = vmatprep.subr.bf16.mxu1 %v675_v13  ;;  %v678_v24 = vld [vmem:[%s1026_s0 + $0x8] sm:$0xff]   ;;  %v693_v27 = vld [vmem:[%s1025_s3 + $0xbc] ss:$28 sps:$4 sm:$0xff]   ;;  %v685_v30 = vld [vmem:[%s1026_s0 + $0x10] sm:$0xff]  }
   0xa   :  { %v694_v25 = vld [vmem:[%s1025_s3 + $0x50] ss:$28 sps:$4 sm:$0xff]   ;;  %v695_v28 = vld [vmem:[%s1025_s3 + $0x88] ss:$28 sps:$4 sm:$0xff]   ;;  %v691_v29 = vld [vmem:[%s1025_s3 + $0xb8] ss:$28 sps:$4 sm:$0xff]  }
   0xb   :  { %240 = vmatpush1.bf16.msra.mxu0 %v661_v8  ;;  %v696_v31 = vld [vmem:[%s1025_s3 + $0xc0] ss:$28 sps:$4 sm:$0xff]  }
   0xc   :  { %241 = vmatprep.subr.bf16.mxu0 %v662_v9  ;;  %313 = vmatpush1.bf16.msra.mxu1 %v677_v16  ;;  %v690_v32 = vld [vmem:[%s1026_s0 + $0x18] sm:$0xff]  }
   0xd   :  { %314 = vmatprep.subr.bf16.mxu1 %v682_v17 }
   0xf   :  { %242 = vmatpush1.bf16.msra.mxu0 %v664_v12 }
  0x10   :  { %381 = vmatprep.subr.bf16.mxu0 %v671_v14  ;;  %315 = vmatpush1.bf16.msra.mxu1 %v684_v20 }
  0x11   :  { %636 = vmatprep.subr.bf16.mxu1 %v689_v21 }
  0x12   :  { %612 = vmatmul.mubr.msk.bf16.vlgmr.msra.gmra.mrb[0].mxu0 %vm222_vm0, %v668_v15 }
  0x13   :  { %382 = vmatpush1.bf16.msra.mxu0 %v669_v18  ;;  %277 = vmatprep.mubr.bf16.mxu0 %v697_v1 }
  0x14   :  { %383 = vmatprep.subr.bf16.mxu0 %v681_v19  ;;  %616 = vmatmul.mubr.msk.bf16.vlgmr.msra.gmra.mrb[0].mxu1 %vm222_vm0, %v668_v15 }
  0x15   :  { %637 = vmatpush3.bf16.msra.mxu1 %v689_v21  ;;  %350 = vmatprep.mubr.bf16.mxu1 %v697_v1 }
  0x16   :  { %638 = vmatprep.subr.bf16.mxu1 %v694_v25 }
  0x17   :  { %384 = vmatpush1.bf16.msra.mxu0 %v679_v22 }
  0x18   :  { %385 = vmatprep.subr.bf16.mxu0 %v688_v23 }
  0x19   :  { %639 = vmatpush3.bf16.msra.mxu1 %v694_v25 }
  0x1a   :  { %613 = vmatmul.mubr.msk.bf16.gmra.mrb[4].mxu0 %vm222_vm0, %v678_v24  ;;  %640 = vmatprep.subr.bf16.mxu1 %v695_v28 }
  0x1b   :  { %287 = vmatprep.mubr.bf16.mxu0 %v697_v1  ;;  %386 = vmatpush1.bf16.msra.mxu0 %v686_v26 }
  0x1c   :  { %387 = vmatprep.subr.bf16.mxu0 %v693_v27  ;;  %617 = vmatmul.mubr.msk.bf16.gmra.mrb[4].mxu1 %vm222_vm0, %v678_v24 }
  0x1d   :  { %360 = vmatprep.mubr.bf16.mxu1 %v697_v1  ;;  %641 = vmatpush3.bf16.msra.mxu1 %v695_v28 }
  0x1e   :  { %642 = vmatprep.subr.bf16.mxu1 %v696_v31 }
  0x1f   :  { %388 = vmatpush1.bf16.msra.mxu0 %v691_v29 }
  0x21   :  { %643 = vmatpush3.bf16.msra.mxu1 %v696_v31 }
  0x22   :  { %614 = vmatmul.mubr.msk.bf16.gmra.mrb[8].mxu0 %vm222_vm0, %v685_v30 }
  0x23   :  { %297 = vmatprep.mubr.bf16.mxu0 %v697_v1 }
  0x24   :  { %618 = vmatmul.mubr.msk.bf16.gmra.mrb[8].mxu1 %vm222_vm0, %v685_v30 }
  0x25   :  { %370 = vmatprep.mubr.bf16.mxu1 %v697_v1 }
  0x2a   :  { %615 = vmatmul.mubr.msk.bf16.gmra.mrb[12].mxu0 %vm222_vm0, %v690_v32 }
  0x2b   :  { %413 = vmatprep.mubr.bf16.mxu0 %v697_v1 }
  0x2c   :  { %619 = vmatmul.mubr.msk.bf16.gmra.mrb[12].mxu1 %vm222_vm0, %v690_v32 }
  0x2d   :  { %644 = vmatprep.mubr.msk.bf16.mxu1 %vm222_vm0, %v668_v15 }
  0x32   :  { %620 = vmatmul.mubr.msk.bf16.vlgmr.msra.gmra.mrb[16].mxu0 %vm222_vm0, %v668_v15 }
  0x33   :  { %423 = vmatprep.mubr.bf16.mxu0 %v697_v1 }
  0x34   :  { %645 = vmatmul.mubr.msk.bf16.vlgmr.msra.gmra.mrb[16].mxu1 %vm222_vm0, %v678_v24 }
  0x35   :  { %648 = vmatprep.mubr.msk.bf16.mxu1 %vm222_vm0, %v685_v30 }
  0x3a   :  { %621 = vmatmul.mubr.msk.bf16.gmra.mrb[20].mxu0 %vm222_vm0, %v678_v24 }
  0x3b   :  { %433 = vmatprep.mubr.bf16.mxu0 %v697_v1 }
  0x3c   :  { %649 = vmatmul.mubr.msk.bf16.gmra.mrb[20].mxu1 %vm222_vm0, %v690_v32 }
  0x42   :  { %622 = vmatmul.mubr.msk.bf16.gmra.mrb[24].mxu0 %vm222_vm0, %v685_v30 }
  0x43   :  { %443 = vmatprep.mubr.bf16.mxu0 %v697_v1 }
  0x4a   :  { %623 = vmatmul.mubr.msk.bf16.gmra.mrb[28].mxu0 %vm222_vm0, %v690_v32 }
  0xe5   :  { %v269_v33 = vpop.f32.mrb[0].mxu0 }
  0xe6   :  { %519 = vst [vmem:[%s1027_s4] sm:$0xff] %v269_v33  ;;  %v271_v34 = vpop.f32.mrb[1].mxu0 }
  0xe7   :  { %520 = vst [vmem:[%s1027_s4 + $0x8] sm:$0xff] %v271_v34  ;;  %v273_v35 = vpop.f32.mrb[2].mxu0  ;;  %v342_v37 = vpop.f32.mrb[0].mxu1 }
  0xe8   :  { %527 = vst [vmem:[%s1027_s4 + $0x38] sm:$0xff] %v273_v35  ;;  %v275_v36 = vpop.f32.mrb[3].mxu0  ;;  %521 = vst [vmem:[%s1027_s4 + $0x10] sm:$0xff] %v342_v37  ;;  %v344_v38 = vpop.f32.mrb[1].mxu1 }
  0xe9   :  { %528 = vst [vmem:[%s1027_s4 + $0x40] sm:$0xff] %v275_v36  ;;  %522 = vst [vmem:[%s1027_s4 + $0x18] sm:$0xff] %v344_v38  ;;  %v346_v40 = vpop.f32.mrb[2].mxu1 }
  0xea   :  { %529 = vst [vmem:[%s1027_s4 + $0x48] sm:$0xff] %v346_v40  ;;  %v348_v42 = vpop.f32.mrb[3].mxu1 }
  0xeb   :  { %530 = vst [vmem:[%s1027_s4 + $0x50] sm:$0xff] %v348_v42 }
  0xed   :  { %v279_v39 = vpop.f32.mrb[4].mxu0 }
  0xee   :  { %534 = vst [vmem:[%s1027_s4 + $0x70] sm:$0xff] %v279_v39  ;;  %v281_v41 = vpop.f32.mrb[5].mxu0 }
  0xef   :  { %535 = vst [vmem:[%s1027_s4 + $0x78] sm:$0xff] %v281_v41  ;;  %v283_v43 = vpop.f32.mrb[6].mxu0  ;;  %v352_v45 = vpop.f32.mrb[4].mxu1 }
  0xf0   :  { %541 = vst [vmem:[%s1027_s4 + $0xa8] sm:$0xff] %v283_v43  ;;  %v285_v44 = vpop.f32.mrb[7].mxu0  ;;  %536 = vst [vmem:[%s1027_s4 + $0x80] sm:$0xff] %v352_v45  ;;  %v354_v46 = vpop.f32.mrb[5].mxu1 }
  0xf1   :  { %542 = vst [vmem:[%s1027_s4 + $0xb0] sm:$0xff] %v285_v44  ;;  %537 = vst [vmem:[%s1027_s4 + $0x88] sm:$0xff] %v354_v46  ;;  %v356_v48 = vpop.f32.mrb[6].mxu1 }
  0xf2   :  { %543 = vst [vmem:[%s1027_s4 + $0xb8] sm:$0xff] %v356_v48  ;;  %v358_v50 = vpop.f32.mrb[7].mxu1 }
  0xf3   :  { %544 = vst [vmem:[%s1027_s4 + $0xc0] sm:$0xff] %v358_v50 }
  0xf5   :  { %v289_v47 = vpop.f32.mrb[8].mxu0 }
  0xf6   :  { %548 = vst [vmem:[%s1027_s4 + $0xe0] sm:$0xff] %v289_v47  ;;  %v291_v49 = vpop.f32.mrb[9].mxu0 }
  0xf7   :  { %549 = vst [vmem:[%s1027_s4 + $0xe8] sm:$0xff] %v291_v49  ;;  %v293_v51 = vpop.f32.mrb[10].mxu0  ;;  %v362_v53 = vpop.f32.mrb[8].mxu1 }
  0xf8   :  { %555 = vst [vmem:[%s1027_s4 + $0x118] sm:$0xff] %v293_v51  ;;  %v295_v52 = vpop.f32.mrb[11].mxu0  ;;  %550 = vst [vmem:[%s1027_s4 + $0xf0] sm:$0xff] %v362_v53  ;;  %v364_v54 = vpop.f32.mrb[9].mxu1 }
  0xf9   :  { %556 = vst [vmem:[%s1027_s4 + $0x120] sm:$0xff] %v295_v52  ;;  %551 = vst [vmem:[%s1027_s4 + $0xf8] sm:$0xff] %v364_v54  ;;  %v366_v56 = vpop.f32.mrb[10].mxu1 }
  0xfa   :  { %557 = vst [vmem:[%s1027_s4 + $0x128] sm:$0xff] %v366_v56  ;;  %v368_v58 = vpop.f32.mrb[11].mxu1 }
  0xfb   :  { %558 = vst [vmem:[%s1027_s4 + $0x130] sm:$0xff] %v368_v58 }
  0xfd   :  { %v299_v55 = vpop.f32.mrb[12].mxu0 }
  0xfe   :  { %562 = vst [vmem:[%s1027_s4 + $0x150] sm:$0xff] %v299_v55  ;;  %v301_v57 = vpop.f32.mrb[13].mxu0 }
  0xff   :  { %563 = vst [vmem:[%s1027_s4 + $0x158] sm:$0xff] %v301_v57  ;;  %v303_v59 = vpop.f32.mrb[14].mxu0  ;;  %v372_v61 = vpop.f32.mrb[12].mxu1 }
 0x100   :  { %569 = vst [vmem:[%s1027_s4 + $0x188] sm:$0xff] %v303_v59  ;;  %v305_v60 = vpop.f32.mrb[15].mxu0  ;;  %564 = vst [vmem:[%s1027_s4 + $0x160] sm:$0xff] %v372_v61  ;;  %v374_v62 = vpop.f32.mrb[13].mxu1 }
 0x101   :  { %570 = vst [vmem:[%s1027_s4 + $0x190] sm:$0xff] %v305_v60  ;;  %565 = vst [vmem:[%s1027_s4 + $0x168] sm:$0xff] %v374_v62  ;;  %v376_v0 = vpop.f32.mrb[14].mxu1 }
 0x102   :  { %571 = vst [vmem:[%s1027_s4 + $0x198] sm:$0xff] %v376_v0  ;;  %v378_v2 = vpop.f32.mrb[15].mxu1 }
 0x103   :  { %572 = vst [vmem:[%s1027_s4 + $0x1a0] sm:$0xff] %v378_v2 }
 0x105   :  { %v415_v63 = vpop.f32.mrb[16].mxu0 }
 0x106   :  { %523 = vst [vmem:[%s1027_s4 + $0x20] sm:$0xff] %v415_v63  ;;  %v417_v1 = vpop.f32.mrb[17].mxu0 }
 0x107   :  { %524 = vst [vmem:[%s1027_s4 + $0x28] sm:$0xff] %v417_v1  ;;  %v419_v3 = vpop.f32.mrb[18].mxu0  ;;  %v646_v5 = vpop.f32.mrb[16].mxu1 }
 0x108   :  { %531 = vst [vmem:[%s1027_s4 + $0x58] sm:$0xff] %v419_v3  ;;  %v421_v4 = vpop.f32.mrb[19].mxu0  ;;  %540 = vst.msk [vmem:[%s1027_s4 + $0xa0] sm:$0xff] %vm525_vm1, %v646_v5  ;;  %v488_v6 = vpop.f32.mrb[17].mxu1 }
 0x109   :  { %532 = vst [vmem:[%s1027_s4 + $0x60] sm:$0xff] %v421_v4  ;;  %526 = vst.msk [vmem:[%s1027_s4 + $0x30] sm:$0xff] %vm525_vm1, %v488_v6  ;;  %v647_v8 = vpop.f32.mrb[18].mxu1 }
 0x10a   :  { %547 = vst.msk [vmem:[%s1027_s4 + $0xd8] sm:$0xff] %vm525_vm1, %v647_v8  ;;  %v491_v10 = vpop.f32.mrb[19].mxu1 }
 0x10b   :  { %533 = vst.msk [vmem:[%s1027_s4 + $0x68] sm:$0xff] %vm525_vm1, %v491_v10 }
 0x10d   :  { %v425_v7 = vpop.f32.mrb[20].mxu0 }
 0x10e   :  { %538 = vst [vmem:[%s1027_s4 + $0x90] sm:$0xff] %v425_v7  ;;  %v427_v9 = vpop.f32.mrb[21].mxu0 }
 0x10f   :  { %539 = vst [vmem:[%s1027_s4 + $0x98] sm:$0xff] %v427_v9  ;;  %v429_v11 = vpop.f32.mrb[22].mxu0  ;;  %v650_v13 = vpop.f32.mrb[20].mxu1 }
 0x110   :  { %545 = vst [vmem:[%s1027_s4 + $0xc8] sm:$0xff] %v429_v11  ;;  %v431_v12 = vpop.f32.mrb[23].mxu0  ;;  %568 = vst.msk [vmem:[%s1027_s4 + $0x180] sm:$0xff] %vm525_vm1, %v650_v13  ;;  %v504_v14 = vpop.f32.mrb[21].mxu1 }
 0x111   :  { %546 = vst [vmem:[%s1027_s4 + $0xd0] sm:$0xff] %v431_v12  ;;  %554 = vst.msk [vmem:[%s1027_s4 + $0x110] sm:$0xff] %vm525_vm1, %v504_v14  ;;  %v651_v16 = vpop.f32.mrb[22].mxu1 }
 0x112   :  { %575 = vst.msk [vmem:[%s1027_s4 + $0x1b8] sm:$0xff] %vm525_vm1, %v651_v16  ;;  %v507_v18 = vpop.f32.mrb[23].mxu1 }
 0x113   :  { %561 = vst.msk [vmem:[%s1027_s4 + $0x148] sm:$0xff] %vm525_vm1, %v507_v18 }
 0x115   :  { %v435_v15 = vpop.f32.mrb[24].mxu0 }
 0x116   :  { %552 = vst [vmem:[%s1027_s4 + $0x100] sm:$0xff] %v435_v15  ;;  %v437_v17 = vpop.f32.mrb[25].mxu0 }
 0x117   :  { %553 = vst [vmem:[%s1027_s4 + $0x108] sm:$0xff] %v437_v17  ;;  %v439_v19 = vpop.f32.mrb[26].mxu0 }
 0x118   :  { %559 = vst [vmem:[%s1027_s4 + $0x138] sm:$0xff] %v439_v19  ;;  %v441_v20 = vpop.f32.mrb[27].mxu0 }
 0x119   :  { %560 = vst [vmem:[%s1027_s4 + $0x140] sm:$0xff] %v441_v20 }
 0x11d   :  { %v445_v21 = vpop.f32.mrb[28].mxu0 }
 0x11e   :  { %566 = vst [vmem:[%s1027_s4 + $0x170] sm:$0xff] %v445_v21  ;;  %v447_v22 = vpop.f32.mrb[29].mxu0 }
 0x11f   :  { %567 = vst [vmem:[%s1027_s4 + $0x178] sm:$0xff] %v447_v22  ;;  %v449_v23 = vpop.f32.mrb[30].mxu0 }
 0x120   :  { %573 = vst [vmem:[%s1027_s4 + $0x1a8] sm:$0xff] %v449_v23  ;;  %v451_v24 = vpop.f32.mrb[31].mxu0 }
 0x121   :  { %574 = vst [vmem:[%s1027_s4 + $0x1b0] sm:$0xff] %v451_v24 }

// kernel: generator_forward.15
= control target key start
LH: loop header
LB: loop body
LE: loop exit
PB: predicated region body
PF: predicated region fallthrough
CT: control target
= control target key end

     0   :  { %v14_v0 = vlaneseq  ;;  %v152_v9 = vmov 0.0   ;;  %v153_v28 = vmov 1935823168   ;;  %v154_v36 = vmov 1966171168   ;;  %s212_s0 = inlined_call_operand.vmem [shape: bf16[32,256], index: 0, kind: input, shape index: {}]   ;;  %s213_s1 = inlined_call_operand.vmem [shape: f32[1,256], index: 1, kind: output, shape index: {0}]   ;;  %s214_s2 = inlined_call_operand.vmem [shape: f32[1,256], index: 2, kind: output, shape index: {1}]  }
   0x1   :  { %v20_v1 = vld [vmem:[%s212_s0] sm:$0xff]  ;;  %v21_v2 = vld [vmem:[%s212_s0 + $0x8] sm:$0xff]  ;;  %v22_v3 = vld [vmem:[%s212_s0 + $0x10] sm:$0xff]  ;;  %v140_v29 = vunpack.c.l.s4 %v153_v28  ;;  %v55_v37 = vunpack.c.l.s4 %v154_v36 }
   0x2   :  { %vm179_vm0 = vcmp.lt.s32.totalorder %v14_v0, 256  ;;  %v23_v5 = vld [vmem:[%s212_s0 + $0x18] sm:$0xff]  ;;  %v24_v6 = vunpack.c.l.bf16 %v20_v1  ;;  %v25_v7 = vunpack.c.h.bf16 %v20_v1  ;;  %v26_v8 = vunpack.c.l.bf16 %v21_v2 }
   0x3   :  { %18 = vst.msk [vmem:[%s213_s1] sm:$0x3] %vm179_vm0, %v152_v9  ;;  %v27_v10 = vunpack.c.h.bf16 %v21_v2  ;;  %v28_v11 = vunpack.c.l.bf16 %v22_v3  ;;  %v29_v12 = vunpack.c.h.bf16 %v22_v3  ;;  %v30_v13 = vunpack.c.l.bf16 %v23_v5  ;;  %19 = vst.msk [vmem:[%s214_s2] sm:$0x3] %vm179_vm0, %v152_v9 }
   0x4   :  { %v31_v14 = vunpack.c.h.bf16 %v23_v5  ;;  %v33_v15 = vadd.f32 %v26_v8, %v24_v6  ;;  %132 = vmul.bf16.f32.vacc0 %v20_v1, %v20_v1  ;;  %v141_v30 = vunpack.c.0.s8 %v140_v29 }
   0x5   :  { %v42_v16 = vadd.f32 %v27_v10, %v25_v7  ;;  %133 = vmac.bf16.f32.vacc0 %v21_v2, %v21_v2  ;;  %v143_v31 = vshrl.u32 %v14_v0, 7  ;;  %v56_v46 = vunpack.c.0.s8 %v55_v37 }
   0x6   :  { %v34_v17 = vadd.f32 %v33_v15, %v28_v11  ;;  %134 = vmac.bf16.f32.vacc0 %v22_v3, %v22_v3 }
   0x7   :  { %v43_v18 = vadd.f32 %v42_v16, %v29_v12  ;;  %135 = vmac.bf16.f32.vacc0 %v23_v5, %v23_v5  ;;  %v144_v32 = vsub.s32 %v141_v30, %v143_v31  ;;  %v59_v55 = vsub.s32 %v56_v46, %v143_v31 }
   0x8   :  { %v35_v19 = vadd.f32 %v34_v17, %v30_v13 }
   0x9   :  { %v44_v20 = vadd.f32 %v43_v18, %v31_v14  ;;  %v136_v24 = vmovacc.add.low.vacc0 }
   0xa   :  { %v36_v21 = vrot.slane %v35_v19, 4  ;;  %v137_v25 = vmovacc.add.high.vacc0  ;;  %v32_v62 = vld [vmem:[%s213_s1] sm:$0x3] }
   0xb   :  { %v45_v22 = vrot.slane %v44_v20, 4  ;;  %v75_v3 = vld [vmem:[%s214_s2] sm:$0x3] }
   0xc   :  { %v37_v23 = vadd.f32 %v36_v21, %v35_v19  ;;  %v138_v26 = vcombine.low %v136_v24, %v137_v25  ;;  %v139_v27 = vcombine.high %v136_v24, %v137_v25 }
   0xd   :  { %v46_v35 = vadd.f32 %v45_v22, %v44_v20 }
   0xe   :  { %v145_v33 = vrot.slane %v138_v26, %v144_v32  ;;  %v151_v34 = vrot.slane %v139_v27, %v144_v32  ;;  %v38_v38 = vrot.slane %v37_v23, 2 }
   0xf   :  { %v47_v41 = vrot.slane %v46_v35, 2 }
  0x10   :  { %v87_v39 = vrot.slane %v145_v33, 4  ;;  %v96_v40 = vrot.slane %v151_v34, 4  ;;  %v39_v42 = vadd.f32 %v38_v38, %v37_v23 }
  0x11   :  { %v48_v45 = vadd.f32 %v47_v41, %v46_v35 }
  0x12   :  { %v88_v43 = vadd.f32 %v145_v33, %v87_v39  ;;  %v97_v44 = vadd.f32 %v151_v34, %v96_v40  ;;  %v40_v47 = vrot.slane %v39_v42, 1 }
  0x13   :  { %v49_v50 = vrot.slane %v48_v45, 1 }
  0x14   :  { %v89_v48 = vrot.slane %v88_v43, 2  ;;  %v98_v49 = vrot.slane %v97_v44, 2  ;;  %v41_v51 = vadd.f32 %v40_v47, %v39_v42 }
  0x15   :  { %v50_v54 = vadd.f32 %v49_v50, %v48_v45 }
  0x16   :  { %v90_v52 = vadd.f32 %v89_v48, %v88_v43  ;;  %v99_v53 = vadd.f32 %v98_v49, %v97_v44 }
  0x17   :  { %v53_v58 = vcombine.low %v41_v51, %v50_v54 }
  0x18   :  { %v91_v56 = vrot.slane %v90_v52, 1  ;;  %v100_v57 = vrot.slane %v99_v53, 1 }
  0x19   :  { %v60_v61 = vrot.slane %v53_v58, %v59_v55 }
  0x1a   :  { %v92_v59 = vadd.f32 %v91_v56, %v90_v52  ;;  %v101_v60 = vadd.f32 %v100_v57, %v99_v53 }
  0x1b   :  { %v67_v0 = vrot.slane %v60_v61, %v59_v55 }
  0x1c   :  { %v104_v63 = vcombine.low %v92_v59, %v101_v60 }
  0x1d   :  { %v69_v2 = vadd.f32 %v67_v0, %v32_v62 }
  0x1e   :  { %v111_v1 = vrot.slane %v104_v63, %v59_v55 }
  0x1f   :  { %74 = vst.msk [vmem:[%s213_s1] sm:$0x3] %vm179_vm0, %v69_v2 }
  0x20   :  { %v118_v5 = vrot.slane %v111_v1, %v59_v55 }
  0x22   :  { %v120_v6 = vadd.f32 %v118_v5, %v75_v3 }
  0x24   :  { %121 = vst.msk [vmem:[%s214_s2] sm:$0x3] %vm179_vm0, %v120_v6 }

// kernel: generator_forward.16
= control target key start
LH: loop header
LB: loop body
LE: loop exit
PB: predicated region body
PF: predicated region fallthrough
CT: control target
= control target key end

     0   :  { %v958_v1 = vmov 0   ;;  %vm256_vm0 = vcmask 261120   ;;  %vm694_vm1 = vcmask 130048   ;;  %s1658_s3 = inlined_call_operand.vmem [shape: bf16[32,400], index: 3, kind: input, shape index: {}]   ;;  %s1659_s0 = inlined_call_operand.vmem [shape: bf16[256,32], index: 0, kind: input, shape index: {}]   ;;  %s1660_s1 = inlined_call_operand.vmem [shape: f32[1,32], index: 1, kind: input, shape index: {}]   ;;  %s1661_s2 = inlined_call_operand.vmem [shape: f32[1,32], index: 2, kind: input, shape index: {}]   ;;  %s1662_s4 = inlined_call_operand.vmem [shape: f32[256,400], index: 4, kind: output, shape index: {}]  }
   0x1   :  { %v946_v0 = vld [vmem:[%s1658_s3 + $0x4] ss:$16 sps:$4 sm:$0xff]   ;;  %337 = vmatprep.mubr.bf16.mxu0 %v958_v1  ;;  %530 = vmatprep.mubr.bf16.mxu1 %v958_v1  ;;  %v948_v2 = vld [vmem:[%s1658_s3 + $0xc] ss:$16 sps:$4 sm:$0xff]   ;;  %v950_v3 = vld [vmem:[%s1658_s3] ss:$16 sps:$4 sm:$0xff]  }
   0x2   :  { %305 = vmatprep.subr.bf16.mxu0 %v946_v0  ;;  %v951_v4 = vld [vmem:[%s1658_s3 + $0x8] ss:$16 sps:$4 sm:$0xff]   ;;  %498 = vmatprep.subr.bf16.mxu1 %v948_v2  ;;  %v952_v5 = vld [vmem:[%s1658_s3 + $0x24] ss:$16 sps:$4 sm:$0xff]   ;;  %v954_v6 = vld [vmem:[%s1658_s3 + $0x2c] ss:$16 sps:$4 sm:$0xff]  }
   0x3   :  { %306 = vmatpush1.bf16.msra.mxu0 %v950_v3  ;;  %499 = vmatpush1.bf16.msra.mxu1 %v951_v4  ;;  %v956_v7 = vld [vmem:[%s1658_s3 + $0x20] ss:$16 sps:$4 sm:$0xff]   ;;  %v957_v8 = vld [vmem:[%s1658_s3 + $0x28] ss:$16 sps:$4 sm:$0xff]  }
   0x4   :  { %307 = vmatprep.subr.bf16.mxu0 %v952_v5  ;;  %v867_v9 = vld [vmem:[%s1659_s0] sm:$0xff]   ;;  %500 = vmatprep.subr.bf16.mxu1 %v954_v6  ;;  %v930_v13 = vld [vmem:[%s1659_s0 + $0x8] sm:$0xff]   ;;  %v931_v14 = vld [vmem:[%s1659_s0 + $0x10] sm:$0xff]  }
   0x5   :  { %v1016_v10 = vld [vmem:[%s1660_s1] ss:$0 sm:$0xff]  ;;  %v868_v11 = vunpack.c.l.bf16 %v867_v9  ;;  %v869_v12 = vunpack.c.h.bf16 %v867_v9  ;;  %v872_v16 = vunpack.c.l.bf16 %v930_v13  ;;  %v873_v17 = vunpack.c.h.bf16 %v930_v13  ;;  %v932_v20 = vld [vmem:[%s1659_s0 + $0x18] sm:$0xff]   ;;  %v934_v46 = vld [vmem:[%s1659_s0 + $0x28] sm:$0xff]  }
   0x6   :  { %v1027_v15 = vld [vmem:[%s1661_s2] ss:$0 sm:$0xff]  ;;  %v876_v18 = vunpack.c.l.bf16 %v931_v14  ;;  %v877_v19 = vunpack.c.h.bf16 %v931_v14  ;;  %v880_v23 = vunpack.c.l.bf16 %v932_v20  ;;  %v881_v24 = vunpack.c.h.bf16 %v932_v20  ;;  %v938_v57 = vld [vmem:[%s1659_s0 + $0x48] sm:$0xff]   ;;  %v939_v60 = vld [vmem:[%s1659_s0 + $0x50] sm:$0xff]  }
   0x7   :  { %308 = vmatpush1.bf16.msra.mxu0 %v956_v7  ;;  %501 = vmatpush1.bf16.msra.mxu1 %v957_v8  ;;  %v89_v21 = vmul.f32 %v868_v11, %v1016_v10  ;;  %v90_v22 = vmul.f32 %v869_v12, %v1016_v10  ;;  %v91_v25 = vmul.f32 %v872_v16, %v1016_v10  ;;  %v933_v37 = vld [vmem:[%s1659_s0 + $0x20] sm:$0xff]   ;;  %v888_v55 = vunpack.c.l.bf16 %v934_v46  ;;  %v940_v5 = vld [vmem:[%s1659_s0 + $0x58] sm:$0xff]  }
   0x8   :  { %v92_v26 = vmul.f32 %v873_v17, %v1016_v10  ;;  %v93_v29 = vmul.f32 %v876_v18, %v1016_v10  ;;  %v94_v30 = vmul.f32 %v877_v19, %v1016_v10  ;;  %v95_v31 = vmul.f32 %v880_v23, %v1016_v10  ;;  %v937_v52 = vld [vmem:[%s1659_s0 + $0x40] sm:$0xff]  }
   0x9   :  { %v128_v27 = vadd.f32 %v1027_v15, %v89_v21  ;;  %v129_v28 = vadd.f32 %v1027_v15, %v90_v22  ;;  %v96_v32 = vmul.f32 %v881_v24, %v1016_v10  ;;  %v130_v35 = vadd.f32 %v1027_v15, %v91_v25  ;;  %v941_v20 = vld [vmem:[%s1659_s0 + $0x60] sm:$0xff]  }
   0xa   :  { %v131_v36 = vadd.f32 %v1027_v15, %v92_v26  ;;  %v132_v39 = vadd.f32 %v1027_v15, %v93_v29  ;;  %v133_v40 = vadd.f32 %v1027_v15, %v94_v30  ;;  %v134_v41 = vadd.f32 %v1027_v15, %v95_v31 }
   0xb   :  { %v160_v33 = vmax.f32 %v128_v27, 0.0  ;;  %v161_v34 = vmax.f32 %v129_v28, 0.0  ;;  %v135_v42 = vadd.f32 %v1027_v15, %v96_v32  ;;  %v162_v43 = vmax.f32 %v130_v35, 0.0 }
   0xc   :  { %v163_v44 = vmax.f32 %v131_v36, 0.0  ;;  %v884_v45 = vunpack.c.l.bf16 %v933_v37  ;;  %v885_v47 = vunpack.c.h.bf16 %v933_v37  ;;  %v164_v48 = vmax.f32 %v132_v39, 0.0 }
   0xd   :  { %v192_v38 = vpack.c.bf16 %v161_v34, %v160_v33  ;;  %v165_v49 = vmax.f32 %v133_v40, 0.0  ;;  %v166_v50 = vmax.f32 %v134_v41, 0.0  ;;  %v167_v51 = vmax.f32 %v135_v42, 0.0  ;;  %v942_v33 = vld [vmem:[%s1659_s0 + $0x68] sm:$0xff]   ;;  %v943_v42 = vld [vmem:[%s1659_s0 + $0x70] sm:$0xff]  }
   0xe   :  { %v193_v53 = vpack.c.bf16 %v163_v44, %v162_v43  ;;  %v97_v54 = vmul.f32 %v884_v45, %v1016_v10  ;;  %v889_v56 = vunpack.c.h.bf16 %v934_v46  ;;  %v98_v58 = vmul.f32 %v885_v47, %v1016_v10  ;;  %v944_v47 = vld [vmem:[%s1659_s0 + $0x78] sm:$0xff]  }
   0xf   :  { %834 = vmatmul.mubr.msk.bf16.vlgmr.msra.gmra.mrb[0].mxu0 %vm256_vm0, %v192_v38  ;;  %850 = vmatmul.mubr.msk.bf16.vlgmr.msra.gmra.mrb[0].mxu1 %vm256_vm0, %v192_v38  ;;  %v900_v59 = vunpack.c.l.bf16 %v937_v52  ;;  %v194_v61 = vpack.c.bf16 %v165_v49, %v164_v48  ;;  %v1069_v62 = vpack.c.bf16 %v167_v51, %v166_v50  ;;  %v901_v63 = vunpack.c.h.bf16 %v937_v52 }
  0x10   :  { %347 = vmatprep.mubr.bf16.mxu0 %v958_v1  ;;  %540 = vmatprep.mubr.bf16.mxu1 %v958_v1  ;;  %v1074_v0 = vadd.f32 %v1027_v15, %v97_v54  ;;  %v1077_v2 = vmul.f32 %v888_v55, %v1016_v10  ;;  %v904_v4 = vunpack.c.l.bf16 %v938_v57  ;;  %v1086_v6 = vmul.f32 %v889_v56, %v1016_v10 }
  0x11   :  { %v105_v3 = vmul.f32 %v900_v59, %v1016_v10  ;;  %v106_v7 = vmul.f32 %v901_v63, %v1016_v10  ;;  %v905_v8 = vunpack.c.h.bf16 %v938_v57  ;;  %v908_v9 = vunpack.c.l.bf16 %v939_v60 }
  0x12   :  { %v1090_v11 = vadd.f32 %v1027_v15, %v98_v58  ;;  %v107_v13 = vmul.f32 %v904_v4, %v1016_v10  ;;  %v909_v14 = vunpack.c.h.bf16 %v939_v60  ;;  %v912_v19 = vunpack.c.l.bf16 %v940_v5 }
  0x13   :  { %v144_v12 = vadd.f32 %v1027_v15, %v105_v3  ;;  %v145_v16 = vadd.f32 %v1027_v15, %v106_v7  ;;  %v108_v17 = vmul.f32 %v905_v8, %v1016_v10  ;;  %v109_v18 = vmul.f32 %v908_v9, %v1016_v10 }
  0x14   :  { %v146_v22 = vadd.f32 %v1027_v15, %v107_v13  ;;  %v110_v23 = vmul.f32 %v909_v14, %v1016_v10  ;;  %v913_v24 = vunpack.c.h.bf16 %v940_v5  ;;  %v111_v28 = vmul.f32 %v912_v19, %v1016_v10 }
  0x15   :  { %v176_v21 = vmax.f32 %v144_v12, 0.0  ;;  %v177_v25 = vmax.f32 %v145_v16, 0.0  ;;  %v147_v26 = vadd.f32 %v1027_v15, %v108_v17  ;;  %v148_v27 = vadd.f32 %v1027_v15, %v109_v18 }
  0x16   :  { %v178_v29 = vmax.f32 %v146_v22, 0.0  ;;  %v149_v30 = vadd.f32 %v1027_v15, %v110_v23  ;;  %v112_v31 = vmul.f32 %v913_v24, %v1016_v10  ;;  %v916_v32 = vunpack.c.l.bf16 %v941_v20 }
  0x17   :  { %835 = vmatmul.mubr.msk.bf16.gmra.mrb[4].mxu0 %vm256_vm0, %v193_v53  ;;  %851 = vmatmul.mubr.msk.bf16.gmra.mrb[4].mxu1 %vm256_vm0, %v193_v53  ;;  %v1110_v34 = vpack.c.bf16 %v177_v25, %v176_v21  ;;  %v179_v35 = vmax.f32 %v147_v26, 0.0  ;;  %v180_v36 = vmax.f32 %v148_v27, 0.0  ;;  %v150_v37 = vadd.f32 %v1027_v15, %v111_v28 }
  0x18   :  { %357 = vmatprep.mubr.bf16.mxu0 %v958_v1  ;;  %550 = vmatprep.mubr.bf16.mxu1 %v958_v1  ;;  %v181_v38 = vmax.f32 %v149_v30, 0.0  ;;  %v151_v39 = vadd.f32 %v1027_v15, %v112_v31  ;;  %v917_v40 = vunpack.c.h.bf16 %v941_v20  ;;  %v113_v41 = vmul.f32 %v916_v32, %v1016_v10 }
  0x19   :  { %v1122_v43 = vpack.c.bf16 %v179_v35, %v178_v29  ;;  %v182_v44 = vmax.f32 %v150_v37, 0.0  ;;  %v920_v45 = vunpack.c.l.bf16 %v942_v33  ;;  %v921_v46 = vunpack.c.h.bf16 %v942_v33 }
  0x1a   :  { %v1127_v48 = vpack.c.bf16 %v181_v38, %v180_v36  ;;  %v183_v49 = vmax.f32 %v151_v39, 0.0  ;;  %v114_v50 = vmul.f32 %v917_v40, %v1016_v10  ;;  %v152_v51 = vadd.f32 %v1027_v15, %v113_v41 }
  0x1b   :  { %v115_v52 = vmul.f32 %v920_v45, %v1016_v10  ;;  %v116_v53 = vmul.f32 %v921_v46, %v1016_v10  ;;  %v924_v54 = vunpack.c.l.bf16 %v943_v42  ;;  %v925_v55 = vunpack.c.h.bf16 %v943_v42 }
  0x1c   :  { %v1133_v56 = vpack.c.bf16 %v183_v49, %v182_v44  ;;  %v153_v57 = vadd.f32 %v1027_v15, %v114_v50  ;;  %v184_v58 = vmax.f32 %v152_v51, 0.0  ;;  %v928_v59 = vunpack.c.l.bf16 %v944_v47 }
  0x1d   :  { %v154_v60 = vadd.f32 %v1027_v15, %v115_v52  ;;  %v117_v63 = vmul.f32 %v924_v54, %v1016_v10  ;;  %v118_v3 = vmul.f32 %v925_v55, %v1016_v10  ;;  %v168_v4 = vmax.f32 %v1074_v0, 0.0  ;;  %v935_v0 = vld [vmem:[%s1659_s0 + $0x30] sm:$0xff]  }
  0x1e   :  { %v185_v5 = vmax.f32 %v153_v57, 0.0  ;;  %v929_v7 = vunpack.c.h.bf16 %v944_v47  ;;  %v119_v8 = vmul.f32 %v928_v59, %v1016_v10  ;;  %v169_v16 = vmax.f32 %v1090_v11, 0.0 }
  0x1f   :  { %836 = vmatmul.mubr.msk.bf16.gmra.mrb[8].mxu0 %vm256_vm0, %v194_v61  ;;  %852 = vmatmul.mubr.msk.bf16.gmra.mrb[8].mxu1 %vm256_vm0, %v194_v61  ;;  %v155_v61 = vadd.f32 %v1027_v15, %v116_v53  ;;  %v186_v9 = vmax.f32 %v154_v60, 0.0  ;;  %v156_v13 = vadd.f32 %v1027_v15, %v117_v63  ;;  %v157_v14 = vadd.f32 %v1027_v15, %v118_v3 }
  0x20   :  { %367 = vmatprep.mubr.bf16.mxu0 %v958_v1  ;;  %560 = vmatprep.mubr.bf16.mxu1 %v958_v1  ;;  %v1152_v17 = vpack.c.bf16 %v185_v5, %v184_v58  ;;  %v120_v18 = vmul.f32 %v929_v7, %v1016_v10  ;;  %v158_v19 = vadd.f32 %v1027_v15, %v119_v8  ;;  %v892_v23 = vunpack.c.l.bf16 %v935_v0 }
  0x21   :  { %v187_v12 = vmax.f32 %v155_v61, 0.0  ;;  %v188_v21 = vmax.f32 %v156_v13, 0.0  ;;  %v893_v24 = vunpack.c.h.bf16 %v935_v0  ;;  %v196_v26 = vpack.c.bf16 %v169_v16, %v168_v4 }
  0x22   :  { %v159_v11 = vadd.f32 %v1027_v15, %v120_v18  ;;  %v190_v22 = vmax.f32 %v158_v19, 0.0  ;;  %v138_v27 = vadd.f32 %v1027_v15, %v1077_v2  ;;  %v139_v28 = vadd.f32 %v1027_v15, %v1086_v6  ;;  %v936_v2 = vld [vmem:[%s1659_s0 + $0x38] sm:$0xff]  }
  0x23   :  { %v1158_v20 = vpack.c.bf16 %v187_v12, %v186_v9  ;;  %v101_v33 = vmul.f32 %v892_v23, %v1016_v10  ;;  %v102_v35 = vmul.f32 %v893_v24, %v1016_v10  ;;  %v896_v6 = vunpack.c.l.bf16 %v936_v2 }
  0x24   :  { %v191_v29 = vmax.f32 %v159_v11, 0.0  ;;  %v170_v31 = vmax.f32 %v138_v27, 0.0  ;;  %v171_v32 = vmax.f32 %v139_v28, 0.0  ;;  %v897_v39 = vunpack.c.h.bf16 %v936_v2 }
  0x25   :  { %v140_v37 = vadd.f32 %v1027_v15, %v101_v33  ;;  %v141_v38 = vadd.f32 %v1027_v15, %v102_v35  ;;  %v103_v42 = vmul.f32 %v896_v6, %v1016_v10 }
  0x26   :  { %v1167_v30 = vpack.c.bf16 %v191_v29, %v190_v22  ;;  %v197_v36 = vpack.c.bf16 %v171_v32, %v170_v31  ;;  %v104_v44 = vmul.f32 %v897_v39, %v1016_v10 }
  0x27   :  { %837 = vmatmul.mubr.msk.bf16.gmra.mrb[12].mxu0 %vm256_vm0, %v1069_v62  ;;  %853 = vmatmul.mubr.msk.bf16.gmra.mrb[12].mxu1 %vm256_vm0, %v1069_v62  ;;  %v189_v62 = vmax.f32 %v157_v14, 0.0  ;;  %v172_v40 = vmax.f32 %v140_v37, 0.0  ;;  %v173_v41 = vmax.f32 %v141_v38, 0.0  ;;  %v142_v46 = vadd.f32 %v1027_v15, %v103_v42 }
  0x28   :  { %377 = vmatprep.mubr.bf16.mxu0 %v958_v1  ;;  %570 = vmatprep.mubr.bf16.mxu1 %v958_v1  ;;  %v143_v47 = vadd.f32 %v1027_v15, %v104_v44 }
  0x29   :  { %v1161_v25 = vpack.c.bf16 %v189_v62, %v188_v21  ;;  %v198_v45 = vpack.c.bf16 %v173_v41, %v172_v40  ;;  %v174_v49 = vmax.f32 %v142_v46, 0.0 }
  0x2a   :  { %v175_v50 = vmax.f32 %v143_v47, 0.0 }
  0x2c   :  { %v199_v10 = vpack.c.bf16 %v175_v50, %v174_v49 }
  0x2f   :  { %838 = vmatmul.mubr.msk.bf16.gmra.mrb[16].mxu0 %vm256_vm0, %v196_v26  ;;  %854 = vmatmul.mubr.msk.bf16.gmra.mrb[16].mxu1 %vm256_vm0, %v196_v26 }
  0x30   :  { %387 = vmatprep.mubr.bf16.mxu0 %v958_v1  ;;  %580 = vmatprep.mubr.bf16.mxu1 %v958_v1 }
  0x37   :  { %839 = vmatmul.mubr.msk.bf16.gmra.mrb[20].mxu0 %vm256_vm0, %v197_v36  ;;  %855 = vmatmul.mubr.msk.bf16.gmra.mrb[20].mxu1 %vm256_vm0, %v197_v36 }
  0x38   :  { %397 = vmatprep.mubr.bf16.mxu0 %v958_v1  ;;  %590 = vmatprep.mubr.bf16.mxu1 %v958_v1 }
  0x3f   :  { %840 = vmatmul.mubr.msk.bf16.gmra.mrb[24].mxu0 %vm256_vm0, %v198_v45  ;;  %856 = vmatmul.mubr.msk.bf16.gmra.mrb[24].mxu1 %vm256_vm0, %v198_v45 }
  0x40   :  { %407 = vmatprep.mubr.bf16.mxu0 %v958_v1  ;;  %600 = vmatprep.mubr.bf16.mxu1 %v958_v1 }
  0x47   :  { %841 = vmatmul.mubr.msk.bf16.gmra.mrb[28].mxu0 %vm256_vm0, %v199_v10  ;;  %857 = vmatmul.mubr.msk.bf16.gmra.mrb[28].mxu1 %vm256_vm0, %v199_v10 }
  0x48   :  { %417 = vmatprep.mubr.bf16.mxu0 %v958_v1  ;;  %610 = vmatprep.mubr.bf16.mxu1 %v958_v1 }
  0x4f   :  { %842 = vmatmul.mubr.msk.bf16.gmra.mrb[32].mxu0 %vm256_vm0, %v1110_v34  ;;  %858 = vmatmul.mubr.msk.bf16.gmra.mrb[32].mxu1 %vm256_vm0, %v1110_v34 }
  0x50   :  { %427 = vmatprep.mubr.bf16.mxu0 %v958_v1  ;;  %620 = vmatprep.mubr.bf16.mxu1 %v958_v1 }
  0x57   :  { %843 = vmatmul.mubr.msk.bf16.gmra.mrb[36].mxu0 %vm256_vm0, %v1122_v43  ;;  %859 = vmatmul.mubr.msk.bf16.gmra.mrb[36].mxu1 %vm256_vm0, %v1122_v43 }
  0x58   :  { %437 = vmatprep.mubr.bf16.mxu0 %v958_v1  ;;  %630 = vmatprep.mubr.bf16.mxu1 %v958_v1 }
  0x5f   :  { %844 = vmatmul.mubr.msk.bf16.gmra.mrb[40].mxu0 %vm256_vm0, %v1127_v48  ;;  %860 = vmatmul.mubr.msk.bf16.gmra.mrb[40].mxu1 %vm256_vm0, %v1127_v48 }
  0x60   :  { %447 = vmatprep.mubr.bf16.mxu0 %v958_v1  ;;  %640 = vmatprep.mubr.bf16.mxu1 %v958_v1 }
  0x67   :  { %845 = vmatmul.mubr.msk.bf16.gmra.mrb[44].mxu0 %vm256_vm0, %v1133_v56  ;;  %861 = vmatmul.mubr.msk.bf16.gmra.mrb[44].mxu1 %vm256_vm0, %v1133_v56 }
  0x68   :  { %457 = vmatprep.mubr.bf16.mxu0 %v958_v1  ;;  %650 = vmatprep.mubr.bf16.mxu1 %v958_v1 }
  0x6f   :  { %846 = vmatmul.mubr.msk.bf16.gmra.mrb[48].mxu0 %vm256_vm0, %v1152_v17  ;;  %862 = vmatmul.mubr.msk.bf16.gmra.mrb[48].mxu1 %vm256_vm0, %v1152_v17 }
  0x70   :  { %467 = vmatprep.mubr.bf16.mxu0 %v958_v1  ;;  %660 = vmatprep.mubr.bf16.mxu1 %v958_v1 }
  0x77   :  { %847 = vmatmul.mubr.msk.bf16.gmra.mrb[52].mxu0 %vm256_vm0, %v1158_v20  ;;  %863 = vmatmul.mubr.msk.bf16.gmra.mrb[52].mxu1 %vm256_vm0, %v1158_v20 }
  0x78   :  { %477 = vmatprep.mubr.bf16.mxu0 %v958_v1  ;;  %670 = vmatprep.mubr.bf16.mxu1 %v958_v1 }
  0x7f   :  { %848 = vmatmul.mubr.msk.bf16.gmra.mrb[56].mxu0 %vm256_vm0, %v1161_v25  ;;  %864 = vmatmul.mubr.msk.bf16.gmra.mrb[56].mxu1 %vm256_vm0, %v1161_v25 }
  0x80   :  { %487 = vmatprep.mubr.bf16.mxu0 %v958_v1  ;;  %680 = vmatprep.mubr.bf16.mxu1 %v958_v1 }
  0x87   :  { %849 = vmatmul.mubr.msk.bf16.gmra.mrb[60].mxu0 %vm256_vm0, %v1167_v30  ;;  %865 = vmatmul.mubr.msk.bf16.gmra.mrb[60].mxu1 %vm256_vm0, %v1167_v30 }
  0xe2   :  { %v339_v15 = vpop.f32.mrb[0].mxu0  ;;  %v532_v34 = vpop.f32.mrb[0].mxu1 }
  0xe3   :  { %691 = vst [vmem:[%s1662_s4] sm:$0xff] %v339_v15  ;;  %693 = vst [vmem:[%s1662_s4 + $0x10] sm:$0xff] %v532_v34  ;;  %v341_v43 = vpop.f32.mrb[1].mxu0  ;;  %v534_v48 = vpop.f32.mrb[1].mxu1 }
  0xe4   :  { %692 = vst [vmem:[%s1662_s4 + $0x8] sm:$0xff] %v341_v43  ;;  %695 = vst.msk [vmem:[%s1662_s4 + $0x18] sm:$0xff] %vm694_vm1, %v534_v48  ;;  %v343_v1 = vpop.f32.mrb[2].mxu0  ;;  %v536_v51 = vpop.f32.mrb[2].mxu1 }
  0xe5   :  { %696 = vst [vmem:[%s1662_s4 + $0x20] sm:$0xff] %v343_v1  ;;  %698 = vst [vmem:[%s1662_s4 + $0x30] sm:$0xff] %v536_v51  ;;  %v345_v52 = vpop.f32.mrb[3].mxu0  ;;  %v538_v53 = vpop.f32.mrb[3].mxu1 }
  0xe6   :  { %697 = vst [vmem:[%s1662_s4 + $0x28] sm:$0xff] %v345_v52  ;;  %699 = vst.msk [vmem:[%s1662_s4 + $0x38] sm:$0xff] %vm694_vm1, %v538_v53 }
  0xea   :  { %v349_v54 = vpop.f32.mrb[4].mxu0  ;;  %v542_v55 = vpop.f32.mrb[4].mxu1 }
  0xeb   :  { %700 = vst [vmem:[%s1662_s4 + $0x40] sm:$0xff] %v349_v54  ;;  %702 = vst [vmem:[%s1662_s4 + $0x50] sm:$0xff] %v542_v55  ;;  %v351_v56 = vpop.f32.mrb[5].mxu0  ;;  %v544_v57 = vpop.f32.mrb[5].mxu1 }
  0xec   :  { %701 = vst [vmem:[%s1662_s4 + $0x48] sm:$0xff] %v351_v56  ;;  %703 = vst.msk [vmem:[%s1662_s4 + $0x58] sm:$0xff] %vm694_vm1, %v544_v57  ;;  %v353_v58 = vpop.f32.mrb[6].mxu0  ;;  %v546_v59 = vpop.f32.mrb[6].mxu1 }
  0xed   :  { %704 = vst [vmem:[%s1662_s4 + $0x60] sm:$0xff] %v353_v58  ;;  %706 = vst [vmem:[%s1662_s4 + $0x70] sm:$0xff] %v546_v59  ;;  %v355_v60 = vpop.f32.mrb[7].mxu0  ;;  %v548_v61 = vpop.f32.mrb[7].mxu1 }
  0xee   :  { %705 = vst [vmem:[%s1662_s4 + $0x68] sm:$0xff] %v355_v60  ;;  %707 = vst.msk [vmem:[%s1662_s4 + $0x78] sm:$0xff] %vm694_vm1, %v548_v61 }
  0xf2   :  { %v359_v63 = vpop.f32.mrb[8].mxu0  ;;  %v552_v3 = vpop.f32.mrb[8].mxu1 }
  0xf3   :  { %708 = vst [vmem:[%s1662_s4 + $0x80] sm:$0xff] %v359_v63  ;;  %710 = vst [vmem:[%s1662_s4 + $0x90] sm:$0xff] %v552_v3  ;;  %v361_v4 = vpop.f32.mrb[9].mxu0  ;;  %v554_v5 = vpop.f32.mrb[9].mxu1 }
  0xf4   :  { %709 = vst [vmem:[%s1662_s4 + $0x88] sm:$0xff] %v361_v4  ;;  %711 = vst.msk [vmem:[%s1662_s4 + $0x98] sm:$0xff] %vm694_vm1, %v554_v5  ;;  %v363_v7 = vpop.f32.mrb[10].mxu0  ;;  %v556_v8 = vpop.f32.mrb[10].mxu1 }
  0xf5   :  { %712 = vst [vmem:[%s1662_s4 + $0xa0] sm:$0xff] %v363_v7  ;;  %714 = vst [vmem:[%s1662_s4 + $0xb0] sm:$0xff] %v556_v8  ;;  %v365_v9 = vpop.f32.mrb[11].mxu0  ;;  %v558_v12 = vpop.f32.mrb[11].mxu1 }
  0xf6   :  { %713 = vst [vmem:[%s1662_s4 + $0xa8] sm:$0xff] %v365_v9  ;;  %715 = vst.msk [vmem:[%s1662_s4 + $0xb8] sm:$0xff] %vm694_vm1, %v558_v12 }
  0xfa   :  { %v369_v13 = vpop.f32.mrb[12].mxu0  ;;  %v562_v14 = vpop.f32.mrb[12].mxu1 }
  0xfb   :  { %716 = vst [vmem:[%s1662_s4 + $0xc0] sm:$0xff] %v369_v13  ;;  %718 = vst [vmem:[%s1662_s4 + $0xd0] sm:$0xff] %v562_v14  ;;  %v371_v16 = vpop.f32.mrb[13].mxu0  ;;  %v564_v0 = vpop.f32.mrb[13].mxu1 }
  0xfc   :  { %717 = vst [vmem:[%s1662_s4 + $0xc8] sm:$0xff] %v371_v16  ;;  %719 = vst.msk [vmem:[%s1662_s4 + $0xd8] sm:$0xff] %vm694_vm1, %v564_v0  ;;  %v373_v17 = vpop.f32.mrb[14].mxu0  ;;  %v566_v18 = vpop.f32.mrb[14].mxu1 }
  0xfd   :  { %720 = vst [vmem:[%s1662_s4 + $0xe0] sm:$0xff] %v373_v17  ;;  %722 = vst [vmem:[%s1662_s4 + $0xf0] sm:$0xff] %v566_v18  ;;  %v375_v19 = vpop.f32.mrb[15].mxu0  ;;  %v568_v20 = vpop.f32.mrb[15].mxu1 }
  0xfe   :  { %721 = vst [vmem:[%s1662_s4 + $0xe8] sm:$0xff] %v375_v19  ;;  %723 = vst.msk [vmem:[%s1662_s4 + $0xf8] sm:$0xff] %vm694_vm1, %v568_v20 }
 0x102   :  { %v379_v21 = vpop.f32.mrb[16].mxu0  ;;  %v572_v62 = vpop.f32.mrb[16].mxu1 }
 0x103   :  { %724 = vst [vmem:[%s1662_s4 + $0x100] sm:$0xff] %v379_v21  ;;  %726 = vst [vmem:[%s1662_s4 + $0x110] sm:$0xff] %v572_v62  ;;  %v381_v11 = vpop.f32.mrb[17].mxu0  ;;  %v574_v22 = vpop.f32.mrb[17].mxu1 }
 0x104   :  { %725 = vst [vmem:[%s1662_s4 + $0x108] sm:$0xff] %v381_v11  ;;  %727 = vst.msk [vmem:[%s1662_s4 + $0x118] sm:$0xff] %vm694_vm1, %v574_v22  ;;  %v383_v23 = vpop.f32.mrb[18].mxu0  ;;  %v576_v24 = vpop.f32.mrb[18].mxu1 }
 0x105   :  { %728 = vst [vmem:[%s1662_s4 + $0x120] sm:$0xff] %v383_v23  ;;  %730 = vst [vmem:[%s1662_s4 + $0x130] sm:$0xff] %v576_v24  ;;  %v385_v25 = vpop.f32.mrb[19].mxu0  ;;  %v578_v26 = vpop.f32.mrb[19].mxu1 }
 0x106   :  { %729 = vst [vmem:[%s1662_s4 + $0x128] sm:$0xff] %v385_v25  ;;  %731 = vst.msk [vmem:[%s1662_s4 + $0x138] sm:$0xff] %vm694_vm1, %v578_v26 }
 0x10a   :  { %v389_v27 = vpop.f32.mrb[20].mxu0  ;;  %v582_v28 = vpop.f32.mrb[20].mxu1 }
 0x10b   :  { %732 = vst [vmem:[%s1662_s4 + $0x140] sm:$0xff] %v389_v27  ;;  %734 = vst [vmem:[%s1662_s4 + $0x150] sm:$0xff] %v582_v28  ;;  %v391_v29 = vpop.f32.mrb[21].mxu0  ;;  %v584_v30 = vpop.f32.mrb[21].mxu1 }
 0x10c   :  { %733 = vst [vmem:[%s1662_s4 + $0x148] sm:$0xff] %v391_v29  ;;  %735 = vst.msk [vmem:[%s1662_s4 + $0x158] sm:$0xff] %vm694_vm1, %v584_v30  ;;  %v393_v31 = vpop.f32.mrb[22].mxu0  ;;  %v586_v32 = vpop.f32.mrb[22].mxu1 }
 0x10d   :  { %736 = vst [vmem:[%s1662_s4 + $0x160] sm:$0xff] %v393_v31  ;;  %738 = vst [vmem:[%s1662_s4 + $0x170] sm:$0xff] %v586_v32  ;;  %v395_v33 = vpop.f32.mrb[23].mxu0  ;;  %v588_v35 = vpop.f32.mrb[23].mxu1 }
 0x10e   :  { %737 = vst [vmem:[%s1662_s4 + $0x168] sm:$0xff] %v395_v33  ;;  %739 = vst.msk [vmem:[%s1662_s4 + $0x178] sm:$0xff] %vm694_vm1, %v588_v35 }
 0x112   :  { %v399_v2 = vpop.f32.mrb[24].mxu0  ;;  %v592_v6 = vpop.f32.mrb[24].mxu1 }
 0x113   :  { %740 = vst [vmem:[%s1662_s4 + $0x180] sm:$0xff] %v399_v2  ;;  %742 = vst [vmem:[%s1662_s4 + $0x190] sm:$0xff] %v592_v6  ;;  %v401_v36 = vpop.f32.mrb[25].mxu0  ;;  %v594_v37 = vpop.f32.mrb[25].mxu1 }
 0x114   :  { %741 = vst [vmem:[%s1662_s4 + $0x188] sm:$0xff] %v401_v36  ;;  %743 = vst.msk [vmem:[%s1662_s4 + $0x198] sm:$0xff] %vm694_vm1, %v594_v37  ;;  %v403_v38 = vpop.f32.mrb[26].mxu0  ;;  %v596_v39 = vpop.f32.mrb[26].mxu1 }
 0x115   :  { %744 = vst [vmem:[%s1662_s4 + $0x1a0] sm:$0xff] %v403_v38  ;;  %746 = vst [vmem:[%s1662_s4 + $0x1b0] sm:$0xff] %v596_v39  ;;  %v405_v40 = vpop.f32.mrb[27].mxu0  ;;  %v598_v41 = vpop.f32.mrb[27].mxu1 }
 0x116   :  { %745 = vst [vmem:[%s1662_s4 + $0x1a8] sm:$0xff] %v405_v40  ;;  %747 = vst.msk [vmem:[%s1662_s4 + $0x1b8] sm:$0xff] %vm694_vm1, %v598_v41 }
 0x11a   :  { %v409_v42 = vpop.f32.mrb[28].mxu0  ;;  %v602_v44 = vpop.f32.mrb[28].mxu1 }
 0x11b   :  { %748 = vst [vmem:[%s1662_s4 + $0x1c0] sm:$0xff] %v409_v42  ;;  %750 = vst [vmem:[%s1662_s4 + $0x1d0] sm:$0xff] %v602_v44  ;;  %v411_v45 = vpop.f32.mrb[29].mxu0  ;;  %v604_v46 = vpop.f32.mrb[29].mxu1 }
 0x11c   :  { %749 = vst [vmem:[%s1662_s4 + $0x1c8] sm:$0xff] %v411_v45  ;;  %751 = vst.msk [vmem:[%s1662_s4 + $0x1d8] sm:$0xff] %vm694_vm1, %v604_v46  ;;  %v413_v47 = vpop.f32.mrb[30].mxu0  ;;  %v606_v49 = vpop.f32.mrb[30].mxu1 }
 0x11d   :  { %752 = vst [vmem:[%s1662_s4 + $0x1e0] sm:$0xff] %v413_v47  ;;  %754 = vst [vmem:[%s1662_s4 + $0x1f0] sm:$0xff] %v606_v49  ;;  %v415_v50 = vpop.f32.mrb[31].mxu0  ;;  %v608_v10 = vpop.f32.mrb[31].mxu1 }
 0x11e   :  { %753 = vst [vmem:[%s1662_s4 + $0x1e8] sm:$0xff] %v415_v50  ;;  %755 = vst.msk [vmem:[%s1662_s4 + $0x1f8] sm:$0xff] %vm694_vm1, %v608_v10 }
 0x122   :  { %v419_v15 = vpop.f32.mrb[32].mxu0  ;;  %v612_v34 = vpop.f32.mrb[32].mxu1 }
 0x123   :  { %756 = vst [vmem:[%s1662_s4 + $0x200] sm:$0xff] %v419_v15  ;;  %758 = vst [vmem:[%s1662_s4 + $0x210] sm:$0xff] %v612_v34  ;;  %v421_v43 = vpop.f32.mrb[33].mxu0  ;;  %v614_v48 = vpop.f32.mrb[33].mxu1 }
 0x124   :  { %757 = vst [vmem:[%s1662_s4 + $0x208] sm:$0xff] %v421_v43  ;;  %759 = vst.msk [vmem:[%s1662_s4 + $0x218] sm:$0xff] %vm694_vm1, %v614_v48  ;;  %v423_v1 = vpop.f32.mrb[34].mxu0  ;;  %v616_v51 = vpop.f32.mrb[34].mxu1 }
 0x125   :  { %760 = vst [vmem:[%s1662_s4 + $0x220] sm:$0xff] %v423_v1  ;;  %762 = vst [vmem:[%s1662_s4 + $0x230] sm:$0xff] %v616_v51  ;;  %v425_v52 = vpop.f32.mrb[35].mxu0  ;;  %v618_v53 = vpop.f32.mrb[35].mxu1 }
 0x126   :  { %761 = vst [vmem:[%s1662_s4 + $0x228] sm:$0xff] %v425_v52  ;;  %763 = vst.msk [vmem:[%s1662_s4 + $0x238] sm:$0xff] %vm694_vm1, %v618_v53 }
 0x12a   :  { %v429_v54 = vpop.f32.mrb[36].mxu0  ;;  %v622_v55 = vpop.f32.mrb[36].mxu1 }
 0x12b   :  { %764 = vst [vmem:[%s1662_s4 + $0x240] sm:$0xff] %v429_v54  ;;  %766 = vst [vmem:[%s1662_s4 + $0x250] sm:$0xff] %v622_v55  ;;  %v431_v56 = vpop.f32.mrb[37].mxu0  ;;  %v624_v57 = vpop.f32.mrb[37].mxu1 }
 0x12c   :  { %765 = vst [vmem:[%s1662_s4 + $0x248] sm:$0xff] %v431_v56  ;;  %767 = vst.msk [vmem:[%s1662_s4 + $0x258] sm:$0xff] %vm694_vm1, %v624_v57  ;;  %v433_v58 = vpop.f32.mrb[38].mxu0  ;;  %v626_v59 = vpop.f32.mrb[38].mxu1 }
 0x12d   :  { %768 = vst [vmem:[%s1662_s4 + $0x260] sm:$0xff] %v433_v58  ;;  %770 = vst [vmem:[%s1662_s4 + $0x270] sm:$0xff] %v626_v59  ;;  %v435_v60 = vpop.f32.mrb[39].mxu0  ;;  %v628_v61 = vpop.f32.mrb[39].mxu1 }
 0x12e   :  { %769 = vst [vmem:[%s1662_s4 + $0x268] sm:$0xff] %v435_v60  ;;  %771 = vst.msk [vmem:[%s1662_s4 + $0x278] sm:$0xff] %vm694_vm1, %v628_v61 }
 0x132   :  { %v439_v63 = vpop.f32.mrb[40].mxu0  ;;  %v632_v3 = vpop.f32.mrb[40].mxu1 }
 0x133   :  { %772 = vst [vmem:[%s1662_s4 + $0x280] sm:$0xff] %v439_v63  ;;  %774 = vst [vmem:[%s1662_s4 + $0x290] sm:$0xff] %v632_v3  ;;  %v441_v4 = vpop.f32.mrb[41].mxu0  ;;  %v634_v5 = vpop.f32.mrb[41].mxu1 }
 0x134   :  { %773 = vst [vmem:[%s1662_s4 + $0x288] sm:$0xff] %v441_v4  ;;  %775 = vst.msk [vmem:[%s1662_s4 + $0x298] sm:$0xff] %vm694_vm1, %v634_v5  ;;  %v443_v7 = vpop.f32.mrb[42].mxu0  ;;  %v636_v8 = vpop.f32.mrb[42].mxu1 }
 0x135   :  { %776 = vst [vmem:[%s1662_s4 + $0x2a0] sm:$0xff] %v443_v7  ;;  %778 = vst [vmem:[%s1662_s4 + $0x2b0] sm:$0xff] %v636_v8  ;;  %v445_v9 = vpop.f32.mrb[43].mxu0  ;;  %v638_v12 = vpop.f32.mrb[43].mxu1 }
 0x136   :  { %777 = vst [vmem:[%s1662_s4 + $0x2a8] sm:$0xff] %v445_v9  ;;  %779 = vst.msk [vmem:[%s1662_s4 + $0x2b8] sm:$0xff] %vm694_vm1, %v638_v12 }
 0x13a   :  { %v449_v13 = vpop.f32.mrb[44].mxu0  ;;  %v642_v14 = vpop.f32.mrb[44].mxu1 }
 0x13b   :  { %780 = vst [vmem:[%s1662_s4 + $0x2c0] sm:$0xff] %v449_v13  ;;  %782 = vst [vmem:[%s1662_s4 + $0x2d0] sm:$0xff] %v642_v14  ;;  %v451_v16 = vpop.f32.mrb[45].mxu0  ;;  %v644_v0 = vpop.f32.mrb[45].mxu1 }
 0x13c   :  { %781 = vst [vmem:[%s1662_s4 + $0x2c8] sm:$0xff] %v451_v16  ;;  %783 = vst.msk [vmem:[%s1662_s4 + $0x2d8] sm:$0xff] %vm694_vm1, %v644_v0  ;;  %v453_v17 = vpop.f32.mrb[46].mxu0  ;;  %v646_v18 = vpop.f32.mrb[46].mxu1 }
 0x13d   :  { %784 = vst [vmem:[%s1662_s4 + $0x2e0] sm:$0xff] %v453_v17  ;;  %786 = vst [vmem:[%s1662_s4 + $0x2f0] sm:$0xff] %v646_v18  ;;  %v455_v19 = vpop.f32.mrb[47].mxu0  ;;  %v648_v20 = vpop.f32.mrb[47].mxu1 }
 0x13e   :  { %785 = vst [vmem:[%s1662_s4 + $0x2e8] sm:$0xff] %v455_v19  ;;  %787 = vst.msk [vmem:[%s1662_s4 + $0x2f8] sm:$0xff] %vm694_vm1, %v648_v20 }
 0x142   :  { %v459_v21 = vpop.f32.mrb[48].mxu0  ;;  %v652_v62 = vpop.f32.mrb[48].mxu1 }
 0x143   :  { %788 = vst [vmem:[%s1662_s4 + $0x300] sm:$0xff] %v459_v21  ;;  %790 = vst [vmem:[%s1662_s4 + $0x310] sm:$0xff] %v652_v62  ;;  %v461_v11 = vpop.f32.mrb[49].mxu0  ;;  %v654_v22 = vpop.f32.mrb[49].mxu1 }
 0x144   :  { %789 = vst [vmem:[%s1662_s4 + $0x308] sm:$0xff] %v461_v11  ;;  %791 = vst.msk [vmem:[%s1662_s4 + $0x318] sm:$0xff] %vm694_vm1, %v654_v22  ;;  %v463_v23 = vpop.f32.mrb[50].mxu0  ;;  %v656_v24 = vpop.f32.mrb[50].mxu1 }
 0x145   :  { %792 = vst [vmem:[%s1662_s4 + $0x320] sm:$0xff] %v463_v23  ;;  %794 = vst [vmem:[%s1662_s4 + $0x330] sm:$0xff] %v656_v24  ;;  %v465_v25 = vpop.f32.mrb[51].mxu0  ;;  %v658_v26 = vpop.f32.mrb[51].mxu1 }
 0x146   :  { %793 = vst [vmem:[%s1662_s4 + $0x328] sm:$0xff] %v465_v25  ;;  %795 = vst.msk [vmem:[%s1662_s4 + $0x338] sm:$0xff] %vm694_vm1, %v658_v26 }
 0x14a   :  { %v469_v27 = vpop.f32.mrb[52].mxu0  ;;  %v662_v28 = vpop.f32.mrb[52].mxu1 }
 0x14b   :  { %796 = vst [vmem:[%s1662_s4 + $0x340] sm:$0xff] %v469_v27  ;;  %798 = vst [vmem:[%s1662_s4 + $0x350] sm:$0xff] %v662_v28  ;;  %v471_v29 = vpop.f32.mrb[53].mxu0  ;;  %v664_v30 = vpop.f32.mrb[53].mxu1 }
 0x14c   :  { %797 = vst [vmem:[%s1662_s4 + $0x348] sm:$0xff] %v471_v29  ;;  %799 = vst.msk [vmem:[%s1662_s4 + $0x358] sm:$0xff] %vm694_vm1, %v664_v30  ;;  %v473_v31 = vpop.f32.mrb[54].mxu0  ;;  %v666_v32 = vpop.f32.mrb[54].mxu1 }
 0x14d   :  { %800 = vst [vmem:[%s1662_s4 + $0x360] sm:$0xff] %v473_v31  ;;  %802 = vst [vmem:[%s1662_s4 + $0x370] sm:$0xff] %v666_v32  ;;  %v475_v33 = vpop.f32.mrb[55].mxu0  ;;  %v668_v35 = vpop.f32.mrb[55].mxu1 }
 0x14e   :  { %801 = vst [vmem:[%s1662_s4 + $0x368] sm:$0xff] %v475_v33  ;;  %803 = vst.msk [vmem:[%s1662_s4 + $0x378] sm:$0xff] %vm694_vm1, %v668_v35 }
 0x152   :  { %v479_v2 = vpop.f32.mrb[56].mxu0  ;;  %v672_v6 = vpop.f32.mrb[56].mxu1 }
 0x153   :  { %804 = vst [vmem:[%s1662_s4 + $0x380] sm:$0xff] %v479_v2  ;;  %806 = vst [vmem:[%s1662_s4 + $0x390] sm:$0xff] %v672_v6  ;;  %v481_v36 = vpop.f32.mrb[57].mxu0  ;;  %v674_v37 = vpop.f32.mrb[57].mxu1 }
 0x154   :  { %805 = vst [vmem:[%s1662_s4 + $0x388] sm:$0xff] %v481_v36  ;;  %807 = vst.msk [vmem:[%s1662_s4 + $0x398] sm:$0xff] %vm694_vm1, %v674_v37  ;;  %v483_v38 = vpop.f32.mrb[58].mxu0  ;;  %v676_v39 = vpop.f32.mrb[58].mxu1 }
 0x155   :  { %808 = vst [vmem:[%s1662_s4 + $0x3a0] sm:$0xff] %v483_v38  ;;  %810 = vst [vmem:[%s1662_s4 + $0x3b0] sm:$0xff] %v676_v39  ;;  %v485_v40 = vpop.f32.mrb[59].mxu0  ;;  %v678_v41 = vpop.f32.mrb[59].mxu1 }
 0x156   :  { %809 = vst [vmem:[%s1662_s4 + $0x3a8] sm:$0xff] %v485_v40  ;;  %811 = vst.msk [vmem:[%s1662_s4 + $0x3b8] sm:$0xff] %vm694_vm1, %v678_v41 }
 0x15a   :  { %v489_v42 = vpop.f32.mrb[60].mxu0  ;;  %v682_v44 = vpop.f32.mrb[60].mxu1 }
 0x15b   :  { %812 = vst [vmem:[%s1662_s4 + $0x3c0] sm:$0xff] %v489_v42  ;;  %814 = vst [vmem:[%s1662_s4 + $0x3d0] sm:$0xff] %v682_v44  ;;  %v491_v45 = vpop.f32.mrb[61].mxu0  ;;  %v684_v46 = vpop.f32.mrb[61].mxu1 }
 0x15c   :  { %813 = vst [vmem:[%s1662_s4 + $0x3c8] sm:$0xff] %v491_v45  ;;  %815 = vst.msk [vmem:[%s1662_s4 + $0x3d8] sm:$0xff] %vm694_vm1, %v684_v46  ;;  %v493_v47 = vpop.f32.mrb[62].mxu0  ;;  %v686_v49 = vpop.f32.mrb[62].mxu1 }
 0x15d   :  { %816 = vst [vmem:[%s1662_s4 + $0x3e0] sm:$0xff] %v493_v47  ;;  %818 = vst [vmem:[%s1662_s4 + $0x3f0] sm:$0xff] %v686_v49  ;;  %v495_v50 = vpop.f32.mrb[63].mxu0  ;;  %v688_v10 = vpop.f32.mrb[63].mxu1 }
 0x15e   :  { %817 = vst [vmem:[%s1662_s4 + $0x3e8] sm:$0xff] %v495_v50  ;;  %819 = vst.msk [vmem:[%s1662_s4 + $0x3f8] sm:$0xff] %vm694_vm1, %v688_v10 }

// kernel: generator_forward.17
= control target key start
LH: loop header
LB: loop body
LE: loop exit
PB: predicated region body
PF: predicated region fallthrough
CT: control target
= control target key end

     0   :  { %v14_v0 = vlaneseq  ;;  %v192_v4 = vmov 0.0   ;;  %v193_v45 = vmov 1966171168   ;;  %v194_v53 = vmov 1935823168   ;;  %s266_s0 = inlined_call_operand.vmem [shape: bf16[64,256], index: 0, kind: input, shape index: {}]   ;;  %s267_s1 = inlined_call_operand.vmem [shape: f32[1,256], index: 1, kind: output, shape index: {0}]   ;;  %s268_s2 = inlined_call_operand.vmem [shape: f32[1,256], index: 2, kind: output, shape index: {1}]  }
   0x1   :  { %v20_v1 = vld [vmem:[%s266_s0] sm:$0xff]  ;;  %v21_v2 = vld [vmem:[%s266_s0 + $0x8] sm:$0xff]  ;;  %v22_v5 = vld [vmem:[%s266_s0 + $0x10] sm:$0xff]  ;;  %v75_v46 = vunpack.c.l.s4 %v193_v45  ;;  %v180_v54 = vunpack.c.l.s4 %v194_v53 }
   0x2   :  { %vm217_vm0 = vcmp.lt.s32.totalorder %v14_v0, 256  ;;  %v28_v6 = vunpack.c.l.bf16 %v20_v1  ;;  %v29_v7 = vunpack.c.h.bf16 %v20_v1  ;;  %v30_v8 = vunpack.c.l.bf16 %v21_v2  ;;  %v23_v10 = vld [vmem:[%s266_s0 + $0x18] sm:$0xff]  ;;  %v24_v15 = vld [vmem:[%s266_s0 + $0x20] sm:$0xff]  ;;  %v25_v20 = vld [vmem:[%s266_s0 + $0x28] sm:$0xff] }
   0x3   :  { %18 = vst.msk [vmem:[%s267_s1] sm:$0x3] %vm217_vm0, %v192_v4  ;;  %19 = vst.msk [vmem:[%s268_s2] sm:$0x3] %vm217_vm0, %v192_v4  ;;  %v31_v9 = vunpack.c.h.bf16 %v21_v2  ;;  %v32_v11 = vunpack.c.l.bf16 %v22_v5  ;;  %v33_v12 = vunpack.c.h.bf16 %v22_v5  ;;  %v34_v16 = vunpack.c.l.bf16 %v23_v10  ;;  %v26_v25 = vld [vmem:[%s266_s0 + $0x30] sm:$0xff]  ;;  %v27_v30 = vld [vmem:[%s266_s0 + $0x38] sm:$0xff] }
   0x4   :  { %v45_v13 = vadd.f32 %v30_v8, %v28_v6  ;;  %v35_v17 = vunpack.c.h.bf16 %v23_v10  ;;  %v36_v21 = vunpack.c.l.bf16 %v24_v15  ;;  %v37_v22 = vunpack.c.h.bf16 %v24_v15 }
   0x5   :  { %v58_v14 = vadd.f32 %v31_v9, %v29_v7  ;;  %v38_v26 = vunpack.c.l.bf16 %v25_v20  ;;  %v39_v27 = vunpack.c.h.bf16 %v25_v20  ;;  %168 = vmul.bf16.f32.vacc0 %v20_v1, %v20_v1 }
   0x6   :  { %v46_v18 = vadd.f32 %v45_v13, %v32_v11  ;;  %169 = vmac.bf16.f32.vacc0 %v21_v2, %v21_v2  ;;  %v40_v31 = vunpack.c.l.bf16 %v26_v25  ;;  %v41_v32 = vunpack.c.h.bf16 %v26_v25 }
   0x7   :  { %v59_v19 = vadd.f32 %v58_v14, %v33_v12  ;;  %170 = vmac.bf16.f32.vacc0 %v22_v5, %v22_v5  ;;  %v42_v35 = vunpack.c.l.bf16 %v27_v30  ;;  %v43_v36 = vunpack.c.h.bf16 %v27_v30 }
   0x8   :  { %v47_v23 = vadd.f32 %v46_v18, %v34_v16  ;;  %171 = vmac.bf16.f32.vacc0 %v23_v10, %v23_v10  ;;  %v181_v55 = vunpack.c.0.s8 %v180_v54  ;;  %v183_v56 = vshrl.u32 %v14_v0, 7 }
   0x9   :  { %v60_v24 = vadd.f32 %v59_v19, %v35_v17  ;;  %172 = vmac.bf16.f32.vacc0 %v24_v15, %v24_v15  ;;  %v76_v62 = vunpack.c.0.s8 %v75_v46 }
   0xa   :  { %v48_v28 = vadd.f32 %v47_v23, %v36_v21  ;;  %173 = vmac.bf16.f32.vacc0 %v25_v20, %v25_v20  ;;  %v184_v57 = vsub.s32 %v181_v55, %v183_v56  ;;  %v44_v15 = vld [vmem:[%s267_s1] sm:$0x3] }
   0xb   :  { %v61_v29 = vadd.f32 %v60_v24, %v37_v22  ;;  %174 = vmac.bf16.f32.vacc0 %v26_v25, %v26_v25  ;;  %v79_v9 = vsub.s32 %v76_v62, %v183_v56  ;;  %v95_v24 = vld [vmem:[%s268_s2] sm:$0x3] }
   0xc   :  { %v49_v33 = vadd.f32 %v48_v28, %v38_v26  ;;  %175 = vmac.bf16.f32.vacc0 %v27_v30, %v27_v30 }
   0xd   :  { %v62_v34 = vadd.f32 %v61_v29, %v39_v27 }
   0xe   :  { %v50_v37 = vadd.f32 %v49_v33, %v40_v31  ;;  %v176_v49 = vmovacc.add.low.vacc0 }
   0xf   :  { %v63_v38 = vadd.f32 %v62_v34, %v41_v32  ;;  %v177_v50 = vmovacc.add.high.vacc0 }
  0x10   :  { %v51_v39 = vadd.f32 %v50_v37, %v42_v35 }
  0x11   :  { %v64_v40 = vadd.f32 %v63_v38, %v43_v36  ;;  %v178_v51 = vcombine.low %v176_v49, %v177_v50  ;;  %v179_v52 = vcombine.high %v176_v49, %v177_v50 }
  0x12   :  { %v52_v41 = vrot.slane %v51_v39, 4 }
  0x13   :  { %v65_v42 = vrot.slane %v64_v40, 4  ;;  %v185_v58 = vrot.slane %v178_v51, %v184_v57  ;;  %v191_v59 = vrot.slane %v179_v52, %v184_v57 }
  0x14   :  { %v53_v43 = vadd.f32 %v52_v41, %v51_v39 }
  0x15   :  { %v66_v44 = vadd.f32 %v65_v42, %v64_v40  ;;  %v119_v63 = vrot.slane %v185_v58, 4  ;;  %v132_v1 = vrot.slane %v191_v59, 4 }
  0x16   :  { %v54_v47 = vrot.slane %v53_v43, 2 }
  0x17   :  { %v67_v48 = vrot.slane %v66_v44, 2  ;;  %v120_v5 = vadd.f32 %v185_v58, %v119_v63  ;;  %v133_v6 = vadd.f32 %v191_v59, %v132_v1 }
  0x18   :  { %v55_v60 = vadd.f32 %v54_v47, %v53_v43 }
  0x19   :  { %v68_v61 = vadd.f32 %v67_v48, %v66_v44  ;;  %v121_v10 = vrot.slane %v120_v5, 2  ;;  %v134_v11 = vrot.slane %v133_v6, 2 }
  0x1a   :  { %v56_v2 = vrot.slane %v55_v60, 1 }
  0x1b   :  { %v69_v4 = vrot.slane %v68_v61, 1  ;;  %v122_v13 = vadd.f32 %v121_v10, %v120_v5  ;;  %v135_v0 = vadd.f32 %v134_v11, %v133_v6 }
  0x1c   :  { %v57_v7 = vadd.f32 %v56_v2, %v55_v60 }
  0x1d   :  { %v70_v8 = vadd.f32 %v69_v4, %v68_v61  ;;  %v123_v16 = vrot.slane %v122_v13, 1  ;;  %v136_v17 = vrot.slane %v135_v0, 1 }
  0x1f   :  { %v73_v12 = vcombine.low %v57_v7, %v70_v8  ;;  %v124_v19 = vadd.f32 %v123_v16, %v122_v13  ;;  %v137_v20 = vadd.f32 %v136_v17, %v135_v0 }
  0x21   :  { %v80_v14 = vrot.slane %v73_v12, %v79_v9  ;;  %v140_v22 = vcombine.low %v124_v19, %v137_v20 }
  0x23   :  { %v87_v18 = vrot.slane %v80_v14, %v79_v9  ;;  %v147_v23 = vrot.slane %v140_v22, %v79_v9 }
  0x25   :  { %v89_v21 = vadd.f32 %v87_v18, %v44_v15  ;;  %v154_v25 = vrot.slane %v147_v23, %v79_v9 }
  0x27   :  { %94 = vst.msk [vmem:[%s267_s1] sm:$0x3] %vm217_vm0, %v89_v21  ;;  %v156_v26 = vadd.f32 %v154_v25, %v95_v24 }
  0x29   :  { %157 = vst.msk [vmem:[%s268_s2] sm:$0x3] %vm217_vm0, %v156_v26 }

// kernel: generator_forward.18
= control target key start
LH: loop header
LB: loop body
LE: loop exit
PB: predicated region body
PF: predicated region fallthrough
CT: control target
= control target key end

     0   :  { %s1594_s15 = smov 0   ;;  %s1596_s16 = smov 0   ;;  %s2067_s0 = inlined_call_operand.vmem [shape: bf16[1024,16], index: 0, kind: input, shape index: {}]   ;;  %s2068_s1 = inlined_call_operand.vmem [shape: f32[1,16], index: 1, kind: input, shape index: {}]   ;;  %s2069_s2 = inlined_call_operand.vmem [shape: f32[1,16], index: 2, kind: input, shape index: {}]   ;;  %s2070_s3 = inlined_call_operand.vmem [shape: bf16[16,200], index: 3, kind: input, shape index: {}]   ;;  %s2071_s4 = inlined_call_operand.vmem [shape: f32[1024,200], index: 4, kind: output, shape index: {}]  }
   0x1   :  { %s1598_s17 = smov 0  }
   0x2 LB: > { %s23_s18 = sadd.s32 1, %s1562_s16  ;;  %p1310_p0 = scmp.ge.s32.totalorder %s1566_s17, 1  ;;  %s1566_s17 = sphi %s1598_s17, %s14_s17   ;;  %s1562_s16 = sphi %s1596_s16, %s2073_s16   ;;  %s1558_s15 = sphi %s1594_s15, %s2072_s15  }
   0x3   : > { %p24_p1 = scmp.ge.s32.totalorder %s23_s18, 2  ;;  %p188_p2 = scmp.lt.s32.totalorder %s1566_s17, 3 }
   0x5   : > { %s2075_s18 = smov (%p24_p1, %s23_s18), 0  ;;  %p189_p3 = pnand %p1310_p0, %p188_p2 }
   0x6   : > { %v1541_v0 = vld [vmem:[%s2070_s3 + $0x4] ss:$8 sps:$4 sm:$0xff] (!%p189_p3)   ;;  %s1311_s21 = sshll.u32 (!%p189_p3), %s1558_s15, 6  ;;  %v1543_v1 = vld [vmem:[%s2070_s3] ss:$8 sps:$4 sm:$0xff] (!%p189_p3)   ;;  %v1568_v2 = vmov (!%p189_p3), 0  }
   0x7   : > { %192 = sbr.rel (%p189_p3) target bundleno = 365 (0x16d), region = 36  ;;  %756 = vmatprep.mubr.bf16.mxu0 (!%p189_p3), %v1568_v2  ;;  %916 = vmatprep.mubr.bf16.mxu1 (!%p189_p3), %v1568_v2  ;;  %p225_p4 = scmp.lt.s32.totalorder (!%p189_p3), %s1311_s21, 127  ;;  %v1631_v3 = vld [vmem:[%s2068_s1] ss:$0 sm:$0xff] (!%p189_p3)  ;;  %vm627_vm0 = vcmask (!%p189_p3), 130048   ;;  %vm1078_vm1 = vcmask (!%p189_p3), 588800  }
   0x8   : > { %724 = vmatprep.subr.bf16.mxu0 (!%p189_p3), %v1541_v0  ;;  %1514 = vmatprep.subr.bf16.mxu1 (!%p189_p3), %v1541_v0  ;;  %v1640_v12 = vld [vmem:[%s2069_s2] ss:$0 sm:$0xff] (!%p189_p3) }
   0x9   : > { %725 = vmatpush1.bf16.msra.mxu0 (!%p189_p3), %v1543_v1  ;;  %1515 = vmatpush1.bf16.msra.mxu1 (!%p189_p3), %v1543_v1 }
   0xe   : > { %s2077_s21 = smov (!%p225_p4, %s1311_s21), 127 }
   0xf   : > { %s1312_s24 = sshll.u32 %s2077_s21, 2  ;;  %s1354_s6 = sshll.u32 %s2077_s21, 4 }
  0x10   : > { %s1626_s27 = scalar_lea.vmem %s2067_s0, %s1312_s24  ;;  %s1864_s9 = scalar_lea.vmem %s2071_s4, %s1354_s6 }
  0x11   : > { %v1356_v4 = vld [vmem:[%s1626_s27] sm:$0xff]   ;;  %v1483_v6 = vld [vmem:[%s1626_s27 + $0x8] sm:$0xff]   ;;  %v1484_v33 = vld [vmem:[%s1626_s27 + $0x10] sm:$0xff]  }
  0x12   : > { %v1498_v5 = vld [vmem:[%s1626_s27 + $0x80] sm:$0xff]   ;;  %v1357_v7 = vunpack.c.l.bf16 %v1356_v4  ;;  %v1358_v8 = vunpack.c.h.bf16 %v1356_v4  ;;  %v1499_v11 = vld [vmem:[%s1626_s27 + $0x88] sm:$0xff]   ;;  %v1361_v13 = vunpack.c.l.bf16 %v1483_v6  ;;  %v1362_v14 = vunpack.c.h.bf16 %v1483_v6  ;;  %v1500_v38 = vld [vmem:[%s1626_s27 + $0x90] sm:$0xff]  }
  0x13   : > { %v1421_v9 = vunpack.c.l.bf16 %v1498_v5  ;;  %v1422_v10 = vunpack.c.h.bf16 %v1498_v5  ;;  %v1425_v15 = vunpack.c.l.bf16 %v1499_v11  ;;  %v1426_v16 = vunpack.c.h.bf16 %v1499_v11  ;;  %v1485_v49 = vld [vmem:[%s1626_s27 + $0x18] sm:$0xff]   ;;  %v1486_v11 = vld [vmem:[%s1626_s27 + $0x20] sm:$0xff]  }
  0x14   : > { %v384_v17 = vmul.f32 %v1357_v7, %v1631_v3  ;;  %v385_v18 = vmul.f32 %v1358_v8, %v1631_v3  ;;  %v386_v21 = vmul.f32 %v1361_v13, %v1631_v3  ;;  %v387_v22 = vmul.f32 %v1362_v14, %v1631_v3  ;;  %v1501_v52 = vld [vmem:[%s1626_s27 + $0x98] sm:$0xff]   ;;  %v1502_v13 = vld [vmem:[%s1626_s27 + $0xa0] sm:$0xff]  }
  0x15   : > { %v416_v19 = vmul.f32 %v1421_v9, %v1631_v3  ;;  %v417_v20 = vmul.f32 %v1422_v10, %v1631_v3  ;;  %v418_v23 = vmul.f32 %v1425_v15, %v1631_v3  ;;  %v419_v24 = vmul.f32 %v1426_v16, %v1631_v3 }
  0x16   : > { %v455_v25 = vadd.f32 %v1640_v12, %v384_v17  ;;  %v456_v26 = vadd.f32 %v1640_v12, %v385_v18  ;;  %v457_v29 = vadd.f32 %v1640_v12, %v386_v21  ;;  %v458_v30 = vadd.f32 %v1640_v12, %v387_v22 }
  0x17   : > { %v487_v27 = vadd.f32 %v1640_v12, %v416_v19  ;;  %v488_v28 = vadd.f32 %v1640_v12, %v417_v20  ;;  %v489_v31 = vadd.f32 %v1640_v12, %v418_v23  ;;  %v490_v32 = vadd.f32 %v1640_v12, %v419_v24 }
  0x18   : > { %v519_v34 = vmax.f32 %v455_v25, 0.0  ;;  %v520_v35 = vmax.f32 %v456_v26, 0.0  ;;  %v521_v39 = vmax.f32 %v457_v29, 0.0  ;;  %v522_v40 = vmax.f32 %v458_v30, 0.0 }
  0x19   : > { %v551_v36 = vmax.f32 %v487_v27, 0.0  ;;  %v552_v37 = vmax.f32 %v488_v28, 0.0  ;;  %v1365_v43 = vunpack.c.l.bf16 %v1484_v33  ;;  %v1366_v44 = vunpack.c.h.bf16 %v1484_v33  ;;  %v1487_v28 = vld [vmem:[%s1626_s27 + $0x28] sm:$0xff]  }
  0x1a   : > { %v583_v41 = vpack.c.bf16 %v520_v35, %v519_v34  ;;  %v553_v45 = vmax.f32 %v489_v31, 0.0  ;;  %v554_v46 = vmax.f32 %v490_v32, 0.0  ;;  %v1429_v47 = vunpack.c.l.bf16 %v1500_v38  ;;  %v1503_v33 = vld [vmem:[%s1626_s27 + $0xa8] sm:$0xff]  }
  0x1b   : > { %v599_v42 = vpack.c.bf16 %v552_v37, %v551_v36  ;;  %v1430_v48 = vunpack.c.h.bf16 %v1500_v38  ;;  %v388_v50 = vmul.f32 %v1365_v43, %v1631_v3  ;;  %v389_v51 = vmul.f32 %v1366_v44, %v1631_v3 }
  0x1c   : > { %1320 = vmatmul.mubr.msk.bf16.vlgmr.msra.gmra.mrb[0].mxu0 %vm627_vm0, %v583_v41  ;;  %v420_v53 = vmul.f32 %v1429_v47, %v1631_v3  ;;  %v1369_v55 = vunpack.c.l.bf16 %v1485_v49  ;;  %v1370_v56 = vunpack.c.h.bf16 %v1485_v49  ;;  %v584_v57 = vpack.c.bf16 %v522_v40, %v521_v39 }
  0x1d   : > { %1336 = vmatmul.mubr.msk.bf16.vlgmr.msra.gmra.mrb[0].mxu1 %vm627_vm0, %v599_v42  ;;  %766 = vmatprep.mubr.bf16.mxu0 %v1568_v2  ;;  %v421_v54 = vmul.f32 %v1430_v48, %v1631_v3  ;;  %v600_v58 = vpack.c.bf16 %v554_v46, %v553_v45  ;;  %v1433_v59 = vunpack.c.l.bf16 %v1501_v52  ;;  %v1434_v60 = vunpack.c.h.bf16 %v1501_v52  ;;  %v1488_v52 = vld [vmem:[%s1626_s27 + $0x30] sm:$0xff]  }
  0x1e   : > { %926 = vmatprep.mubr.bf16.mxu1 %v1568_v2  ;;  %v459_v61 = vadd.f32 %v1640_v12, %v388_v50  ;;  %v460_v62 = vadd.f32 %v1640_v12, %v389_v51  ;;  %v491_v63 = vadd.f32 %v1640_v12, %v420_v53  ;;  %v390_v1 = vmul.f32 %v1369_v55, %v1631_v3  ;;  %v1504_v53 = vld [vmem:[%s1626_s27 + $0xb0] sm:$0xff]  }
  0x1f   : > { %v492_v0 = vadd.f32 %v1640_v12, %v421_v54  ;;  %v391_v4 = vmul.f32 %v1370_v56, %v1631_v3  ;;  %v422_v5 = vmul.f32 %v1433_v59, %v1631_v3  ;;  %v423_v6 = vmul.f32 %v1434_v60, %v1631_v3 }
  0x20   : > { %v523_v7 = vmax.f32 %v459_v61, 0.0  ;;  %v524_v8 = vmax.f32 %v460_v62, 0.0  ;;  %v555_v9 = vmax.f32 %v491_v63, 0.0  ;;  %v461_v14 = vadd.f32 %v1640_v12, %v390_v1 }
  0x21   : > { %v556_v10 = vmax.f32 %v492_v0, 0.0  ;;  %v462_v15 = vadd.f32 %v1640_v12, %v391_v4  ;;  %v493_v16 = vadd.f32 %v1640_v12, %v422_v5  ;;  %v494_v17 = vadd.f32 %v1640_v12, %v423_v6  ;;  %v1489_v6 = vld [vmem:[%s1626_s27 + $0x38] sm:$0xff]  }
  0x22   : > { %v1373_v18 = vunpack.c.l.bf16 %v1486_v11  ;;  %v1374_v19 = vunpack.c.h.bf16 %v1486_v11  ;;  %v585_v20 = vpack.c.bf16 %v524_v8, %v523_v7  ;;  %v1437_v22 = vunpack.c.l.bf16 %v1502_v13  ;;  %v1505_v11 = vld [vmem:[%s1626_s27 + $0xb8] sm:$0xff]  }
  0x23   : > { %v601_v21 = vpack.c.bf16 %v556_v10, %v555_v9  ;;  %v1438_v23 = vunpack.c.h.bf16 %v1502_v13  ;;  %v525_v24 = vmax.f32 %v461_v14, 0.0  ;;  %v526_v25 = vmax.f32 %v462_v15, 0.0 }
  0x24   : > { %1321 = vmatmul.mubr.msk.bf16.gmra.mrb[4].mxu0 %vm627_vm0, %v584_v57  ;;  %v392_v26 = vmul.f32 %v1373_v18, %v1631_v3  ;;  %v393_v27 = vmul.f32 %v1374_v19, %v1631_v3  ;;  %v557_v29 = vmax.f32 %v493_v16, 0.0  ;;  %v558_v30 = vmax.f32 %v494_v17, 0.0 }
  0x25   : > { %1337 = vmatmul.mubr.msk.bf16.gmra.mrb[4].mxu1 %vm627_vm0, %v600_v58  ;;  %776 = vmatprep.mubr.bf16.mxu0 %v1568_v2  ;;  %v424_v31 = vmul.f32 %v1437_v22, %v1631_v3  ;;  %v425_v32 = vmul.f32 %v1438_v23, %v1631_v3  ;;  %v1377_v34 = vunpack.c.l.bf16 %v1487_v28  ;;  %v1378_v35 = vunpack.c.h.bf16 %v1487_v28 }
  0x26   : > { %936 = vmatprep.mubr.bf16.mxu1 %v1568_v2  ;;  %v586_v36 = vpack.c.bf16 %v526_v25, %v525_v24  ;;  %v463_v37 = vadd.f32 %v1640_v12, %v392_v26  ;;  %v464_v38 = vadd.f32 %v1640_v12, %v393_v27  ;;  %v1441_v39 = vunpack.c.l.bf16 %v1503_v33 }
  0x27   : > { %v602_v40 = vpack.c.bf16 %v558_v30, %v557_v29  ;;  %v495_v41 = vadd.f32 %v1640_v12, %v424_v31  ;;  %v496_v42 = vadd.f32 %v1640_v12, %v425_v32  ;;  %v1442_v43 = vunpack.c.h.bf16 %v1503_v33  ;;  %v1490_v31 = vld [vmem:[%s1626_s27 + $0x40] sm:$0xff]  }
  0x28   : > { %v394_v44 = vmul.f32 %v1377_v34, %v1631_v3  ;;  %v395_v45 = vmul.f32 %v1378_v35, %v1631_v3  ;;  %v527_v46 = vmax.f32 %v463_v37, 0.0  ;;  %v528_v47 = vmax.f32 %v464_v38, 0.0  ;;  %v1506_v32 = vld [vmem:[%s1626_s27 + $0xc0] sm:$0xff]  }
  0x29   : > { %v426_v48 = vmul.f32 %v1441_v39, %v1631_v3  ;;  %v559_v49 = vmax.f32 %v495_v41, 0.0  ;;  %v560_v50 = vmax.f32 %v496_v42, 0.0  ;;  %v427_v51 = vmul.f32 %v1442_v43, %v1631_v3 }
  0x2a   : > { %v465_v54 = vadd.f32 %v1640_v12, %v394_v44  ;;  %v466_v55 = vadd.f32 %v1640_v12, %v395_v45  ;;  %v587_v56 = vpack.c.bf16 %v528_v47, %v527_v46  ;;  %v1381_v58 = vunpack.c.l.bf16 %v1488_v52  ;;  %v1491_v47 = vld [vmem:[%s1626_s27 + $0x48] sm:$0xff]  }
  0x2b   : > { %v497_v57 = vadd.f32 %v1640_v12, %v426_v48  ;;  %v1382_v59 = vunpack.c.h.bf16 %v1488_v52  ;;  %v603_v60 = vpack.c.bf16 %v560_v50, %v559_v49  ;;  %v498_v61 = vadd.f32 %v1640_v12, %v427_v51  ;;  %v1507_v52 = vld [vmem:[%s1626_s27 + $0xc8] sm:$0xff]  }
  0x2c   : > { %1322 = vmatmul.mubr.msk.bf16.gmra.mrb[8].mxu0 %vm627_vm0, %v585_v20  ;;  %v1445_v62 = vunpack.c.l.bf16 %v1504_v53  ;;  %v1446_v63 = vunpack.c.h.bf16 %v1504_v53  ;;  %v529_v0 = vmax.f32 %v465_v54, 0.0  ;;  %v530_v1 = vmax.f32 %v466_v55, 0.0 }
  0x2d   : > { %1338 = vmatmul.mubr.msk.bf16.gmra.mrb[8].mxu1 %vm627_vm0, %v601_v21  ;;  %786 = vmatprep.mubr.bf16.mxu0 %v1568_v2  ;;  %v396_v4 = vmul.f32 %v1381_v58, %v1631_v3  ;;  %v397_v5 = vmul.f32 %v1382_v59, %v1631_v3  ;;  %v561_v7 = vmax.f32 %v497_v57, 0.0  ;;  %v562_v8 = vmax.f32 %v498_v61, 0.0 }
  0x2e   : > { %946 = vmatprep.mubr.bf16.mxu1 %v1568_v2  ;;  %v428_v9 = vmul.f32 %v1445_v62, %v1631_v3  ;;  %v429_v10 = vmul.f32 %v1446_v63, %v1631_v3  ;;  %v1385_v13 = vunpack.c.l.bf16 %v1489_v6  ;;  %v1386_v14 = vunpack.c.h.bf16 %v1489_v6 }
  0x2f   : > { %v588_v15 = vpack.c.bf16 %v530_v1, %v529_v0  ;;  %v467_v16 = vadd.f32 %v1640_v12, %v396_v4  ;;  %v468_v17 = vadd.f32 %v1640_v12, %v397_v5  ;;  %v1449_v18 = vunpack.c.l.bf16 %v1505_v11 }
  0x30   : > { %v604_v19 = vpack.c.bf16 %v562_v8, %v561_v7  ;;  %v499_v20 = vadd.f32 %v1640_v12, %v428_v9  ;;  %v500_v21 = vadd.f32 %v1640_v12, %v429_v10  ;;  %v1450_v22 = vunpack.c.h.bf16 %v1505_v11  ;;  %v1492_v9 = vld [vmem:[%s1626_s27 + $0x50] sm:$0xff]  }
  0x31   : > { %v398_v23 = vmul.f32 %v1385_v13, %v1631_v3  ;;  %v399_v24 = vmul.f32 %v1386_v14, %v1631_v3  ;;  %v531_v25 = vmax.f32 %v467_v16, 0.0  ;;  %v532_v26 = vmax.f32 %v468_v17, 0.0  ;;  %v1508_v10 = vld [vmem:[%s1626_s27 + $0xd0] sm:$0xff]  }
  0x32   : > { %v430_v27 = vmul.f32 %v1449_v18, %v1631_v3  ;;  %v563_v28 = vmax.f32 %v499_v20, 0.0  ;;  %v564_v29 = vmax.f32 %v500_v21, 0.0  ;;  %v431_v30 = vmul.f32 %v1450_v22, %v1631_v3 }
  0x33   : > { %v469_v33 = vadd.f32 %v1640_v12, %v398_v23  ;;  %v470_v34 = vadd.f32 %v1640_v12, %v399_v24  ;;  %v589_v35 = vpack.c.bf16 %v532_v26, %v531_v25  ;;  %v1389_v37 = vunpack.c.l.bf16 %v1490_v31  ;;  %v1493_v26 = vld [vmem:[%s1626_s27 + $0x58] sm:$0xff]  }
  0x34   : > { %1323 = vmatmul.mubr.msk.bf16.gmra.mrb[12].mxu0 %vm627_vm0, %v586_v36  ;;  %v501_v36 = vadd.f32 %v1640_v12, %v430_v27  ;;  %v1390_v38 = vunpack.c.h.bf16 %v1490_v31  ;;  %v605_v39 = vpack.c.bf16 %v564_v29, %v563_v28  ;;  %v1453_v41 = vunpack.c.l.bf16 %v1506_v32  ;;  %v1509_v31 = vld [vmem:[%s1626_s27 + $0xd8] sm:$0xff]  }
  0x35   : > { %1339 = vmatmul.mubr.msk.bf16.gmra.mrb[12].mxu1 %vm627_vm0, %v602_v40  ;;  %796 = vmatprep.mubr.bf16.mxu0 %v1568_v2  ;;  %v502_v40 = vadd.f32 %v1640_v12, %v431_v30  ;;  %v1454_v42 = vunpack.c.h.bf16 %v1506_v32  ;;  %v533_v43 = vmax.f32 %v469_v33, 0.0  ;;  %v534_v44 = vmax.f32 %v470_v34, 0.0 }
  0x36   : > { %956 = vmatprep.mubr.bf16.mxu1 %v1568_v2  ;;  %v400_v45 = vmul.f32 %v1389_v37, %v1631_v3  ;;  %v401_v46 = vmul.f32 %v1390_v38, %v1631_v3  ;;  %v565_v48 = vmax.f32 %v501_v36, 0.0  ;;  %v432_v50 = vmul.f32 %v1453_v41, %v1631_v3 }
  0x37   : > { %v566_v49 = vmax.f32 %v502_v40, 0.0  ;;  %v433_v51 = vmul.f32 %v1454_v42, %v1631_v3  ;;  %v1393_v53 = vunpack.c.l.bf16 %v1491_v47  ;;  %v1394_v54 = vunpack.c.h.bf16 %v1491_v47  ;;  %v1494_v47 = vld [vmem:[%s1626_s27 + $0x60] sm:$0xff]  }
  0x38   : > { %v590_v55 = vpack.c.bf16 %v534_v44, %v533_v43  ;;  %v472_v57 = vadd.f32 %v1640_v12, %v401_v46  ;;  %v1457_v58 = vunpack.c.l.bf16 %v1507_v52  ;;  %v1458_v62 = vunpack.c.h.bf16 %v1507_v52 }
  0x39   : > { %v606_v59 = vpack.c.bf16 %v566_v49, %v565_v48  ;;  %v504_v61 = vadd.f32 %v1640_v12, %v433_v51  ;;  %v402_v63 = vmul.f32 %v1393_v53, %v1631_v3  ;;  %v403_v0 = vmul.f32 %v1394_v54, %v1631_v3  ;;  %v1510_v51 = vld [vmem:[%s1626_s27 + $0xe0] sm:$0xff]  }
  0x3a   : > { %v536_v4 = vmax.f32 %v472_v57, 0.0  ;;  %v434_v5 = vmul.f32 %v1457_v58, %v1631_v3  ;;  %v435_v8 = vmul.f32 %v1458_v62, %v1631_v3  ;;  %v1397_v16 = vunpack.c.l.bf16 %v1492_v9 }
  0x3b   : > { %v568_v7 = vmax.f32 %v504_v61, 0.0  ;;  %v473_v11 = vadd.f32 %v1640_v12, %v402_v63  ;;  %v474_v13 = vadd.f32 %v1640_v12, %v403_v0  ;;  %v1398_v17 = vunpack.c.h.bf16 %v1492_v9  ;;  %v1511_v9 = vld [vmem:[%s1626_s27 + $0xe8] sm:$0xff]  }
  0x3c   : > { %1324 = vmatmul.mubr.msk.bf16.gmra.mrb[16].mxu0 %vm627_vm0, %v587_v56  ;;  %v471_v56 = vadd.f32 %v1640_v12, %v400_v45  ;;  %v1461_v20 = vunpack.c.l.bf16 %v1508_v10  ;;  %v1462_v21 = vunpack.c.h.bf16 %v1508_v10  ;;  %v404_v24 = vmul.f32 %v1397_v16, %v1631_v3 }
  0x3d   : > { %1340 = vmatmul.mubr.msk.bf16.gmra.mrb[16].mxu1 %vm627_vm0, %v603_v60  ;;  %806 = vmatprep.mubr.bf16.mxu0 %v1568_v2  ;;  %v503_v60 = vadd.f32 %v1640_v12, %v432_v50  ;;  %v537_v22 = vmax.f32 %v473_v11, 0.0  ;;  %v538_v23 = vmax.f32 %v474_v13, 0.0  ;;  %v405_v25 = vmul.f32 %v1398_v17, %v1631_v3 }
  0x3e   : > { %966 = vmatprep.mubr.bf16.mxu1 %v1568_v2  ;;  %v535_v1 = vmax.f32 %v471_v56, 0.0  ;;  %v436_v29 = vmul.f32 %v1461_v20, %v1631_v3  ;;  %v437_v30 = vmul.f32 %v1462_v21, %v1631_v3  ;;  %v1401_v33 = vunpack.c.l.bf16 %v1493_v26 }
  0x3f   : > { %v567_v6 = vmax.f32 %v503_v60, 0.0  ;;  %v592_v32 = vpack.c.bf16 %v538_v23, %v537_v22  ;;  %v475_v34 = vadd.f32 %v1640_v12, %v404_v24  ;;  %v1402_v36 = vunpack.c.h.bf16 %v1493_v26 }
  0x40   : > { %v591_v14 = vpack.c.bf16 %v536_v4, %v535_v1  ;;  %v1465_v37 = vunpack.c.l.bf16 %v1509_v31  ;;  %v508_v40 = vadd.f32 %v1640_v12, %v437_v30  ;;  %v1466_v41 = vunpack.c.h.bf16 %v1509_v31  ;;  %v1495_v4 = vld [vmem:[%s1626_s27 + $0x68] sm:$0xff]   ;;  %v1512_v30 = vld [vmem:[%s1626_s27 + $0xf0] sm:$0xff]  }
  0x41   : > { %v607_v18 = vpack.c.bf16 %v568_v7, %v567_v6  ;;  %v406_v42 = vmul.f32 %v1401_v33, %v1631_v3  ;;  %v539_v43 = vmax.f32 %v475_v34, 0.0  ;;  %v407_v45 = vmul.f32 %v1402_v36, %v1631_v3 }
  0x42   : > { %v438_v46 = vmul.f32 %v1465_v37, %v1631_v3  ;;  %v572_v49 = vmax.f32 %v508_v40, 0.0  ;;  %v439_v50 = vmul.f32 %v1466_v41, %v1631_v3  ;;  %v1405_v53 = vunpack.c.l.bf16 %v1494_v47 }
  0x43   : > { %v477_v52 = vadd.f32 %v1640_v12, %v406_v42  ;;  %v1406_v57 = vunpack.c.h.bf16 %v1494_v47  ;;  %v1469_v60 = vunpack.c.l.bf16 %v1510_v51  ;;  %v1470_v61 = vunpack.c.h.bf16 %v1510_v51 }
  0x44   : > { %1325 = vmatmul.mubr.msk.bf16.gmra.mrb[20].mxu0 %vm627_vm0, %v588_v15  ;;  %v505_v15 = vadd.f32 %v1640_v12, %v434_v5  ;;  %v509_v56 = vadd.f32 %v1640_v12, %v438_v46  ;;  %v408_v1 = vmul.f32 %v1405_v53, %v1631_v3  ;;  %v1409_v10 = vunpack.c.l.bf16 %v1495_v4 }
  0x45   : > { %1341 = vmatmul.mubr.msk.bf16.gmra.mrb[20].mxu1 %vm627_vm0, %v604_v19  ;;  %816 = vmatprep.mubr.bf16.mxu0 %v1568_v2  ;;  %v506_v19 = vadd.f32 %v1640_v12, %v435_v8  ;;  %v541_v62 = vmax.f32 %v477_v52, 0.0  ;;  %v409_v6 = vmul.f32 %v1406_v57, %v1631_v3  ;;  %v440_v7 = vmul.f32 %v1469_v60, %v1631_v3 }
  0x46   : > { %976 = vmatprep.mubr.bf16.mxu1 %v1568_v2  ;;  %v569_v27 = vmax.f32 %v505_v15, 0.0  ;;  %v573_v0 = vmax.f32 %v509_v56, 0.0  ;;  %v441_v8 = vmul.f32 %v1470_v61, %v1631_v3  ;;  %v1410_v11 = vunpack.c.h.bf16 %v1495_v4 }
  0x47   : > { %v570_v28 = vmax.f32 %v506_v19, 0.0  ;;  %v1473_v15 = vunpack.c.l.bf16 %v1511_v9  ;;  %v1474_v16 = vunpack.c.h.bf16 %v1511_v9  ;;  %v511_v19 = vadd.f32 %v1640_v12, %v440_v7 }
  0x48   : > { %v512_v20 = vadd.f32 %v1640_v12, %v441_v8  ;;  %v410_v21 = vmul.f32 %v1409_v10, %v1631_v3  ;;  %v411_v22 = vmul.f32 %v1410_v11, %v1631_v3  ;;  %v1478_v40 = vunpack.c.h.bf16 %v1512_v30 }
  0x49   : > { %v608_v38 = vpack.c.bf16 %v570_v28, %v569_v27  ;;  %v442_v23 = vmul.f32 %v1473_v15, %v1631_v3  ;;  %v443_v24 = vmul.f32 %v1474_v16, %v1631_v3  ;;  %v575_v28 = vmax.f32 %v511_v19, 0.0 }
  0x4a   : > { %v481_v31 = vadd.f32 %v1640_v12, %v410_v21 }
  0x4b   : > { %v513_v34 = vadd.f32 %v1640_v12, %v442_v23 }
  0x4c   : > { %1326 = vmatmul.mubr.msk.bf16.gmra.mrb[24].mxu0 %vm627_vm0, %v589_v35  ;;  %v476_v35 = vadd.f32 %v1640_v12, %v405_v25  ;;  %v1496_v25 = vld [vmem:[%s1626_s27 + $0x70] sm:$0xff]   ;;  %v545_v41 = vmax.f32 %v481_v31, 0.0 }
  0x4d   : > { %1342 = vmatmul.mubr.msk.bf16.gmra.mrb[24].mxu1 %vm627_vm0, %v605_v39  ;;  %826 = vmatprep.mubr.bf16.mxu0 %v1568_v2  ;;  %v507_v39 = vadd.f32 %v1640_v12, %v436_v29  ;;  %v576_v29 = vmax.f32 %v512_v20, 0.0  ;;  %v1413_v33 = vunpack.c.l.bf16 %v1496_v25  ;;  %v1414_v36 = vunpack.c.h.bf16 %v1496_v25 }
  0x4e   : > { %986 = vmatprep.mubr.bf16.mxu1 %v1568_v2  ;;  %v540_v44 = vmax.f32 %v476_v35, 0.0  ;;  %v514_v35 = vadd.f32 %v1640_v12, %v443_v24 }
  0x4f   : > { %v571_v48 = vmax.f32 %v507_v39, 0.0  ;;  %v1477_v39 = vunpack.c.l.bf16 %v1512_v30  ;;  %v413_v46 = vmul.f32 %v1414_v36, %v1631_v3 }
  0x50   : > { %v593_v54 = vpack.c.bf16 %v540_v44, %v539_v43  ;;  %v412_v43 = vmul.f32 %v1413_v33, %v1631_v3  ;;  %v577_v44 = vmax.f32 %v513_v34, 0.0 }
  0x51   : > { %v609_v58 = vpack.c.bf16 %v572_v49, %v571_v48  ;;  %v444_v47 = vmul.f32 %v1477_v39, %v1631_v3  ;;  %v445_v48 = vmul.f32 %v1478_v40, %v1631_v3  ;;  %v1497_v49 = vld [vmem:[%s1626_s27 + $0x78] sm:$0xff]  }
  0x52   : > { %v483_v52 = vadd.f32 %v1640_v12, %v412_v43  ;;  %v1418_v56 = vunpack.c.h.bf16 %v1497_v49 }
  0x53   : > { %v515_v57 = vadd.f32 %v1640_v12, %v444_v47 }
  0x54   : > { %1327 = vmatmul.mubr.msk.bf16.gmra.mrb[28].mxu0 %vm627_vm0, %v590_v55  ;;  %v478_v55 = vadd.f32 %v1640_v12, %v407_v45  ;;  %v578_v45 = vmax.f32 %v514_v35, 0.0  ;;  %v547_v61 = vmax.f32 %v483_v52, 0.0 }
  0x55   : > { %1343 = vmatmul.mubr.msk.bf16.gmra.mrb[28].mxu1 %vm627_vm0, %v606_v59  ;;  %836 = vmatprep.mubr.bf16.mxu0 %v1568_v2  ;;  %v510_v59 = vadd.f32 %v1640_v12, %v439_v50  ;;  %v1513_v50 = vld [vmem:[%s1626_s27 + $0xf8] sm:$0xff]  }
  0x56   : > { %996 = vmatprep.mubr.bf16.mxu1 %v1568_v2  ;;  %v542_v63 = vmax.f32 %v478_v55, 0.0  ;;  %v612_v53 = vpack.c.bf16 %v578_v45, %v577_v44  ;;  %v1417_v55 = vunpack.c.l.bf16 %v1497_v49  ;;  %v1482_v60 = vunpack.c.h.bf16 %v1513_v50 }
  0x57   : > { %v574_v5 = vmax.f32 %v510_v59, 0.0  ;;  %v1481_v59 = vunpack.c.l.bf16 %v1513_v50 }
  0x58   : > { %v594_v13 = vpack.c.bf16 %v542_v63, %v541_v62  ;;  %v414_v63 = vmul.f32 %v1417_v55, %v1631_v3 }
  0x59   : > { %v610_v17 = vpack.c.bf16 %v574_v5, %v573_v0  ;;  %v415_v0 = vmul.f32 %v1418_v56, %v1631_v3  ;;  %v446_v5 = vmul.f32 %v1481_v59, %v1631_v3 }
  0x5a   : > { %v485_v8 = vadd.f32 %v1640_v12, %v414_v63 }
  0x5b   : > { %v486_v10 = vadd.f32 %v1640_v12, %v415_v0  ;;  %v517_v11 = vadd.f32 %v1640_v12, %v446_v5 }
  0x5c   : > { %1328 = vmatmul.mubr.msk.bf16.gmra.mrb[32].mxu0 %vm627_vm0, %v591_v14  ;;  %v479_v14 = vadd.f32 %v1640_v12, %v408_v1  ;;  %v579_v1 = vmax.f32 %v515_v57, 0.0 }
  0x5d   : > { %1344 = vmatmul.mubr.msk.bf16.gmra.mrb[32].mxu1 %vm627_vm0, %v607_v18  ;;  %846 = vmatprep.mubr.bf16.mxu0 %v1568_v2  ;;  %v480_v18 = vadd.f32 %v1640_v12, %v409_v6  ;;  %v447_v6 = vmul.f32 %v1482_v60, %v1631_v3  ;;  %v549_v3 = vmax.f32 %v485_v8, 0.0  ;;  %v581_v15 = vmax.f32 %v517_v11, 0.0 }
  0x5e   : > { %1006 = vmatprep.mubr.bf16.mxu1 %v1568_v2  ;;  %v543_v26 = vmax.f32 %v479_v14, 0.0  ;;  %v550_v14 = vmax.f32 %v486_v10, 0.0 }
  0x5f   : > { %v544_v27 = vmax.f32 %v480_v18, 0.0 }
  0x61   : > { %v595_v37 = vpack.c.bf16 %v544_v27, %v543_v26 }
  0x64   : > { %1329 = vmatmul.mubr.msk.bf16.gmra.mrb[36].mxu0 %vm627_vm0, %v592_v32  ;;  %v482_v32 = vadd.f32 %v1640_v12, %v411_v22 }
  0x65   : > { %1345 = vmatmul.mubr.msk.bf16.gmra.mrb[36].mxu1 %vm627_vm0, %v608_v38  ;;  %856 = vmatprep.mubr.bf16.mxu0 %v1568_v2  ;;  %v611_v38 = vpack.c.bf16 %v576_v29, %v575_v28 }
  0x66   : > { %1016 = vmatprep.mubr.bf16.mxu1 %v1568_v2  ;;  %v546_v42 = vmax.f32 %v482_v32, 0.0 }
  0x68   : > { %v596_v51 = vpack.c.bf16 %v546_v42, %v545_v41 }
  0x6c   : > { %1330 = vmatmul.mubr.msk.bf16.gmra.mrb[40].mxu0 %vm627_vm0, %v593_v54  ;;  %v484_v54 = vadd.f32 %v1640_v12, %v413_v46 }
  0x6d   : > { %1346 = vmatmul.mubr.msk.bf16.gmra.mrb[40].mxu1 %vm627_vm0, %v609_v58  ;;  %866 = vmatprep.mubr.bf16.mxu0 %v1568_v2  ;;  %v516_v58 = vadd.f32 %v1640_v12, %v445_v48 }
  0x6e   : > { %1026 = vmatprep.mubr.bf16.mxu1 %v1568_v2  ;;  %v548_v62 = vmax.f32 %v484_v54, 0.0 }
  0x6f   : > { %v580_v4 = vmax.f32 %v516_v58, 0.0 }
  0x70   : > { %v597_v7 = vpack.c.bf16 %v548_v62, %v547_v61 }
  0x71   : > { %v613_v9 = vpack.c.bf16 %v580_v4, %v579_v1 }
  0x74   : > { %1331 = vmatmul.mubr.msk.bf16.gmra.mrb[44].mxu0 %vm627_vm0, %v594_v13  ;;  %v518_v13 = vadd.f32 %v1640_v12, %v447_v6 }
  0x75   : > { %1347 = vmatmul.mubr.msk.bf16.gmra.mrb[44].mxu1 %vm627_vm0, %v610_v17  ;;  %876 = vmatprep.mubr.bf16.mxu0 %v1568_v2  ;;  %v598_v17 = vpack.c.bf16 %v550_v14, %v549_v3 }
  0x76   : > { %1036 = vmatprep.mubr.bf16.mxu1 %v1568_v2  ;;  %v582_v16 = vmax.f32 %v518_v13, 0.0 }
  0x78   : > { %v614_v18 = vpack.c.bf16 %v582_v16, %v581_v15 }
  0x7c   : > { %1332 = vmatmul.mubr.msk.bf16.gmra.mrb[48].mxu0 %vm627_vm0, %v595_v37 }
  0x7d   : > { %1348 = vmatmul.mubr.msk.bf16.gmra.mrb[48].mxu1 %vm627_vm0, %v611_v38  ;;  %886 = vmatprep.mubr.bf16.mxu0 %v1568_v2 }
  0x7e   : > { %1046 = vmatprep.mubr.bf16.mxu1 %v1568_v2 }
  0x84   : > { %1333 = vmatmul.mubr.msk.bf16.gmra.mrb[52].mxu0 %vm627_vm0, %v596_v51 }
  0x85   : > { %1349 = vmatmul.mubr.msk.bf16.gmra.mrb[52].mxu1 %vm627_vm0, %v612_v53  ;;  %896 = vmatprep.mubr.bf16.mxu0 %v1568_v2 }
  0x86   : > { %1056 = vmatprep.mubr.bf16.mxu1 %v1568_v2 }
  0x8c   : > { %1334 = vmatmul.mubr.msk.bf16.gmra.mrb[56].mxu0 %vm627_vm0, %v597_v7 }
  0x8d   : > { %1350 = vmatmul.mubr.msk.bf16.gmra.mrb[56].mxu1 %vm627_vm0, %v613_v9  ;;  %906 = vmatprep.mubr.bf16.mxu0 %v1568_v2 }
  0x8e   : > { %1066 = vmatprep.mubr.bf16.mxu1 %v1568_v2 }
  0x94   : > { %1335 = vmatmul.mubr.msk.bf16.gmra.mrb[60].mxu0 %vm627_vm0, %v598_v17 }
  0x95   : > { %1351 = vmatmul.mubr.msk.bf16.gmra.mrb[60].mxu1 %vm627_vm0, %v614_v18 }
  0xef   : > { %v758_v2 = vpop.f32.mrb[0].mxu0 }
  0xf0   : > { %v918_v12 = vpop.f32.mrb[0].mxu1  ;;  %1077 = vst [vmem:[%s1864_s9] sm:$0xff] %v758_v2  ;;  %v760_v19 = vpop.f32.mrb[1].mxu0 }
  0xf1   : > { %1142 = vst [vmem:[%s1864_s9 + $0x200] sm:$0xff] %v918_v12  ;;  %v920_v20 = vpop.f32.mrb[1].mxu1  ;;  %1079 = vst.msk [vmem:[%s1864_s9 + $0x8] sm:$0xff] %vm1078_vm1, %v760_v19  ;;  %v762_v21 = vpop.f32.mrb[2].mxu0 }
  0xf2   : > { %1143 = vst.msk [vmem:[%s1864_s9 + $0x208] sm:$0xff] %vm1078_vm1, %v920_v20  ;;  %v922_v22 = vpop.f32.mrb[2].mxu1  ;;  %1080 = vst [vmem:[%s1864_s9 + $0x10] sm:$0xff] %v762_v21  ;;  %v764_v23 = vpop.f32.mrb[3].mxu0 }
  0xf3   : > { %1144 = vst [vmem:[%s1864_s9 + $0x210] sm:$0xff] %v922_v22  ;;  %v924_v24 = vpop.f32.mrb[3].mxu1  ;;  %1081 = vst.msk [vmem:[%s1864_s9 + $0x18] sm:$0xff] %vm1078_vm1, %v764_v23 }
  0xf4   : > { %1145 = vst.msk [vmem:[%s1864_s9 + $0x218] sm:$0xff] %vm1078_vm1, %v924_v24 }
  0xf7   : > { %v768_v25 = vpop.f32.mrb[4].mxu0 }
  0xf8   : > { %v928_v26 = vpop.f32.mrb[4].mxu1  ;;  %1082 = vst [vmem:[%s1864_s9 + $0x20] sm:$0xff] %v768_v25  ;;  %v770_v27 = vpop.f32.mrb[5].mxu0 }
  0xf9   : > { %1146 = vst [vmem:[%s1864_s9 + $0x220] sm:$0xff] %v928_v26  ;;  %v930_v28 = vpop.f32.mrb[5].mxu1  ;;  %1083 = vst.msk [vmem:[%s1864_s9 + $0x28] sm:$0xff] %vm1078_vm1, %v770_v27  ;;  %v772_v29 = vpop.f32.mrb[6].mxu0 }
  0xfa   : > { %1147 = vst.msk [vmem:[%s1864_s9 + $0x228] sm:$0xff] %vm1078_vm1, %v930_v28  ;;  %v932_v30 = vpop.f32.mrb[6].mxu1  ;;  %1084 = vst [vmem:[%s1864_s9 + $0x30] sm:$0xff] %v772_v29  ;;  %v774_v31 = vpop.f32.mrb[7].mxu0 }
  0xfb   : > { %1148 = vst [vmem:[%s1864_s9 + $0x230] sm:$0xff] %v932_v30  ;;  %v934_v32 = vpop.f32.mrb[7].mxu1  ;;  %1085 = vst.msk [vmem:[%s1864_s9 + $0x38] sm:$0xff] %vm1078_vm1, %v774_v31 }
  0xfc   : > { %1149 = vst.msk [vmem:[%s1864_s9 + $0x238] sm:$0xff] %vm1078_vm1, %v934_v32 }
  0xff   : > { %v778_v33 = vpop.f32.mrb[8].mxu0 }
 0x100   : > { %v938_v34 = vpop.f32.mrb[8].mxu1  ;;  %1086 = vst [vmem:[%s1864_s9 + $0x40] sm:$0xff] %v778_v33  ;;  %v780_v35 = vpop.f32.mrb[9].mxu0 }
 0x101   : > { %1150 = vst [vmem:[%s1864_s9 + $0x240] sm:$0xff] %v938_v34  ;;  %v940_v36 = vpop.f32.mrb[9].mxu1  ;;  %1087 = vst.msk [vmem:[%s1864_s9 + $0x48] sm:$0xff] %vm1078_vm1, %v780_v35  ;;  %v782_v37 = vpop.f32.mrb[10].mxu0 }
 0x102   : > { %1151 = vst.msk [vmem:[%s1864_s9 + $0x248] sm:$0xff] %vm1078_vm1, %v940_v36  ;;  %v942_v38 = vpop.f32.mrb[10].mxu1  ;;  %1088 = vst [vmem:[%s1864_s9 + $0x50] sm:$0xff] %v782_v37  ;;  %v784_v39 = vpop.f32.mrb[11].mxu0 }
 0x103   : > { %1152 = vst [vmem:[%s1864_s9 + $0x250] sm:$0xff] %v942_v38  ;;  %v944_v40 = vpop.f32.mrb[11].mxu1  ;;  %1089 = vst.msk [vmem:[%s1864_s9 + $0x58] sm:$0xff] %vm1078_vm1, %v784_v39 }
 0x104   : > { %1153 = vst.msk [vmem:[%s1864_s9 + $0x258] sm:$0xff] %vm1078_vm1, %v944_v40 }
 0x107   : > { %v788_v41 = vpop.f32.mrb[12].mxu0 }
 0x108   : > { %v948_v42 = vpop.f32.mrb[12].mxu1  ;;  %1090 = vst [vmem:[%s1864_s9 + $0x60] sm:$0xff] %v788_v41  ;;  %v790_v43 = vpop.f32.mrb[13].mxu0 }
 0x109   : > { %1154 = vst [vmem:[%s1864_s9 + $0x260] sm:$0xff] %v948_v42  ;;  %v950_v44 = vpop.f32.mrb[13].mxu1  ;;  %1091 = vst.msk [vmem:[%s1864_s9 + $0x68] sm:$0xff] %vm1078_vm1, %v790_v43  ;;  %v792_v45 = vpop.f32.mrb[14].mxu0 }
 0x10a   : > { %1155 = vst.msk [vmem:[%s1864_s9 + $0x268] sm:$0xff] %vm1078_vm1, %v950_v44  ;;  %v952_v46 = vpop.f32.mrb[14].mxu1  ;;  %1092 = vst [vmem:[%s1864_s9 + $0x70] sm:$0xff] %v792_v45  ;;  %v794_v47 = vpop.f32.mrb[15].mxu0 }
 0x10b   : > { %1156 = vst [vmem:[%s1864_s9 + $0x270] sm:$0xff] %v952_v46  ;;  %v954_v48 = vpop.f32.mrb[15].mxu1  ;;  %1093 = vst.msk [vmem:[%s1864_s9 + $0x78] sm:$0xff] %vm1078_vm1, %v794_v47 }
 0x10c   : > { %1157 = vst.msk [vmem:[%s1864_s9 + $0x278] sm:$0xff] %vm1078_vm1, %v954_v48 }
 0x10f   : > { %v798_v49 = vpop.f32.mrb[16].mxu0 }
 0x110   : > { %v958_v50 = vpop.f32.mrb[16].mxu1  ;;  %1094 = vst [vmem:[%s1864_s9 + $0x80] sm:$0xff] %v798_v49  ;;  %v800_v51 = vpop.f32.mrb[17].mxu0 }
 0x111   : > { %1158 = vst [vmem:[%s1864_s9 + $0x280] sm:$0xff] %v958_v50  ;;  %v960_v52 = vpop.f32.mrb[17].mxu1  ;;  %1095 = vst.msk [vmem:[%s1864_s9 + $0x88] sm:$0xff] %vm1078_vm1, %v800_v51  ;;  %v802_v53 = vpop.f32.mrb[18].mxu0 }
 0x112   : > { %1159 = vst.msk [vmem:[%s1864_s9 + $0x288] sm:$0xff] %vm1078_vm1, %v960_v52  ;;  %v962_v54 = vpop.f32.mrb[18].mxu1  ;;  %1096 = vst [vmem:[%s1864_s9 + $0x90] sm:$0xff] %v802_v53  ;;  %v804_v55 = vpop.f32.mrb[19].mxu0 }
 0x113   : > { %1160 = vst [vmem:[%s1864_s9 + $0x290] sm:$0xff] %v962_v54  ;;  %v964_v56 = vpop.f32.mrb[19].mxu1  ;;  %1097 = vst.msk [vmem:[%s1864_s9 + $0x98] sm:$0xff] %vm1078_vm1, %v804_v55 }
 0x114   : > { %1161 = vst.msk [vmem:[%s1864_s9 + $0x298] sm:$0xff] %vm1078_vm1, %v964_v56 }
 0x117   : > { %v808_v57 = vpop.f32.mrb[20].mxu0 }
 0x118   : > { %v968_v58 = vpop.f32.mrb[20].mxu1  ;;  %1098 = vst [vmem:[%s1864_s9 + $0xa0] sm:$0xff] %v808_v57  ;;  %v810_v59 = vpop.f32.mrb[21].mxu0 }
 0x119   : > { %1162 = vst [vmem:[%s1864_s9 + $0x2a0] sm:$0xff] %v968_v58  ;;  %v970_v60 = vpop.f32.mrb[21].mxu1  ;;  %1099 = vst.msk [vmem:[%s1864_s9 + $0xa8] sm:$0xff] %vm1078_vm1, %v810_v59  ;;  %v812_v61 = vpop.f32.mrb[22].mxu0 }
 0x11a   : > { %1163 = vst.msk [vmem:[%s1864_s9 + $0x2a8] sm:$0xff] %vm1078_vm1, %v970_v60  ;;  %v972_v62 = vpop.f32.mrb[22].mxu1  ;;  %1100 = vst [vmem:[%s1864_s9 + $0xb0] sm:$0xff] %v812_v61  ;;  %v814_v63 = vpop.f32.mrb[23].mxu0 }
 0x11b   : > { %1164 = vst [vmem:[%s1864_s9 + $0x2b0] sm:$0xff] %v972_v62  ;;  %v974_v0 = vpop.f32.mrb[23].mxu1  ;;  %1101 = vst.msk [vmem:[%s1864_s9 + $0xb8] sm:$0xff] %vm1078_vm1, %v814_v63 }
 0x11c   : > { %1165 = vst.msk [vmem:[%s1864_s9 + $0x2b8] sm:$0xff] %vm1078_vm1, %v974_v0 }
 0x11f   : > { %v818_v1 = vpop.f32.mrb[24].mxu0 }
 0x120   : > { %v978_v4 = vpop.f32.mrb[24].mxu1  ;;  %1102 = vst [vmem:[%s1864_s9 + $0xc0] sm:$0xff] %v818_v1  ;;  %v820_v5 = vpop.f32.mrb[25].mxu0 }
 0x121   : > { %1166 = vst [vmem:[%s1864_s9 + $0x2c0] sm:$0xff] %v978_v4  ;;  %v980_v6 = vpop.f32.mrb[25].mxu1  ;;  %1103 = vst.msk [vmem:[%s1864_s9 + $0xc8] sm:$0xff] %vm1078_vm1, %v820_v5  ;;  %v822_v7 = vpop.f32.mrb[26].mxu0 }
 0x122   : > { %1167 = vst.msk [vmem:[%s1864_s9 + $0x2c8] sm:$0xff] %vm1078_vm1, %v980_v6  ;;  %v982_v8 = vpop.f32.mrb[26].mxu1  ;;  %1104 = vst [vmem:[%s1864_s9 + $0xd0] sm:$0xff] %v822_v7  ;;  %v824_v9 = vpop.f32.mrb[27].mxu0 }
 0x123   : > { %1168 = vst [vmem:[%s1864_s9 + $0x2d0] sm:$0xff] %v982_v8  ;;  %v984_v10 = vpop.f32.mrb[27].mxu1  ;;  %1105 = vst.msk [vmem:[%s1864_s9 + $0xd8] sm:$0xff] %vm1078_vm1, %v824_v9 }
 0x124   : > { %1169 = vst.msk [vmem:[%s1864_s9 + $0x2d8] sm:$0xff] %vm1078_vm1, %v984_v10 }
 0x127   : > { %v828_v11 = vpop.f32.mrb[28].mxu0 }
 0x128   : > { %v988_v13 = vpop.f32.mrb[28].mxu1  ;;  %1106 = vst [vmem:[%s1864_s9 + $0xe0] sm:$0xff] %v828_v11  ;;  %v830_v3 = vpop.f32.mrb[29].mxu0 }
 0x129   : > { %1170 = vst [vmem:[%s1864_s9 + $0x2e0] sm:$0xff] %v988_v13  ;;  %v990_v14 = vpop.f32.mrb[29].mxu1  ;;  %1107 = vst.msk [vmem:[%s1864_s9 + $0xe8] sm:$0xff] %vm1078_vm1, %v830_v3  ;;  %v832_v15 = vpop.f32.mrb[30].mxu0 }
 0x12a   : > { %1171 = vst.msk [vmem:[%s1864_s9 + $0x2e8] sm:$0xff] %vm1078_vm1, %v990_v14  ;;  %v992_v16 = vpop.f32.mrb[30].mxu1  ;;  %1108 = vst [vmem:[%s1864_s9 + $0xf0] sm:$0xff] %v832_v15  ;;  %v834_v17 = vpop.f32.mrb[31].mxu0 }
 0x12b   : > { %1172 = vst [vmem:[%s1864_s9 + $0x2f0] sm:$0xff] %v992_v16  ;;  %v994_v18 = vpop.f32.mrb[31].mxu1  ;;  %1109 = vst.msk [vmem:[%s1864_s9 + $0xf8] sm:$0xff] %vm1078_vm1, %v834_v17 }
 0x12c   : > { %1173 = vst.msk [vmem:[%s1864_s9 + $0x2f8] sm:$0xff] %vm1078_vm1, %v994_v18 }
 0x12f   : > { %v838_v2 = vpop.f32.mrb[32].mxu0 }
 0x130   : > { %v998_v12 = vpop.f32.mrb[32].mxu1  ;;  %1110 = vst [vmem:[%s1864_s9 + $0x100] sm:$0xff] %v838_v2  ;;  %v840_v19 = vpop.f32.mrb[33].mxu0 }
 0x131   : > { %1174 = vst [vmem:[%s1864_s9 + $0x300] sm:$0xff] %v998_v12  ;;  %v1000_v20 = vpop.f32.mrb[33].mxu1  ;;  %1111 = vst.msk [vmem:[%s1864_s9 + $0x108] sm:$0xff] %vm1078_vm1, %v840_v19  ;;  %v842_v21 = vpop.f32.mrb[34].mxu0 }
 0x132   : > { %1175 = vst.msk [vmem:[%s1864_s9 + $0x308] sm:$0xff] %vm1078_vm1, %v1000_v20  ;;  %v1002_v22 = vpop.f32.mrb[34].mxu1  ;;  %1112 = vst [vmem:[%s1864_s9 + $0x110] sm:$0xff] %v842_v21  ;;  %v844_v23 = vpop.f32.mrb[35].mxu0 }
 0x133   : > { %1176 = vst [vmem:[%s1864_s9 + $0x310] sm:$0xff] %v1002_v22  ;;  %v1004_v24 = vpop.f32.mrb[35].mxu1  ;;  %1113 = vst.msk [vmem:[%s1864_s9 + $0x118] sm:$0xff] %vm1078_vm1, %v844_v23 }
 0x134   : > { %1177 = vst.msk [vmem:[%s1864_s9 + $0x318] sm:$0xff] %vm1078_vm1, %v1004_v24 }
 0x137   : > { %v848_v25 = vpop.f32.mrb[36].mxu0 }
 0x138   : > { %v1008_v26 = vpop.f32.mrb[36].mxu1  ;;  %1114 = vst [vmem:[%s1864_s9 + $0x120] sm:$0xff] %v848_v25  ;;  %v850_v27 = vpop.f32.mrb[37].mxu0 }
 0x139   : > { %1178 = vst [vmem:[%s1864_s9 + $0x320] sm:$0xff] %v1008_v26  ;;  %v1010_v28 = vpop.f32.mrb[37].mxu1  ;;  %1115 = vst.msk [vmem:[%s1864_s9 + $0x128] sm:$0xff] %vm1078_vm1, %v850_v27  ;;  %v852_v29 = vpop.f32.mrb[38].mxu0 }
 0x13a   : > { %1179 = vst.msk [vmem:[%s1864_s9 + $0x328] sm:$0xff] %vm1078_vm1, %v1010_v28  ;;  %v1012_v30 = vpop.f32.mrb[38].mxu1  ;;  %1116 = vst [vmem:[%s1864_s9 + $0x130] sm:$0xff] %v852_v29  ;;  %v854_v31 = vpop.f32.mrb[39].mxu0 }
 0x13b   : > { %1180 = vst [vmem:[%s1864_s9 + $0x330] sm:$0xff] %v1012_v30  ;;  %v1014_v32 = vpop.f32.mrb[39].mxu1  ;;  %1117 = vst.msk [vmem:[%s1864_s9 + $0x138] sm:$0xff] %vm1078_vm1, %v854_v31 }
 0x13c   : > { %1181 = vst.msk [vmem:[%s1864_s9 + $0x338] sm:$0xff] %vm1078_vm1, %v1014_v32 }
 0x13f   : > { %v858_v33 = vpop.f32.mrb[40].mxu0 }
 0x140   : > { %v1018_v34 = vpop.f32.mrb[40].mxu1  ;;  %1118 = vst [vmem:[%s1864_s9 + $0x140] sm:$0xff] %v858_v33  ;;  %v860_v35 = vpop.f32.mrb[41].mxu0 }
 0x141   : > { %1182 = vst [vmem:[%s1864_s9 + $0x340] sm:$0xff] %v1018_v34  ;;  %v1020_v36 = vpop.f32.mrb[41].mxu1  ;;  %1119 = vst.msk [vmem:[%s1864_s9 + $0x148] sm:$0xff] %vm1078_vm1, %v860_v35  ;;  %v862_v37 = vpop.f32.mrb[42].mxu0 }
 0x142   : > { %1183 = vst.msk [vmem:[%s1864_s9 + $0x348] sm:$0xff] %vm1078_vm1, %v1020_v36  ;;  %v1022_v38 = vpop.f32.mrb[42].mxu1  ;;  %1120 = vst [vmem:[%s1864_s9 + $0x150] sm:$0xff] %v862_v37  ;;  %v864_v39 = vpop.f32.mrb[43].mxu0 }
 0x143   : > { %1184 = vst [vmem:[%s1864_s9 + $0x350] sm:$0xff] %v1022_v38  ;;  %v1024_v40 = vpop.f32.mrb[43].mxu1  ;;  %1121 = vst.msk [vmem:[%s1864_s9 + $0x158] sm:$0xff] %vm1078_vm1, %v864_v39 }
 0x144   : > { %1185 = vst.msk [vmem:[%s1864_s9 + $0x358] sm:$0xff] %vm1078_vm1, %v1024_v40 }
 0x147   : > { %v868_v41 = vpop.f32.mrb[44].mxu0 }
 0x148   : > { %v1028_v42 = vpop.f32.mrb[44].mxu1  ;;  %1122 = vst [vmem:[%s1864_s9 + $0x160] sm:$0xff] %v868_v41  ;;  %v870_v43 = vpop.f32.mrb[45].mxu0 }
 0x149   : > { %1186 = vst [vmem:[%s1864_s9 + $0x360] sm:$0xff] %v1028_v42  ;;  %v1030_v44 = vpop.f32.mrb[45].mxu1  ;;  %1123 = vst.msk [vmem:[%s1864_s9 + $0x168] sm:$0xff] %vm1078_vm1, %v870_v43  ;;  %v872_v45 = vpop.f32.mrb[46].mxu0 }
 0x14a   : > { %1187 = vst.msk [vmem:[%s1864_s9 + $0x368] sm:$0xff] %vm1078_vm1, %v1030_v44  ;;  %v1032_v46 = vpop.f32.mrb[46].mxu1  ;;  %1124 = vst [vmem:[%s1864_s9 + $0x170] sm:$0xff] %v872_v45  ;;  %v874_v47 = vpop.f32.mrb[47].mxu0 }
 0x14b   : > { %1188 = vst [vmem:[%s1864_s9 + $0x370] sm:$0xff] %v1032_v46  ;;  %v1034_v48 = vpop.f32.mrb[47].mxu1  ;;  %1125 = vst.msk [vmem:[%s1864_s9 + $0x178] sm:$0xff] %vm1078_vm1, %v874_v47 }
 0x14c   : > { %1189 = vst.msk [vmem:[%s1864_s9 + $0x378] sm:$0xff] %vm1078_vm1, %v1034_v48 }
 0x14f   : > { %v878_v49 = vpop.f32.mrb[48].mxu0 }
 0x150   : > { %v1038_v50 = vpop.f32.mrb[48].mxu1  ;;  %1126 = vst [vmem:[%s1864_s9 + $0x180] sm:$0xff] %v878_v49  ;;  %v880_v51 = vpop.f32.mrb[49].mxu0 }
 0x151   : > { %1190 = vst [vmem:[%s1864_s9 + $0x380] sm:$0xff] %v1038_v50  ;;  %v1040_v52 = vpop.f32.mrb[49].mxu1  ;;  %1127 = vst.msk [vmem:[%s1864_s9 + $0x188] sm:$0xff] %vm1078_vm1, %v880_v51  ;;  %v882_v53 = vpop.f32.mrb[50].mxu0 }
 0x152   : > { %1191 = vst.msk [vmem:[%s1864_s9 + $0x388] sm:$0xff] %vm1078_vm1, %v1040_v52  ;;  %v1042_v54 = vpop.f32.mrb[50].mxu1  ;;  %1128 = vst [vmem:[%s1864_s9 + $0x190] sm:$0xff] %v882_v53  ;;  %v884_v55 = vpop.f32.mrb[51].mxu0 }
 0x153   : > { %1192 = vst [vmem:[%s1864_s9 + $0x390] sm:$0xff] %v1042_v54  ;;  %v1044_v56 = vpop.f32.mrb[51].mxu1  ;;  %1129 = vst.msk [vmem:[%s1864_s9 + $0x198] sm:$0xff] %vm1078_vm1, %v884_v55 }
 0x154   : > { %1193 = vst.msk [vmem:[%s1864_s9 + $0x398] sm:$0xff] %vm1078_vm1, %v1044_v56 }
 0x157   : > { %v888_v57 = vpop.f32.mrb[52].mxu0 }
 0x158   : > { %v1048_v58 = vpop.f32.mrb[52].mxu1  ;;  %1130 = vst [vmem:[%s1864_s9 + $0x1a0] sm:$0xff] %v888_v57  ;;  %v890_v59 = vpop.f32.mrb[53].mxu0 }
 0x159   : > { %1194 = vst [vmem:[%s1864_s9 + $0x3a0] sm:$0xff] %v1048_v58  ;;  %v1050_v60 = vpop.f32.mrb[53].mxu1  ;;  %1131 = vst.msk [vmem:[%s1864_s9 + $0x1a8] sm:$0xff] %vm1078_vm1, %v890_v59  ;;  %v892_v61 = vpop.f32.mrb[54].mxu0 }
 0x15a   : > { %1195 = vst.msk [vmem:[%s1864_s9 + $0x3a8] sm:$0xff] %vm1078_vm1, %v1050_v60  ;;  %v1052_v62 = vpop.f32.mrb[54].mxu1  ;;  %1132 = vst [vmem:[%s1864_s9 + $0x1b0] sm:$0xff] %v892_v61  ;;  %v894_v63 = vpop.f32.mrb[55].mxu0 }
 0x15b   : > { %1196 = vst [vmem:[%s1864_s9 + $0x3b0] sm:$0xff] %v1052_v62  ;;  %v1054_v0 = vpop.f32.mrb[55].mxu1  ;;  %1133 = vst.msk [vmem:[%s1864_s9 + $0x1b8] sm:$0xff] %vm1078_vm1, %v894_v63 }
 0x15c   : > { %1197 = vst.msk [vmem:[%s1864_s9 + $0x3b8] sm:$0xff] %vm1078_vm1, %v1054_v0 }
 0x15f   : > { %v898_v1 = vpop.f32.mrb[56].mxu0 }
 0x160   : > { %v1058_v4 = vpop.f32.mrb[56].mxu1  ;;  %1134 = vst [vmem:[%s1864_s9 + $0x1c0] sm:$0xff] %v898_v1  ;;  %v900_v5 = vpop.f32.mrb[57].mxu0 }
 0x161   : > { %1198 = vst [vmem:[%s1864_s9 + $0x3c0] sm:$0xff] %v1058_v4  ;;  %v1060_v6 = vpop.f32.mrb[57].mxu1  ;;  %1135 = vst.msk [vmem:[%s1864_s9 + $0x1c8] sm:$0xff] %vm1078_vm1, %v900_v5  ;;  %v902_v7 = vpop.f32.mrb[58].mxu0 }
 0x162   : > { %1199 = vst.msk [vmem:[%s1864_s9 + $0x3c8] sm:$0xff] %vm1078_vm1, %v1060_v6  ;;  %v1062_v8 = vpop.f32.mrb[58].mxu1  ;;  %1136 = vst [vmem:[%s1864_s9 + $0x1d0] sm:$0xff] %v902_v7  ;;  %v904_v9 = vpop.f32.mrb[59].mxu0 }
 0x163   : > { %1200 = vst [vmem:[%s1864_s9 + $0x3d0] sm:$0xff] %v1062_v8  ;;  %v1064_v10 = vpop.f32.mrb[59].mxu1  ;;  %1137 = vst.msk [vmem:[%s1864_s9 + $0x1d8] sm:$0xff] %vm1078_vm1, %v904_v9 }
 0x164   : > { %1201 = vst.msk [vmem:[%s1864_s9 + $0x3d8] sm:$0xff] %vm1078_vm1, %v1064_v10 }
 0x167   : > { %v908_v11 = vpop.f32.mrb[60].mxu0 }
 0x168   : > { %v1068_v13 = vpop.f32.mrb[60].mxu1  ;;  %1138 = vst [vmem:[%s1864_s9 + $0x1e0] sm:$0xff] %v908_v11  ;;  %v910_v3 = vpop.f32.mrb[61].mxu0 }
 0x169   : > { %1202 = vst [vmem:[%s1864_s9 + $0x3e0] sm:$0xff] %v1068_v13  ;;  %v1070_v14 = vpop.f32.mrb[61].mxu1  ;;  %1139 = vst.msk [vmem:[%s1864_s9 + $0x1e8] sm:$0xff] %vm1078_vm1, %v910_v3  ;;  %v912_v15 = vpop.f32.mrb[62].mxu0 }
 0x16a   : > { %1203 = vst.msk [vmem:[%s1864_s9 + $0x3e8] sm:$0xff] %vm1078_vm1, %v1070_v14  ;;  %v1072_v16 = vpop.f32.mrb[62].mxu1  ;;  %1140 = vst [vmem:[%s1864_s9 + $0x1f0] sm:$0xff] %v912_v15  ;;  %v914_v17 = vpop.f32.mrb[63].mxu0 }
 0x16b   : > { %1204 = vst [vmem:[%s1864_s9 + $0x3f0] sm:$0xff] %v1072_v16  ;;  %v1074_v18 = vpop.f32.mrb[63].mxu1  ;;  %1141 = vst.msk [vmem:[%s1864_s9 + $0x1f8] sm:$0xff] %vm1078_vm1, %v914_v17 }
 0x16c   : > { %1205 = vst.msk [vmem:[%s1864_s9 + $0x3f8] sm:$0xff] %vm1078_vm1, %v1074_v18 }
 0x16d PF: > { %s14_s17 = sadd.s32 1, %s1566_s17   ;;  %s2072_s15 = smov %s1562_s16 }
 0x16e   : > { %p11_p5 = scmp.ge.s32.totalorder %s14_s17, 4   ;;  %s2073_s16 = smov %s2075_s18 }
 0x170   :  { %13 = sbr.rel (!%p11_p5) target bundleno = 2 (0x2), region = 69 }

// kernel: generator_forward.19
= control target key start
LH: loop header
LB: loop body
LE: loop exit
PB: predicated region body
PF: predicated region fallthrough
CT: control target
= control target key end

     0   :  { %v14_v0 = vlaneseq  ;;  %v272_v2 = vmov 0.0   ;;  %s370_s1 = inlined_call_operand.vmem [shape: f32[1,256], index: 1, kind: output, shape index: {0}]   ;;  %s371_s2 = inlined_call_operand.vmem [shape: f32[1,256], index: 2, kind: output, shape index: {1}]   ;;  %s372_s0 = inlined_call_operand.vmem [shape: bf16[128,256], index: 0, kind: input, shape index: {}]  }
   0x1   :  { %v20_v3 = vld [vmem:[%s372_s0] sm:$0xff]  ;;  %v21_v4 = vld [vmem:[%s372_s0 + $0x8] sm:$0xff]  ;;  %v22_v5 = vld [vmem:[%s372_s0 + $0x10] sm:$0xff] }
   0x2   :  { %vm291_vm0 = vcmp.lt.s32.totalorder %v14_v0, 256  ;;  %v36_v6 = vunpack.c.l.bf16 %v20_v3  ;;  %v37_v7 = vunpack.c.h.bf16 %v20_v3  ;;  %v38_v8 = vunpack.c.l.bf16 %v21_v4  ;;  %v23_v10 = vld [vmem:[%s372_s0 + $0x18] sm:$0xff]  ;;  %v24_v15 = vld [vmem:[%s372_s0 + $0x20] sm:$0xff]  ;;  %v25_v20 = vld [vmem:[%s372_s0 + $0x28] sm:$0xff] }
   0x3   :  { %18 = vst.msk [vmem:[%s370_s1] sm:$0x3] %vm291_vm0, %v272_v2  ;;  %19 = vst.msk [vmem:[%s371_s2] sm:$0x3] %vm291_vm0, %v272_v2  ;;  %v39_v9 = vunpack.c.h.bf16 %v21_v4  ;;  %v40_v11 = vunpack.c.l.bf16 %v22_v5  ;;  %v41_v12 = vunpack.c.h.bf16 %v22_v5  ;;  %v42_v16 = vunpack.c.l.bf16 %v23_v10  ;;  %v26_v21 = vld [vmem:[%s372_s0 + $0x30] sm:$0xff]  ;;  %v27_v26 = vld [vmem:[%s372_s0 + $0x38] sm:$0xff] }
   0x4   :  { %v69_v13 = vadd.f32 %v38_v8, %v36_v6  ;;  %v43_v17 = vunpack.c.h.bf16 %v23_v10  ;;  %v44_v22 = vunpack.c.l.bf16 %v24_v15  ;;  %v45_v23 = vunpack.c.h.bf16 %v24_v15  ;;  %v28_v33 = vld [vmem:[%s372_s0 + $0x40] sm:$0xff]  ;;  %v29_v38 = vld [vmem:[%s372_s0 + $0x48] sm:$0xff]  ;;  %v30_v43 = vld [vmem:[%s372_s0 + $0x50] sm:$0xff] }
   0x5   :  { %v90_v14 = vadd.f32 %v39_v9, %v37_v7  ;;  %v46_v27 = vunpack.c.l.bf16 %v25_v20  ;;  %v47_v28 = vunpack.c.h.bf16 %v25_v20  ;;  %v48_v31 = vunpack.c.l.bf16 %v26_v21  ;;  %v31_v48 = vld [vmem:[%s372_s0 + $0x58] sm:$0xff]  ;;  %v32_v53 = vld [vmem:[%s372_s0 + $0x60] sm:$0xff]  ;;  %v33_v58 = vld [vmem:[%s372_s0 + $0x68] sm:$0xff] }
   0x6   :  { %v70_v18 = vadd.f32 %v69_v13, %v40_v11  ;;  %v49_v32 = vunpack.c.h.bf16 %v26_v21  ;;  %v50_v36 = vunpack.c.l.bf16 %v27_v26  ;;  %v51_v37 = vunpack.c.h.bf16 %v27_v26  ;;  %v34_v63 = vld [vmem:[%s372_s0 + $0x70] sm:$0xff]  ;;  %v35_v6 = vld [vmem:[%s372_s0 + $0x78] sm:$0xff] }
   0x7   :  { %v91_v19 = vadd.f32 %v90_v14, %v41_v12  ;;  %v52_v41 = vunpack.c.l.bf16 %v28_v33  ;;  %v53_v42 = vunpack.c.h.bf16 %v28_v33  ;;  %240 = vmul.bf16.f32.vacc0 %v20_v3, %v20_v3 }
   0x8   :  { %v71_v24 = vadd.f32 %v70_v18, %v42_v16  ;;  %241 = vmac.bf16.f32.vacc0 %v21_v4, %v21_v4  ;;  %v54_v46 = vunpack.c.l.bf16 %v29_v38  ;;  %v55_v47 = vunpack.c.h.bf16 %v29_v38 }
   0x9   :  { %v92_v25 = vadd.f32 %v91_v19, %v43_v17  ;;  %242 = vmac.bf16.f32.vacc0 %v22_v5, %v22_v5  ;;  %v56_v51 = vunpack.c.l.bf16 %v30_v43  ;;  %v57_v52 = vunpack.c.h.bf16 %v30_v43 }
   0xa   :  { %v72_v29 = vadd.f32 %v71_v24, %v44_v22  ;;  %243 = vmac.bf16.f32.vacc0 %v23_v10, %v23_v10  ;;  %v58_v56 = vunpack.c.l.bf16 %v31_v48  ;;  %v59_v57 = vunpack.c.h.bf16 %v31_v48 }
   0xb   :  { %v93_v30 = vadd.f32 %v92_v25, %v45_v23  ;;  %244 = vmac.bf16.f32.vacc0 %v24_v15, %v24_v15  ;;  %v60_v61 = vunpack.c.l.bf16 %v32_v53  ;;  %v61_v62 = vunpack.c.h.bf16 %v32_v53 }
   0xc   :  { %v73_v34 = vadd.f32 %v72_v29, %v46_v27  ;;  %245 = vmac.bf16.f32.vacc0 %v25_v20, %v25_v20  ;;  %v62_v4 = vunpack.c.l.bf16 %v33_v58  ;;  %v63_v5 = vunpack.c.h.bf16 %v33_v58 }
   0xd   :  { %v94_v35 = vadd.f32 %v93_v30, %v47_v28  ;;  %246 = vmac.bf16.f32.vacc0 %v26_v21, %v26_v21  ;;  %v64_v9 = vunpack.c.l.bf16 %v34_v63  ;;  %v65_v10 = vunpack.c.h.bf16 %v34_v63 }
   0xe   :  { %v74_v39 = vadd.f32 %v73_v34, %v48_v31  ;;  %247 = vmac.bf16.f32.vacc0 %v27_v26, %v27_v26  ;;  %v66_v13 = vunpack.c.l.bf16 %v35_v6  ;;  %v67_v14 = vunpack.c.h.bf16 %v35_v6 }
   0xf   :  { %v95_v40 = vadd.f32 %v94_v35, %v49_v32  ;;  %248 = vmac.bf16.f32.vacc0 %v28_v33, %v28_v33  ;;  %v273_v22 = vmov 1966171168   ;;  %v118_v28 = vshrl.u32 %v14_v0, 7 }
  0x10   :  { %v75_v44 = vadd.f32 %v74_v39, %v50_v36  ;;  %249 = vmac.bf16.f32.vacc0 %v29_v38, %v29_v38  ;;  %v115_v23 = vunpack.c.l.s4 %v273_v22 }
  0x11   :  { %v96_v45 = vadd.f32 %v95_v40, %v51_v37  ;;  %250 = vmac.bf16.f32.vacc0 %v30_v43, %v30_v43  ;;  %v274_v40 = vmov 1935823168  }
  0x12   :  { %v76_v49 = vadd.f32 %v75_v44, %v52_v41  ;;  %251 = vmac.bf16.f32.vacc0 %v31_v48, %v31_v48  ;;  %v116_v26 = vunpack.c.0.s8 %v115_v23  ;;  %v260_v41 = vunpack.c.l.s4 %v274_v40 }
  0x13   :  { %v97_v50 = vadd.f32 %v96_v45, %v53_v42  ;;  %252 = vmac.bf16.f32.vacc0 %v32_v53, %v32_v53 }
  0x14   :  { %v77_v54 = vadd.f32 %v76_v49, %v54_v46  ;;  %253 = vmac.bf16.f32.vacc0 %v33_v58, %v33_v58  ;;  %v119_v33 = vsub.s32 %v116_v26, %v118_v28  ;;  %v261_v42 = vunpack.c.0.s8 %v260_v41 }
  0x15   :  { %v98_v55 = vadd.f32 %v97_v50, %v55_v47  ;;  %254 = vmac.bf16.f32.vacc0 %v34_v63, %v34_v63 }
  0x16   :  { %v78_v59 = vadd.f32 %v77_v54, %v56_v51  ;;  %255 = vmac.bf16.f32.vacc0 %v35_v6, %v35_v6  ;;  %v264_v43 = vsub.s32 %v261_v42, %v118_v28  ;;  %v68_v51 = vld [vmem:[%s370_s1] sm:$0x3] }
  0x17   :  { %v99_v60 = vadd.f32 %v98_v55, %v57_v52 }
  0x18   :  { %v79_v2 = vadd.f32 %v78_v59, %v58_v56  ;;  %v256_v36 = vmovacc.add.low.vacc0 }
  0x19   :  { %v100_v3 = vadd.f32 %v99_v60, %v59_v57  ;;  %v257_v37 = vmovacc.add.high.vacc0 }
  0x1a   :  { %v80_v7 = vadd.f32 %v79_v2, %v60_v61  ;;  %v135_v2 = vld [vmem:[%s371_s2] sm:$0x3] }
  0x1b   :  { %v101_v8 = vadd.f32 %v100_v3, %v61_v62  ;;  %v258_v38 = vcombine.low %v256_v36, %v257_v37  ;;  %v259_v39 = vcombine.high %v256_v36, %v257_v37 }
  0x1c   :  { %v81_v11 = vadd.f32 %v80_v7, %v62_v4 }
  0x1d   :  { %v102_v12 = vadd.f32 %v101_v8, %v63_v5  ;;  %v265_v44 = vrot.slane %v258_v38, %v264_v43  ;;  %v271_v0 = vrot.slane %v259_v39, %v264_v43 }
  0x1e   :  { %v82_v15 = vadd.f32 %v81_v11, %v64_v9 }
  0x1f   :  { %v103_v16 = vadd.f32 %v102_v12, %v65_v10  ;;  %v183_v46 = vrot.slane %v265_v44, 4  ;;  %v204_v47 = vrot.slane %v271_v0, 4 }
  0x20   :  { %v83_v17 = vadd.f32 %v82_v15, %v66_v13 }
  0x21   :  { %v104_v18 = vadd.f32 %v103_v16, %v67_v14  ;;  %v184_v49 = vadd.f32 %v265_v44, %v183_v46  ;;  %v205_v50 = vadd.f32 %v271_v0, %v204_v47 }
  0x22   :  { %v84_v19 = vrot.slane %v83_v17, 4 }
  0x23   :  { %v105_v20 = vrot.slane %v104_v18, 4  ;;  %v185_v53 = vrot.slane %v184_v49, 2  ;;  %v206_v54 = vrot.slane %v205_v50, 2 }
  0x24   :  { %v85_v24 = vadd.f32 %v84_v19, %v83_v17 }
  0x25   :  { %v106_v21 = vadd.f32 %v105_v20, %v104_v18  ;;  %v186_v56 = vadd.f32 %v185_v53, %v184_v49  ;;  %v207_v57 = vadd.f32 %v206_v54, %v205_v50 }
  0x26   :  { %v86_v25 = vrot.slane %v85_v24, 2 }
  0x27   :  { %v107_v27 = vrot.slane %v106_v21, 2  ;;  %v187_v58 = vrot.slane %v186_v56, 1  ;;  %v208_v59 = vrot.slane %v207_v57, 1 }
  0x28   :  { %v87_v29 = vadd.f32 %v86_v25, %v85_v24 }
  0x29   :  { %v108_v30 = vadd.f32 %v107_v27, %v106_v21  ;;  %v188_v60 = vadd.f32 %v187_v58, %v186_v56  ;;  %v209_v61 = vadd.f32 %v208_v59, %v207_v57 }
  0x2a   :  { %v88_v31 = vrot.slane %v87_v29, 1 }
  0x2b   :  { %v109_v32 = vrot.slane %v108_v30, 1  ;;  %v212_v62 = vcombine.low %v188_v60, %v209_v61 }
  0x2c   :  { %v89_v34 = vadd.f32 %v88_v31, %v87_v29 }
  0x2d   :  { %v110_v35 = vadd.f32 %v109_v32, %v108_v30  ;;  %v219_v63 = vrot.slane %v212_v62, %v119_v33 }
  0x2f   :  { %v113_v45 = vcombine.low %v89_v34, %v110_v35  ;;  %v226_v3 = vrot.slane %v219_v63, %v119_v33 }
  0x31   :  { %v120_v48 = vrot.slane %v113_v45, %v119_v33  ;;  %v228_v4 = vadd.f32 %v226_v3, %v135_v2 }
  0x33   :  { %v127_v52 = vrot.slane %v120_v48, %v119_v33  ;;  %229 = vst.msk [vmem:[%s371_s2] sm:$0x3] %vm291_vm0, %v228_v4 }
  0x35   :  { %v129_v55 = vadd.f32 %v127_v52, %v68_v51 }
  0x37   :  { %134 = vst.msk [vmem:[%s370_s1] sm:$0x3] %vm291_vm0, %v129_v55 }

// kernel: generator_forward.20
= control target key start
LH: loop header
LB: loop body
LE: loop exit
PB: predicated region body
PF: predicated region fallthrough
CT: control target
= control target key end

     0   :  { %s1531_s15 = smov 0   ;;  %s1533_s16 = smov 0   ;;  %s1841_s0 = inlined_call_operand.vmem [shape: bf16[4096,8], index: 0, kind: input, shape index: {}]   ;;  %s1842_s1 = inlined_call_operand.vmem [shape: f32[1,8], index: 1, kind: input, shape index: {}]   ;;  %s1843_s2 = inlined_call_operand.vmem [shape: f32[1,8], index: 2, kind: input, shape index: {}]   ;;  %s1844_s3 = inlined_call_operand.vmem [shape: bf16[8,128], index: 3, kind: input, shape index: {}]   ;;  %s1845_s4 = inlined_call_operand.vmem [shape: f32[4096,128], index: 4, kind: output, shape index: {}]  }
   0x1   :  { %s1535_s17 = smov 0  }
   0x2 LB: > { %s23_s18 = sadd.s32 1, %s1500_s16  ;;  %p1155_p0 = scmp.ge.s32.totalorder %s1504_s17, 1  ;;  %s1504_s17 = sphi %s1535_s17, %s14_s17   ;;  %s1500_s16 = sphi %s1533_s16, %s1847_s16   ;;  %s1496_s15 = sphi %s1531_s15, %s1846_s15  }
   0x3   : > { %p24_p1 = scmp.ge.s32.totalorder %s23_s18, 8  ;;  %p186_p2 = scmp.lt.s32.totalorder %s1504_s17, 9 }
   0x5   : > { %s1849_s18 = smov (%p24_p1, %s23_s18), 0  ;;  %p187_p3 = pnand %p1155_p0, %p186_p2 }
   0x6   : > { %v605_v0 = vld [vmem:[%s1844_s3] sm:$0xf] (!%p187_p3)  ;;  %vm703_vm0 = vcmask (!%p187_p3), 1043456   ;;  %s1156_s21 = sshll.u32 (!%p187_p3), %s1496_s15, 6  ;;  %vm606_vm1 = vcmask (!%p187_p3), 64512  }
   0x7   : > { %190 = sbr.rel (%p187_p3) target bundleno = 311 (0x137), region = 36  ;;  %1456 = vmatprep.subr.msk.bf16.mxu0 (!%p187_p3), %vm703_vm0, %v605_v0  ;;  %1457 = vmatprep.subr.msk.bf16.mxu1 (!%p187_p3), %vm703_vm0, %v605_v0  ;;  %v705_v1 = vsel (!%p187_p3), %vm703_vm0, %v605_v0, 0  ;;  %p220_p4 = scmp.lt.s32.totalorder (!%p187_p3), %s1156_s21, 511  ;;  %v1563_v2 = vld [vmem:[%s1842_s1] ss:$0 sm:$0xff] (!%p187_p3) }
   0x8   : > { %1389 = vmatpush3.bf16.msra.mxu0 (!%p187_p3), %v705_v1  ;;  %1455 = vmatpush3.bf16.msra.mxu1 (!%p187_p3), %v705_v1  ;;  %v1572_v11 = vld [vmem:[%s1843_s2] ss:$0 sm:$0xff] (!%p187_p3) }
   0xe   : > { %s1851_s21 = smov (!%p220_p4, %s1156_s21), 511 }
   0xf   : > { %s1157_s22 = sshll.u32 %s1851_s21, 2  ;;  %s1159_s30 = sshll.u32 %s1851_s21, 3 }
  0x10   : > { %s1558_s25 = scalar_lea.vmem %s1841_s0, %s1157_s22  ;;  %s1766_s7 = scalar_lea.vmem %s1845_s4, %s1159_s30 }
  0x11   : > { %v1197_v3 = vld [vmem:[%s1558_s25] sm:$0xff]   ;;  %v1324_v5 = vld [vmem:[%s1558_s25 + $0x8] sm:$0xff]   ;;  %v1325_v32 = vld [vmem:[%s1558_s25 + $0x10] sm:$0xff]  }
  0x12   : > { %v1339_v4 = vld [vmem:[%s1558_s25 + $0x80] sm:$0xff]   ;;  %v1198_v6 = vunpack.c.l.bf16 %v1197_v3  ;;  %v1199_v7 = vunpack.c.h.bf16 %v1197_v3  ;;  %v1340_v10 = vld [vmem:[%s1558_s25 + $0x88] sm:$0xff]   ;;  %v1202_v12 = vunpack.c.l.bf16 %v1324_v5  ;;  %v1203_v13 = vunpack.c.h.bf16 %v1324_v5  ;;  %v1341_v37 = vld [vmem:[%s1558_s25 + $0x90] sm:$0xff]  }
  0x13   : > { %v1262_v8 = vunpack.c.l.bf16 %v1339_v4  ;;  %v1263_v9 = vunpack.c.h.bf16 %v1339_v4  ;;  %v1266_v14 = vunpack.c.l.bf16 %v1340_v10  ;;  %v1267_v15 = vunpack.c.h.bf16 %v1340_v10  ;;  %v1326_v42 = vld [vmem:[%s1558_s25 + $0x18] sm:$0xff]   ;;  %v1327_v5 = vld [vmem:[%s1558_s25 + $0x20] sm:$0xff]  }
  0x14   : > { %v374_v16 = vmul.f32 %v1198_v6, %v1563_v2  ;;  %v375_v17 = vmul.f32 %v1199_v7, %v1563_v2  ;;  %v376_v20 = vmul.f32 %v1202_v12, %v1563_v2  ;;  %v377_v21 = vmul.f32 %v1203_v13, %v1563_v2  ;;  %v1342_v47 = vld [vmem:[%s1558_s25 + $0x98] sm:$0xff]  }
  0x15   : > { %v406_v18 = vmul.f32 %v1262_v8, %v1563_v2  ;;  %v407_v19 = vmul.f32 %v1263_v9, %v1563_v2  ;;  %v408_v22 = vmul.f32 %v1266_v14, %v1563_v2  ;;  %v409_v23 = vmul.f32 %v1267_v15, %v1563_v2  ;;  %v1343_v15 = vld [vmem:[%s1558_s25 + $0xa0] sm:$0xff]  }
  0x16   : > { %v445_v24 = vadd.f32 %v1572_v11, %v374_v16  ;;  %v446_v25 = vadd.f32 %v1572_v11, %v375_v17  ;;  %v447_v28 = vadd.f32 %v1572_v11, %v376_v20  ;;  %v448_v29 = vadd.f32 %v1572_v11, %v377_v21  ;;  %v1328_v20 = vld [vmem:[%s1558_s25 + $0x28] sm:$0xff]  }
  0x17   : > { %v477_v26 = vadd.f32 %v1572_v11, %v406_v18  ;;  %v478_v27 = vadd.f32 %v1572_v11, %v407_v19  ;;  %v479_v30 = vadd.f32 %v1572_v11, %v408_v22  ;;  %v480_v31 = vadd.f32 %v1572_v11, %v409_v23 }
  0x18   : > { %v509_v33 = vmax.f32 %v445_v24, 0.0  ;;  %v510_v34 = vmax.f32 %v446_v25, 0.0  ;;  %v511_v38 = vmax.f32 %v447_v28, 0.0  ;;  %v512_v39 = vmax.f32 %v448_v29, 0.0  ;;  %v1344_v25 = vld [vmem:[%s1558_s25 + $0xa8] sm:$0xff]  }
  0x19   : > { %v541_v35 = vmax.f32 %v477_v26, 0.0  ;;  %v542_v36 = vmax.f32 %v478_v27, 0.0  ;;  %v543_v40 = vmax.f32 %v479_v30, 0.0  ;;  %v544_v41 = vmax.f32 %v480_v31, 0.0 }
  0x1a   : > { %v573_v43 = vpack.c.bf16 %v510_v34, %v509_v33  ;;  %v1206_v45 = vunpack.c.l.bf16 %v1325_v32  ;;  %v1207_v46 = vunpack.c.h.bf16 %v1325_v32  ;;  %v574_v48 = vpack.c.bf16 %v512_v39, %v511_v38 }
  0x1b   : > { %v589_v44 = vpack.c.bf16 %v542_v36, %v541_v35  ;;  %v590_v49 = vpack.c.bf16 %v544_v41, %v543_v40  ;;  %v1270_v50 = vunpack.c.l.bf16 %v1341_v37  ;;  %v1271_v51 = vunpack.c.h.bf16 %v1341_v37 }
  0x1c   : > { %1390 = vmatprep.mubr.msk.bf16.mxu0 %vm606_vm1, %v573_v43  ;;  %v378_v52 = vmul.f32 %v1206_v45, %v1563_v2  ;;  %v379_v53 = vmul.f32 %v1207_v46, %v1563_v2  ;;  %v1210_v54 = vunpack.c.l.bf16 %v1326_v42  ;;  %v1211_v55 = vunpack.c.h.bf16 %v1326_v42  ;;  %v1329_v42 = vld [vmem:[%s1558_s25 + $0x30] sm:$0xff]  }
  0x1d   : > { %1422 = vmatprep.mubr.msk.bf16.mxu1 %vm606_vm1, %v589_v44  ;;  %1391 = vmatmul.mubr.msk.bf16.vlgmr.msra.gmra.mrb[0].mxu0 %vm606_vm1, %v574_v48  ;;  %v410_v56 = vmul.f32 %v1270_v50, %v1563_v2  ;;  %v411_v57 = vmul.f32 %v1271_v51, %v1563_v2  ;;  %v1274_v58 = vunpack.c.l.bf16 %v1342_v47  ;;  %v1275_v59 = vunpack.c.h.bf16 %v1342_v47 }
  0x1e   : > { %1423 = vmatmul.mubr.msk.bf16.vlgmr.msra.gmra.mrb[0].mxu1 %vm606_vm1, %v590_v49  ;;  %v449_v60 = vadd.f32 %v1572_v11, %v378_v52  ;;  %v450_v61 = vadd.f32 %v1572_v11, %v379_v53  ;;  %v380_v62 = vmul.f32 %v1210_v54, %v1563_v2  ;;  %v381_v63 = vmul.f32 %v1211_v55, %v1563_v2  ;;  %v1345_v55 = vld [vmem:[%s1558_s25 + $0xb0] sm:$0xff]  }
  0x1f   : > { %v481_v0 = vadd.f32 %v1572_v11, %v410_v56  ;;  %v482_v1 = vadd.f32 %v1572_v11, %v411_v57  ;;  %v412_v3 = vmul.f32 %v1274_v58, %v1563_v2  ;;  %v413_v4 = vmul.f32 %v1275_v59, %v1563_v2 }
  0x20   : > { %v513_v6 = vmax.f32 %v449_v60, 0.0  ;;  %v514_v7 = vmax.f32 %v450_v61, 0.0  ;;  %v451_v8 = vadd.f32 %v1572_v11, %v380_v62  ;;  %v452_v9 = vadd.f32 %v1572_v11, %v381_v63  ;;  %v1330_v60 = vld [vmem:[%s1558_s25 + $0x38] sm:$0xff]  }
  0x21   : > { %v545_v10 = vmax.f32 %v481_v0, 0.0  ;;  %v546_v12 = vmax.f32 %v482_v1, 0.0  ;;  %v483_v13 = vadd.f32 %v1572_v11, %v412_v3  ;;  %v484_v14 = vadd.f32 %v1572_v11, %v413_v4  ;;  %v1346_v1 = vld [vmem:[%s1558_s25 + $0xb8] sm:$0xff]  }
  0x22   : > { %v575_v16 = vpack.c.bf16 %v514_v7, %v513_v6  ;;  %v515_v17 = vmax.f32 %v451_v8, 0.0  ;;  %v516_v18 = vmax.f32 %v452_v9, 0.0  ;;  %v1214_v19 = vunpack.c.l.bf16 %v1327_v5 }
  0x23   : > { %v591_v21 = vpack.c.bf16 %v546_v12, %v545_v10  ;;  %v547_v22 = vmax.f32 %v483_v13, 0.0  ;;  %v548_v23 = vmax.f32 %v484_v14, 0.0  ;;  %v1215_v24 = vunpack.c.h.bf16 %v1327_v5 }
  0x24   : > { %1394 = vmatprep.mubr.msk.bf16.mxu0 %vm606_vm1, %v575_v16  ;;  %v576_v26 = vpack.c.bf16 %v516_v18, %v515_v17  ;;  %v382_v27 = vmul.f32 %v1214_v19, %v1563_v2  ;;  %v1278_v28 = vunpack.c.l.bf16 %v1343_v15  ;;  %v1279_v29 = vunpack.c.h.bf16 %v1343_v15  ;;  %v1331_v16 = vld [vmem:[%s1558_s25 + $0x40] sm:$0xff]  }
  0x25   : > { %1426 = vmatprep.mubr.msk.bf16.mxu1 %vm606_vm1, %v591_v21  ;;  %v592_v30 = vpack.c.bf16 %v548_v23, %v547_v22  ;;  %v383_v31 = vmul.f32 %v1215_v24, %v1563_v2  ;;  %v1218_v32 = vunpack.c.l.bf16 %v1328_v20  ;;  %v1219_v33 = vunpack.c.h.bf16 %v1328_v20 }
  0x26   : > { %1395 = vmatmul.mubr.msk.bf16.gmra.mrb[4].mxu0 %vm606_vm1, %v576_v26  ;;  %v453_v34 = vadd.f32 %v1572_v11, %v382_v27  ;;  %v414_v35 = vmul.f32 %v1278_v28, %v1563_v2  ;;  %v415_v36 = vmul.f32 %v1279_v29, %v1563_v2  ;;  %v1282_v37 = vunpack.c.l.bf16 %v1344_v25 }
  0x27   : > { %1427 = vmatmul.mubr.msk.bf16.gmra.mrb[4].mxu1 %vm606_vm1, %v592_v30  ;;  %v454_v38 = vadd.f32 %v1572_v11, %v383_v31  ;;  %v384_v39 = vmul.f32 %v1218_v32, %v1563_v2  ;;  %v385_v40 = vmul.f32 %v1219_v33, %v1563_v2  ;;  %v1283_v41 = vunpack.c.h.bf16 %v1344_v25  ;;  %v1347_v33 = vld [vmem:[%s1558_s25 + $0xc0] sm:$0xff]  }
  0x28   : > { %v517_v43 = vmax.f32 %v453_v34, 0.0  ;;  %v485_v44 = vadd.f32 %v1572_v11, %v414_v35  ;;  %v486_v45 = vadd.f32 %v1572_v11, %v415_v36  ;;  %v416_v46 = vmul.f32 %v1282_v37, %v1563_v2 }
  0x29   : > { %v518_v47 = vmax.f32 %v454_v38, 0.0  ;;  %v455_v48 = vadd.f32 %v1572_v11, %v384_v39  ;;  %v456_v49 = vadd.f32 %v1572_v11, %v385_v40  ;;  %v417_v50 = vmul.f32 %v1283_v41, %v1563_v2  ;;  %v1332_v38 = vld [vmem:[%s1558_s25 + $0x48] sm:$0xff]  }
  0x2a   : > { %v549_v51 = vmax.f32 %v485_v44, 0.0  ;;  %v550_v52 = vmax.f32 %v486_v45, 0.0  ;;  %v487_v53 = vadd.f32 %v1572_v11, %v416_v46  ;;  %v1222_v54 = vunpack.c.l.bf16 %v1329_v42 }
  0x2b   : > { %v577_v56 = vpack.c.bf16 %v518_v47, %v517_v43  ;;  %v519_v57 = vmax.f32 %v455_v48, 0.0  ;;  %v520_v58 = vmax.f32 %v456_v49, 0.0  ;;  %v488_v59 = vadd.f32 %v1572_v11, %v417_v50  ;;  %v1348_v43 = vld [vmem:[%s1558_s25 + $0xc8] sm:$0xff]  }
  0x2c   : > { %v593_v61 = vpack.c.bf16 %v550_v52, %v549_v51  ;;  %v551_v62 = vmax.f32 %v487_v53, 0.0  ;;  %v1223_v63 = vunpack.c.h.bf16 %v1329_v42  ;;  %v386_v0 = vmul.f32 %v1222_v54, %v1563_v2 }
  0x2d   : > { %1398 = vmatprep.mubr.msk.bf16.mxu0 %vm606_vm1, %v577_v56  ;;  %v578_v3 = vpack.c.bf16 %v520_v58, %v519_v57  ;;  %v552_v4 = vmax.f32 %v488_v59, 0.0  ;;  %v1286_v5 = vunpack.c.l.bf16 %v1345_v55  ;;  %v1287_v6 = vunpack.c.h.bf16 %v1345_v55  ;;  %v1333_v56 = vld [vmem:[%s1558_s25 + $0x50] sm:$0xff]  }
  0x2e   : > { %1430 = vmatprep.mubr.msk.bf16.mxu1 %vm606_vm1, %v593_v61  ;;  %v387_v7 = vmul.f32 %v1223_v63, %v1563_v2  ;;  %v457_v8 = vadd.f32 %v1572_v11, %v386_v0  ;;  %v1226_v9 = vunpack.c.l.bf16 %v1330_v60  ;;  %v1227_v10 = vunpack.c.h.bf16 %v1330_v60 }
  0x2f   : > { %1399 = vmatmul.mubr.msk.bf16.gmra.mrb[8].mxu0 %vm606_vm1, %v578_v3  ;;  %v594_v12 = vpack.c.bf16 %v552_v4, %v551_v62  ;;  %v418_v13 = vmul.f32 %v1286_v5, %v1563_v2  ;;  %v419_v14 = vmul.f32 %v1287_v6, %v1563_v2  ;;  %v1290_v15 = vunpack.c.l.bf16 %v1346_v1  ;;  %v1349_v6 = vld [vmem:[%s1558_s25 + $0xd0] sm:$0xff]  }
  0x30   : > { %v458_v17 = vadd.f32 %v1572_v11, %v387_v7  ;;  %v521_v18 = vmax.f32 %v457_v8, 0.0  ;;  %v388_v19 = vmul.f32 %v1226_v9, %v1563_v2  ;;  %v389_v20 = vmul.f32 %v1227_v10, %v1563_v2 }
  0x31   : > { %1431 = vmatmul.mubr.msk.bf16.gmra.mrb[8].mxu1 %vm606_vm1, %v594_v12  ;;  %v489_v21 = vadd.f32 %v1572_v11, %v418_v13  ;;  %v490_v22 = vadd.f32 %v1572_v11, %v419_v14  ;;  %v1291_v23 = vunpack.c.h.bf16 %v1346_v1  ;;  %v420_v24 = vmul.f32 %v1290_v15, %v1563_v2 }
  0x32   : > { %v522_v25 = vmax.f32 %v458_v17, 0.0  ;;  %v459_v26 = vadd.f32 %v1572_v11, %v388_v19  ;;  %v460_v27 = vadd.f32 %v1572_v11, %v389_v20  ;;  %v1230_v28 = vunpack.c.l.bf16 %v1331_v16 }
  0x33   : > { %v553_v29 = vmax.f32 %v489_v21, 0.0  ;;  %v554_v30 = vmax.f32 %v490_v22, 0.0  ;;  %v421_v31 = vmul.f32 %v1291_v23, %v1563_v2  ;;  %v491_v32 = vadd.f32 %v1572_v11, %v420_v24  ;;  %v1350_v21 = vld [vmem:[%s1558_s25 + $0xd8] sm:$0xff]  }
  0x34   : > { %v579_v34 = vpack.c.bf16 %v522_v25, %v521_v18  ;;  %v523_v35 = vmax.f32 %v459_v26, 0.0  ;;  %v524_v36 = vmax.f32 %v460_v27, 0.0  ;;  %v1231_v37 = vunpack.c.h.bf16 %v1331_v16  ;;  %v1334_v16 = vld [vmem:[%s1558_s25 + $0x58] sm:$0xff]  }
  0x35   : > { %v595_v39 = vpack.c.bf16 %v554_v30, %v553_v29  ;;  %v492_v40 = vadd.f32 %v1572_v11, %v421_v31  ;;  %v555_v41 = vmax.f32 %v491_v32, 0.0  ;;  %v390_v42 = vmul.f32 %v1230_v28, %v1563_v2 }
  0x36   : > { %1402 = vmatprep.mubr.msk.bf16.mxu0 %vm606_vm1, %v579_v34  ;;  %v580_v44 = vpack.c.bf16 %v524_v36, %v523_v35  ;;  %v391_v45 = vmul.f32 %v1231_v37, %v1563_v2  ;;  %v1294_v46 = vunpack.c.l.bf16 %v1347_v33  ;;  %v1295_v47 = vunpack.c.h.bf16 %v1347_v33  ;;  %v1335_v34 = vld [vmem:[%s1558_s25 + $0x60] sm:$0xff]  }
  0x37   : > { %1434 = vmatprep.mubr.msk.bf16.mxu1 %vm606_vm1, %v595_v39  ;;  %v556_v48 = vmax.f32 %v492_v40, 0.0  ;;  %v461_v49 = vadd.f32 %v1572_v11, %v390_v42  ;;  %v1234_v50 = vunpack.c.l.bf16 %v1332_v38  ;;  %v1235_v51 = vunpack.c.h.bf16 %v1332_v38 }
  0x38   : > { %1403 = vmatmul.mubr.msk.bf16.gmra.mrb[12].mxu0 %vm606_vm1, %v580_v44  ;;  %v462_v52 = vadd.f32 %v1572_v11, %v391_v45  ;;  %v422_v53 = vmul.f32 %v1294_v46, %v1563_v2  ;;  %v423_v54 = vmul.f32 %v1295_v47, %v1563_v2  ;;  %v1298_v55 = vunpack.c.l.bf16 %v1348_v43  ;;  %v1351_v47 = vld [vmem:[%s1558_s25 + $0xe0] sm:$0xff]  }
  0x39   : > { %v596_v57 = vpack.c.bf16 %v556_v48, %v555_v41  ;;  %v525_v58 = vmax.f32 %v461_v49, 0.0  ;;  %v392_v59 = vmul.f32 %v1234_v50, %v1563_v2  ;;  %v393_v60 = vmul.f32 %v1235_v51, %v1563_v2 }
  0x3a   : > { %v526_v61 = vmax.f32 %v462_v52, 0.0  ;;  %v493_v62 = vadd.f32 %v1572_v11, %v422_v53  ;;  %v494_v63 = vadd.f32 %v1572_v11, %v423_v54  ;;  %v1299_v0 = vunpack.c.h.bf16 %v1348_v43 }
  0x3b   : > { %1435 = vmatmul.mubr.msk.bf16.gmra.mrb[12].mxu1 %vm606_vm1, %v596_v57  ;;  %v463_v1 = vadd.f32 %v1572_v11, %v392_v59  ;;  %v464_v3 = vadd.f32 %v1572_v11, %v393_v60  ;;  %v424_v4 = vmul.f32 %v1298_v55, %v1563_v2  ;;  %v1238_v5 = vunpack.c.l.bf16 %v1333_v56 }
  0x3c   : > { %v581_v7 = vpack.c.bf16 %v526_v61, %v525_v58  ;;  %v557_v8 = vmax.f32 %v493_v62, 0.0  ;;  %v558_v9 = vmax.f32 %v494_v63, 0.0  ;;  %v425_v10 = vmul.f32 %v1299_v0, %v1563_v2 }
  0x3d   : > { %v527_v12 = vmax.f32 %v463_v1, 0.0  ;;  %v528_v13 = vmax.f32 %v464_v3, 0.0  ;;  %v495_v14 = vadd.f32 %v1572_v11, %v424_v4  ;;  %v1239_v15 = vunpack.c.h.bf16 %v1333_v56  ;;  %v1336_v56 = vld [vmem:[%s1558_s25 + $0x68] sm:$0xff]  }
  0x3e   : > { %1406 = vmatprep.mubr.msk.bf16.mxu0 %vm606_vm1, %v581_v7  ;;  %v597_v17 = vpack.c.bf16 %v558_v9, %v557_v8  ;;  %v496_v18 = vadd.f32 %v1572_v11, %v425_v10  ;;  %v394_v19 = vmul.f32 %v1238_v5, %v1563_v2  ;;  %v1302_v20 = vunpack.c.l.bf16 %v1349_v6  ;;  %v1352_v1 = vld [vmem:[%s1558_s25 + $0xe8] sm:$0xff]  }
  0x3f   : > { %v582_v22 = vpack.c.bf16 %v528_v13, %v527_v12  ;;  %v559_v23 = vmax.f32 %v495_v14, 0.0  ;;  %v395_v24 = vmul.f32 %v1239_v15, %v1563_v2  ;;  %v1303_v25 = vunpack.c.h.bf16 %v1349_v6  ;;  %v1337_v12 = vld [vmem:[%s1558_s25 + $0x70] sm:$0xff]  }
  0x40   : > { %1438 = vmatprep.mubr.msk.bf16.mxu1 %vm606_vm1, %v597_v17  ;;  %v560_v26 = vmax.f32 %v496_v18, 0.0  ;;  %v465_v27 = vadd.f32 %v1572_v11, %v394_v19  ;;  %v426_v28 = vmul.f32 %v1302_v20, %v1563_v2  ;;  %v1242_v29 = vunpack.c.l.bf16 %v1334_v16 }
  0x41   : > { %1407 = vmatmul.mubr.msk.bf16.gmra.mrb[16].mxu0 %vm606_vm1, %v582_v22  ;;  %v466_v30 = vadd.f32 %v1572_v11, %v395_v24  ;;  %v427_v31 = vmul.f32 %v1303_v25, %v1563_v2  ;;  %v1243_v32 = vunpack.c.h.bf16 %v1334_v16  ;;  %v1306_v33 = vunpack.c.l.bf16 %v1350_v21  ;;  %v1353_v25 = vld [vmem:[%s1558_s25 + $0xf0] sm:$0xff]  }
  0x42   : > { %v598_v35 = vpack.c.bf16 %v560_v26, %v559_v23  ;;  %v529_v36 = vmax.f32 %v465_v27, 0.0  ;;  %v497_v37 = vadd.f32 %v1572_v11, %v426_v28  ;;  %v396_v38 = vmul.f32 %v1242_v29, %v1563_v2 }
  0x43   : > { %v530_v39 = vmax.f32 %v466_v30, 0.0  ;;  %v498_v40 = vadd.f32 %v1572_v11, %v427_v31  ;;  %v397_v41 = vmul.f32 %v1243_v32, %v1563_v2  ;;  %v1307_v42 = vunpack.c.h.bf16 %v1350_v21 }
  0x44   : > { %1439 = vmatmul.mubr.msk.bf16.gmra.mrb[16].mxu1 %vm606_vm1, %v598_v35  ;;  %v561_v43 = vmax.f32 %v497_v37, 0.0  ;;  %v467_v44 = vadd.f32 %v1572_v11, %v396_v38  ;;  %v428_v45 = vmul.f32 %v1306_v33, %v1563_v2  ;;  %v1246_v46 = vunpack.c.l.bf16 %v1335_v34 }
  0x45   : > { %v583_v48 = vpack.c.bf16 %v530_v39, %v529_v36  ;;  %v562_v49 = vmax.f32 %v498_v40, 0.0  ;;  %v468_v50 = vadd.f32 %v1572_v11, %v397_v41  ;;  %v429_v51 = vmul.f32 %v1307_v42, %v1563_v2 }
  0x46   : > { %v531_v52 = vmax.f32 %v467_v44, 0.0  ;;  %v499_v53 = vadd.f32 %v1572_v11, %v428_v45  ;;  %v1247_v54 = vunpack.c.h.bf16 %v1335_v34  ;;  %v398_v55 = vmul.f32 %v1246_v46, %v1563_v2  ;;  %v1338_v34 = vld [vmem:[%s1558_s25 + $0x78] sm:$0xff]  }
  0x47   : > { %1410 = vmatprep.mubr.msk.bf16.mxu0 %vm606_vm1, %v583_v48  ;;  %v599_v57 = vpack.c.bf16 %v562_v49, %v561_v43  ;;  %v532_v58 = vmax.f32 %v468_v50, 0.0  ;;  %v500_v59 = vadd.f32 %v1572_v11, %v429_v51  ;;  %v1310_v60 = vunpack.c.l.bf16 %v1351_v47  ;;  %v1354_v43 = vld [vmem:[%s1558_s25 + $0xf8] sm:$0xff]  }
  0x48   : > { %v563_v61 = vmax.f32 %v499_v53, 0.0  ;;  %v399_v62 = vmul.f32 %v1247_v54, %v1563_v2  ;;  %v469_v63 = vadd.f32 %v1572_v11, %v398_v55  ;;  %v1311_v0 = vunpack.c.h.bf16 %v1351_v47 }
  0x49   : > { %1442 = vmatprep.mubr.msk.bf16.mxu1 %vm606_vm1, %v599_v57  ;;  %v584_v3 = vpack.c.bf16 %v532_v58, %v531_v52  ;;  %v564_v4 = vmax.f32 %v500_v59, 0.0  ;;  %v430_v5 = vmul.f32 %v1310_v60, %v1563_v2  ;;  %v1250_v6 = vunpack.c.l.bf16 %v1336_v56 }
  0x4a   : > { %v470_v7 = vadd.f32 %v1572_v11, %v399_v62  ;;  %v533_v8 = vmax.f32 %v469_v63, 0.0  ;;  %v431_v9 = vmul.f32 %v1311_v0, %v1563_v2  ;;  %v1251_v10 = vunpack.c.h.bf16 %v1336_v56 }
  0x4b   : > { %1411 = vmatmul.mubr.msk.bf16.gmra.mrb[20].mxu0 %vm606_vm1, %v584_v3  ;;  %v600_v13 = vpack.c.bf16 %v564_v4, %v563_v61  ;;  %v501_v14 = vadd.f32 %v1572_v11, %v430_v5  ;;  %v400_v15 = vmul.f32 %v1250_v6, %v1563_v2  ;;  %v1314_v16 = vunpack.c.l.bf16 %v1352_v1 }
  0x4c   : > { %v534_v17 = vmax.f32 %v470_v7, 0.0  ;;  %v502_v18 = vadd.f32 %v1572_v11, %v431_v9  ;;  %v401_v19 = vmul.f32 %v1251_v10, %v1563_v2  ;;  %v1315_v20 = vunpack.c.h.bf16 %v1352_v1 }
  0x4d   : > { %1443 = vmatmul.mubr.msk.bf16.gmra.mrb[20].mxu1 %vm606_vm1, %v600_v13  ;;  %v565_v21 = vmax.f32 %v501_v14, 0.0  ;;  %v471_v22 = vadd.f32 %v1572_v11, %v400_v15  ;;  %v432_v23 = vmul.f32 %v1314_v16, %v1563_v2  ;;  %v1254_v24 = vunpack.c.l.bf16 %v1337_v12 }
  0x4e   : > { %v585_v26 = vpack.c.bf16 %v534_v17, %v533_v8  ;;  %v566_v27 = vmax.f32 %v502_v18, 0.0  ;;  %v472_v28 = vadd.f32 %v1572_v11, %v401_v19  ;;  %v433_v29 = vmul.f32 %v1315_v20, %v1563_v2 }
  0x4f   : > { %v535_v30 = vmax.f32 %v471_v22, 0.0  ;;  %v503_v31 = vadd.f32 %v1572_v11, %v432_v23  ;;  %v1255_v32 = vunpack.c.h.bf16 %v1337_v12  ;;  %v402_v33 = vmul.f32 %v1254_v24, %v1563_v2 }
  0x50   : > { %1414 = vmatprep.mubr.msk.bf16.mxu0 %vm606_vm1, %v585_v26  ;;  %v601_v35 = vpack.c.bf16 %v566_v27, %v565_v21  ;;  %v536_v36 = vmax.f32 %v472_v28, 0.0  ;;  %v504_v37 = vadd.f32 %v1572_v11, %v433_v29  ;;  %v1318_v38 = vunpack.c.l.bf16 %v1353_v25 }
  0x51   : > { %v567_v39 = vmax.f32 %v503_v31, 0.0  ;;  %v403_v40 = vmul.f32 %v1255_v32, %v1563_v2  ;;  %v473_v41 = vadd.f32 %v1572_v11, %v402_v33  ;;  %v1319_v42 = vunpack.c.h.bf16 %v1353_v25 }
  0x52   : > { %1446 = vmatprep.mubr.msk.bf16.mxu1 %vm606_vm1, %v601_v35  ;;  %v586_v44 = vpack.c.bf16 %v536_v36, %v535_v30  ;;  %v568_v45 = vmax.f32 %v504_v37, 0.0  ;;  %v434_v46 = vmul.f32 %v1318_v38, %v1563_v2  ;;  %v1258_v47 = vunpack.c.l.bf16 %v1338_v34 }
  0x53   : > { %v474_v48 = vadd.f32 %v1572_v11, %v403_v40  ;;  %v537_v49 = vmax.f32 %v473_v41, 0.0  ;;  %v435_v50 = vmul.f32 %v1319_v42, %v1563_v2  ;;  %v1259_v51 = vunpack.c.h.bf16 %v1338_v34 }
  0x54   : > { %1415 = vmatmul.mubr.msk.bf16.gmra.mrb[24].mxu0 %vm606_vm1, %v586_v44  ;;  %v602_v52 = vpack.c.bf16 %v568_v45, %v567_v39  ;;  %v505_v53 = vadd.f32 %v1572_v11, %v434_v46  ;;  %v404_v54 = vmul.f32 %v1258_v47, %v1563_v2  ;;  %v1322_v55 = vunpack.c.l.bf16 %v1354_v43 }
  0x55   : > { %v538_v56 = vmax.f32 %v474_v48, 0.0  ;;  %v506_v57 = vadd.f32 %v1572_v11, %v435_v50  ;;  %v405_v58 = vmul.f32 %v1259_v51, %v1563_v2  ;;  %v1323_v59 = vunpack.c.h.bf16 %v1354_v43 }
  0x56   : > { %1447 = vmatmul.mubr.msk.bf16.gmra.mrb[24].mxu1 %vm606_vm1, %v602_v52  ;;  %v569_v60 = vmax.f32 %v505_v53, 0.0  ;;  %v475_v61 = vadd.f32 %v1572_v11, %v404_v54  ;;  %v436_v62 = vmul.f32 %v1322_v55, %v1563_v2 }
  0x57   : > { %v587_v63 = vpack.c.bf16 %v538_v56, %v537_v49  ;;  %v570_v0 = vmax.f32 %v506_v57, 0.0  ;;  %v476_v1 = vadd.f32 %v1572_v11, %v405_v58  ;;  %v437_v3 = vmul.f32 %v1323_v59, %v1563_v2 }
  0x58   : > { %v539_v4 = vmax.f32 %v475_v61, 0.0  ;;  %v507_v5 = vadd.f32 %v1572_v11, %v436_v62 }
  0x59   : > { %1418 = vmatprep.mubr.msk.bf16.mxu0 %vm606_vm1, %v587_v63  ;;  %v603_v6 = vpack.c.bf16 %v570_v0, %v569_v60  ;;  %v540_v7 = vmax.f32 %v476_v1, 0.0  ;;  %v508_v8 = vadd.f32 %v1572_v11, %v437_v3 }
  0x5a   : > { %v571_v9 = vmax.f32 %v507_v5, 0.0 }
  0x5b   : > { %1450 = vmatprep.mubr.msk.bf16.mxu1 %vm606_vm1, %v603_v6  ;;  %v588_v10 = vpack.c.bf16 %v540_v7, %v539_v4  ;;  %v572_v12 = vmax.f32 %v508_v8, 0.0 }
  0x5d   : > { %1419 = vmatmul.mubr.msk.bf16.gmra.mrb[28].mxu0 %vm606_vm1, %v588_v10  ;;  %v604_v13 = vpack.c.bf16 %v572_v12, %v571_v9 }
  0x5f   : > { %1451 = vmatmul.mubr.msk.bf16.gmra.mrb[28].mxu1 %vm606_vm1, %v604_v13 }
  0xf0   : > { %v1392_v2 = vpop.f32.mrb[0].mxu0 }
  0xf1   : > { %v1424_v11 = vpop.f32.mrb[0].mxu1  ;;  %998 = vst [vmem:[%s1766_s7 + $0x10] sm:$0xff] %v1392_v2  ;;  %v741_v14 = vpop.f32.mrb[1].mxu0 }
  0xf2   : > { %1030 = vst [vmem:[%s1766_s7 + $0x110] sm:$0xff] %v1424_v11  ;;  %v869_v15 = vpop.f32.mrb[1].mxu1  ;;  %996 = vst [vmem:[%s1766_s7] sm:$0xff] %v741_v14  ;;  %v1393_v16 = vpop.f32.mrb[2].mxu0 }
  0xf3   : > { %1028 = vst [vmem:[%s1766_s7 + $0x100] sm:$0xff] %v869_v15  ;;  %v1425_v17 = vpop.f32.mrb[2].mxu1  ;;  %999 = vst [vmem:[%s1766_s7 + $0x18] sm:$0xff] %v1393_v16  ;;  %v744_v18 = vpop.f32.mrb[3].mxu0 }
  0xf4   : > { %1031 = vst [vmem:[%s1766_s7 + $0x118] sm:$0xff] %v1425_v17  ;;  %v872_v19 = vpop.f32.mrb[3].mxu1  ;;  %997 = vst [vmem:[%s1766_s7 + $0x8] sm:$0xff] %v744_v18 }
  0xf5   : > { %1029 = vst [vmem:[%s1766_s7 + $0x108] sm:$0xff] %v872_v19 }
  0xf9   : > { %v1396_v20 = vpop.f32.mrb[4].mxu0 }
  0xfa   : > { %1002 = vst [vmem:[%s1766_s7 + $0x30] sm:$0xff] %v1396_v20  ;;  %v1428_v21 = vpop.f32.mrb[4].mxu1  ;;  %v757_v22 = vpop.f32.mrb[5].mxu0 }
  0xfb   : > { %1034 = vst [vmem:[%s1766_s7 + $0x130] sm:$0xff] %v1428_v21  ;;  %1000 = vst [vmem:[%s1766_s7 + $0x20] sm:$0xff] %v757_v22  ;;  %v885_v23 = vpop.f32.mrb[5].mxu1  ;;  %v1397_v24 = vpop.f32.mrb[6].mxu0 }
  0xfc   : > { %1032 = vst [vmem:[%s1766_s7 + $0x120] sm:$0xff] %v885_v23  ;;  %1003 = vst [vmem:[%s1766_s7 + $0x38] sm:$0xff] %v1397_v24  ;;  %v1429_v25 = vpop.f32.mrb[6].mxu1  ;;  %v760_v26 = vpop.f32.mrb[7].mxu0 }
  0xfd   : > { %1035 = vst [vmem:[%s1766_s7 + $0x138] sm:$0xff] %v1429_v25  ;;  %1001 = vst [vmem:[%s1766_s7 + $0x28] sm:$0xff] %v760_v26  ;;  %v888_v27 = vpop.f32.mrb[7].mxu1 }
  0xfe   : > { %1033 = vst [vmem:[%s1766_s7 + $0x128] sm:$0xff] %v888_v27 }
 0x102   : > { %v1400_v28 = vpop.f32.mrb[8].mxu0 }
 0x103   : > { %1006 = vst [vmem:[%s1766_s7 + $0x50] sm:$0xff] %v1400_v28  ;;  %v773_v29 = vpop.f32.mrb[9].mxu0 }
 0x104   : > { %v1432_v30 = vpop.f32.mrb[8].mxu1  ;;  %1004 = vst [vmem:[%s1766_s7 + $0x40] sm:$0xff] %v773_v29  ;;  %v1401_v31 = vpop.f32.mrb[10].mxu0 }
 0x105   : > { %1038 = vst [vmem:[%s1766_s7 + $0x150] sm:$0xff] %v1432_v30  ;;  %v901_v32 = vpop.f32.mrb[9].mxu1  ;;  %1007 = vst [vmem:[%s1766_s7 + $0x58] sm:$0xff] %v1401_v31  ;;  %v776_v33 = vpop.f32.mrb[11].mxu0 }
 0x106   : > { %1036 = vst [vmem:[%s1766_s7 + $0x140] sm:$0xff] %v901_v32  ;;  %v1433_v34 = vpop.f32.mrb[10].mxu1  ;;  %1005 = vst [vmem:[%s1766_s7 + $0x48] sm:$0xff] %v776_v33 }
 0x107   : > { %1039 = vst [vmem:[%s1766_s7 + $0x158] sm:$0xff] %v1433_v34  ;;  %v904_v35 = vpop.f32.mrb[11].mxu1 }
 0x108   : > { %1037 = vst [vmem:[%s1766_s7 + $0x148] sm:$0xff] %v904_v35 }
 0x10b   : > { %v1404_v36 = vpop.f32.mrb[12].mxu0 }
 0x10c   : > { %1010 = vst [vmem:[%s1766_s7 + $0x70] sm:$0xff] %v1404_v36  ;;  %v789_v37 = vpop.f32.mrb[13].mxu0 }
 0x10d   : > { %1008 = vst [vmem:[%s1766_s7 + $0x60] sm:$0xff] %v789_v37  ;;  %v1405_v38 = vpop.f32.mrb[14].mxu0 }
 0x10e   : > { %v1436_v39 = vpop.f32.mrb[12].mxu1  ;;  %1011 = vst [vmem:[%s1766_s7 + $0x78] sm:$0xff] %v1405_v38  ;;  %v792_v40 = vpop.f32.mrb[15].mxu0 }
 0x10f   : > { %1042 = vst [vmem:[%s1766_s7 + $0x170] sm:$0xff] %v1436_v39  ;;  %v917_v41 = vpop.f32.mrb[13].mxu1  ;;  %1009 = vst [vmem:[%s1766_s7 + $0x68] sm:$0xff] %v792_v40 }
 0x110   : > { %1040 = vst [vmem:[%s1766_s7 + $0x160] sm:$0xff] %v917_v41  ;;  %v1437_v42 = vpop.f32.mrb[14].mxu1 }
 0x111   : > { %1043 = vst [vmem:[%s1766_s7 + $0x178] sm:$0xff] %v1437_v42  ;;  %v920_v43 = vpop.f32.mrb[15].mxu1 }
 0x112   : > { %1041 = vst [vmem:[%s1766_s7 + $0x168] sm:$0xff] %v920_v43 }
 0x114   : > { %v1408_v44 = vpop.f32.mrb[16].mxu0 }
 0x115   : > { %1014 = vst [vmem:[%s1766_s7 + $0x90] sm:$0xff] %v1408_v44  ;;  %v805_v45 = vpop.f32.mrb[17].mxu0 }
 0x116   : > { %1012 = vst [vmem:[%s1766_s7 + $0x80] sm:$0xff] %v805_v45  ;;  %v1409_v46 = vpop.f32.mrb[18].mxu0 }
 0x117   : > { %v1440_v47 = vpop.f32.mrb[16].mxu1  ;;  %1015 = vst [vmem:[%s1766_s7 + $0x98] sm:$0xff] %v1409_v46  ;;  %v808_v48 = vpop.f32.mrb[19].mxu0 }
 0x118   : > { %1046 = vst [vmem:[%s1766_s7 + $0x190] sm:$0xff] %v1440_v47  ;;  %v933_v49 = vpop.f32.mrb[17].mxu1  ;;  %1013 = vst [vmem:[%s1766_s7 + $0x88] sm:$0xff] %v808_v48 }
 0x119   : > { %1044 = vst [vmem:[%s1766_s7 + $0x180] sm:$0xff] %v933_v49  ;;  %v1441_v50 = vpop.f32.mrb[18].mxu1 }
 0x11a   : > { %1047 = vst [vmem:[%s1766_s7 + $0x198] sm:$0xff] %v1441_v50  ;;  %v936_v51 = vpop.f32.mrb[19].mxu1 }
 0x11b   : > { %1045 = vst [vmem:[%s1766_s7 + $0x188] sm:$0xff] %v936_v51 }
 0x11e   : > { %v1412_v52 = vpop.f32.mrb[20].mxu0 }
 0x11f   : > { %1018 = vst [vmem:[%s1766_s7 + $0xb0] sm:$0xff] %v1412_v52  ;;  %v821_v53 = vpop.f32.mrb[21].mxu0 }
 0x120   : > { %v1444_v54 = vpop.f32.mrb[20].mxu1  ;;  %1016 = vst [vmem:[%s1766_s7 + $0xa0] sm:$0xff] %v821_v53  ;;  %v1413_v55 = vpop.f32.mrb[22].mxu0 }
 0x121   : > { %1050 = vst [vmem:[%s1766_s7 + $0x1b0] sm:$0xff] %v1444_v54  ;;  %v949_v56 = vpop.f32.mrb[21].mxu1  ;;  %1019 = vst [vmem:[%s1766_s7 + $0xb8] sm:$0xff] %v1413_v55  ;;  %v824_v57 = vpop.f32.mrb[23].mxu0 }
 0x122   : > { %1048 = vst [vmem:[%s1766_s7 + $0x1a0] sm:$0xff] %v949_v56  ;;  %v1445_v58 = vpop.f32.mrb[22].mxu1  ;;  %1017 = vst [vmem:[%s1766_s7 + $0xa8] sm:$0xff] %v824_v57 }
 0x123   : > { %1051 = vst [vmem:[%s1766_s7 + $0x1b8] sm:$0xff] %v1445_v58  ;;  %v952_v59 = vpop.f32.mrb[23].mxu1 }
 0x124   : > { %1049 = vst [vmem:[%s1766_s7 + $0x1a8] sm:$0xff] %v952_v59 }
 0x127   : > { %v1416_v60 = vpop.f32.mrb[24].mxu0 }
 0x128   : > { %1022 = vst [vmem:[%s1766_s7 + $0xd0] sm:$0xff] %v1416_v60  ;;  %v837_v61 = vpop.f32.mrb[25].mxu0 }
 0x129   : > { %v1448_v62 = vpop.f32.mrb[24].mxu1  ;;  %1020 = vst [vmem:[%s1766_s7 + $0xc0] sm:$0xff] %v837_v61  ;;  %v1417_v63 = vpop.f32.mrb[26].mxu0 }
 0x12a   : > { %1054 = vst [vmem:[%s1766_s7 + $0x1d0] sm:$0xff] %v1448_v62  ;;  %v965_v0 = vpop.f32.mrb[25].mxu1  ;;  %1023 = vst [vmem:[%s1766_s7 + $0xd8] sm:$0xff] %v1417_v63  ;;  %v840_v1 = vpop.f32.mrb[27].mxu0 }
 0x12b   : > { %1052 = vst [vmem:[%s1766_s7 + $0x1c0] sm:$0xff] %v965_v0  ;;  %v1449_v3 = vpop.f32.mrb[26].mxu1  ;;  %1021 = vst [vmem:[%s1766_s7 + $0xc8] sm:$0xff] %v840_v1 }
 0x12c   : > { %1055 = vst [vmem:[%s1766_s7 + $0x1d8] sm:$0xff] %v1449_v3  ;;  %v968_v4 = vpop.f32.mrb[27].mxu1 }
 0x12d   : > { %1053 = vst [vmem:[%s1766_s7 + $0x1c8] sm:$0xff] %v968_v4 }
 0x130   : > { %v1420_v5 = vpop.f32.mrb[28].mxu0 }
 0x131   : > { %1026 = vst [vmem:[%s1766_s7 + $0xf0] sm:$0xff] %v1420_v5  ;;  %v853_v6 = vpop.f32.mrb[29].mxu0 }
 0x132   : > { %v1452_v7 = vpop.f32.mrb[28].mxu1  ;;  %1024 = vst [vmem:[%s1766_s7 + $0xe0] sm:$0xff] %v853_v6  ;;  %v1421_v8 = vpop.f32.mrb[30].mxu0 }
 0x133   : > { %1058 = vst [vmem:[%s1766_s7 + $0x1f0] sm:$0xff] %v1452_v7  ;;  %v981_v9 = vpop.f32.mrb[29].mxu1  ;;  %1027 = vst [vmem:[%s1766_s7 + $0xf8] sm:$0xff] %v1421_v8  ;;  %v856_v10 = vpop.f32.mrb[31].mxu0 }
 0x134   : > { %1056 = vst [vmem:[%s1766_s7 + $0x1e0] sm:$0xff] %v981_v9  ;;  %v1453_v12 = vpop.f32.mrb[30].mxu1  ;;  %1025 = vst [vmem:[%s1766_s7 + $0xe8] sm:$0xff] %v856_v10 }
 0x135   : > { %1059 = vst [vmem:[%s1766_s7 + $0x1f8] sm:$0xff] %v1453_v12  ;;  %v984_v13 = vpop.f32.mrb[31].mxu1 }
 0x136   : > { %1057 = vst [vmem:[%s1766_s7 + $0x1e8] sm:$0xff] %v984_v13 }
 0x137 PF: > { %s14_s17 = sadd.s32 1, %s1504_s17   ;;  %s1846_s15 = smov %s1500_s16 }
 0x138   : > { %p11_p5 = scmp.ge.s32.totalorder %s14_s17, 10   ;;  %s1847_s16 = smov %s1849_s18 }
 0x13a   :  { %13 = sbr.rel (!%p11_p5) target bundleno = 2 (0x2), region = 69 }

// kernel: generator_forward.21
= control target key start
LH: loop header
LB: loop body
LE: loop exit
PB: predicated region body
PF: predicated region fallthrough
CT: control target
= control target key end

     0   :  { %vm137_vm0 = vcmask 523264   ;;  %s759_s0 = inlined_call_operand.vmem [shape: f32[256,192], index: 0, kind: input, shape index: {}]   ;;  %s760_s1 = inlined_call_operand.vmem [shape: f32[256,192], index: 1, kind: output, shape index: {}]  }
   0x1   :  { %v8_v0 = vld [vmem:[%s759_s0] sm:$0xff]  ;;  %v9_v1 = vld [vmem:[%s759_s0 + $0x8] sm:$0xff]  ;;  %v10_v2 = vld [vmem:[%s759_s0 + $0x10] sm:$0xff] }
   0x2   :  { %205 = vtanh.f32 %v8_v0  ;;  %v11_v3 = vld [vmem:[%s759_s0 + $0x18] sm:$0xff]  ;;  %v12_v4 = vld [vmem:[%s759_s0 + $0x20] sm:$0xff]  ;;  %v13_v5 = vld [vmem:[%s759_s0 + $0x28] sm:$0xff] }
   0x3   :  { %207 = vtanh.f32 %v9_v1  ;;  %v14_v6 = vld [vmem:[%s759_s0 + $0x30] sm:$0xff]  ;;  %v15_v7 = vld [vmem:[%s759_s0 + $0x38] sm:$0xff]  ;;  %v16_v8 = vld [vmem:[%s759_s0 + $0x40] sm:$0xff] }
   0x4   :  { %209 = vtanh.f32 %v10_v2  ;;  %v17_v9 = vld [vmem:[%s759_s0 + $0x48] sm:$0xff]  ;;  %v18_v10 = vld [vmem:[%s759_s0 + $0x50] sm:$0xff]  ;;  %v19_v11 = vld [vmem:[%s759_s0 + $0x58] sm:$0xff] }
   0x5   :  { %211 = vtanh.f32 %v11_v3  ;;  %v20_v12 = vld [vmem:[%s759_s0 + $0x60] sm:$0xff]  ;;  %v21_v14 = vld [vmem:[%s759_s0 + $0x68] sm:$0xff]  ;;  %v22_v16 = vld [vmem:[%s759_s0 + $0x70] sm:$0xff] }
   0x6   :  { %213 = vtanh.f32 %v12_v4  ;;  %v23_v18 = vld [vmem:[%s759_s0 + $0x78] sm:$0xff]  ;;  %v24_v20 = vld [vmem:[%s759_s0 + $0x80] sm:$0xff]  ;;  %v25_v22 = vld [vmem:[%s759_s0 + $0x88] sm:$0xff] }
   0x7   :  { %215 = vtanh.f32 %v13_v5  ;;  %v26_v24 = vld [vmem:[%s759_s0 + $0x90] sm:$0xff]  ;;  %v27_v26 = vld [vmem:[%s759_s0 + $0x98] sm:$0xff]  ;;  %v28_v28 = vld [vmem:[%s759_s0 + $0xa0] sm:$0xff] }
   0x8   :  { %217 = vtanh.f32 %v14_v6  ;;  %v29_v30 = vld [vmem:[%s759_s0 + $0xa8] sm:$0xff]  ;;  %v30_v32 = vld [vmem:[%s759_s0 + $0xb0] sm:$0xff]  ;;  %v31_v34 = vld [vmem:[%s759_s0 + $0xb8] sm:$0xff] }
   0x9   :  { %219 = vtanh.f32 %v15_v7  ;;  %v32_v36 = vld [vmem:[%s759_s0 + $0xc0] sm:$0xff]  ;;  %v33_v38 = vld [vmem:[%s759_s0 + $0xc8] sm:$0xff]  ;;  %v34_v40 = vld [vmem:[%s759_s0 + $0xd0] sm:$0xff] }
   0xa   :  { %221 = vtanh.f32 %v16_v8  ;;  %v35_v42 = vld [vmem:[%s759_s0 + $0xd8] sm:$0xff]  ;;  %v36_v44 = vld [vmem:[%s759_s0 + $0xe0] sm:$0xff]  ;;  %v37_v46 = vld [vmem:[%s759_s0 + $0xe8] sm:$0xff] }
   0xb   :  { %223 = vtanh.f32 %v17_v9  ;;  %v38_v48 = vld [vmem:[%s759_s0 + $0xf0] sm:$0xff]  ;;  %v39_v50 = vld [vmem:[%s759_s0 + $0xf8] sm:$0xff]  ;;  %v40_v52 = vld [vmem:[%s759_s0 + $0x100] sm:$0xff] }
   0xc   :  { %v206_v13 = vpop.eup %205  ;;  %225 = vtanh.f32 %v18_v10  ;;  %v41_v54 = vld [vmem:[%s759_s0 + $0x108] sm:$0xff]  ;;  %v42_v56 = vld [vmem:[%s759_s0 + $0x110] sm:$0xff]  ;;  %v43_v58 = vld [vmem:[%s759_s0 + $0x118] sm:$0xff] }
   0xd   :  { %v208_v15 = vpop.eup %207  ;;  %136 = vst [vmem:[%s760_s1] sm:$0xff] %v206_v13  ;;  %227 = vtanh.f32 %v19_v11  ;;  %v44_v60 = vld [vmem:[%s759_s0 + $0x120] sm:$0xff]  ;;  %v45_v62 = vld [vmem:[%s759_s0 + $0x128] sm:$0xff]  ;;  %v46_v0 = vld [vmem:[%s759_s0 + $0x130] sm:$0xff] }
   0xe   :  { %v210_v17 = vpop.eup %209  ;;  %138 = vst.msk [vmem:[%s760_s1 + $0x8] sm:$0xff] %vm137_vm0, %v208_v15  ;;  %229 = vtanh.f32 %v20_v12  ;;  %v47_v2 = vld [vmem:[%s759_s0 + $0x138] sm:$0xff]  ;;  %v48_v4 = vld [vmem:[%s759_s0 + $0x140] sm:$0xff]  ;;  %v49_v6 = vld [vmem:[%s759_s0 + $0x148] sm:$0xff] }
   0xf   :  { %v212_v19 = vpop.eup %211  ;;  %139 = vst [vmem:[%s760_s1 + $0x10] sm:$0xff] %v210_v17  ;;  %231 = vtanh.f32 %v21_v14  ;;  %v50_v8 = vld [vmem:[%s759_s0 + $0x150] sm:$0xff]  ;;  %v51_v10 = vld [vmem:[%s759_s0 + $0x158] sm:$0xff]  ;;  %v52_v12 = vld [vmem:[%s759_s0 + $0x160] sm:$0xff] }
  0x10   :  { %v214_v21 = vpop.eup %213  ;;  %140 = vst.msk [vmem:[%s760_s1 + $0x18] sm:$0xff] %vm137_vm0, %v212_v19  ;;  %233 = vtanh.f32 %v22_v16  ;;  %v53_v14 = vld [vmem:[%s759_s0 + $0x168] sm:$0xff]  ;;  %v54_v16 = vld [vmem:[%s759_s0 + $0x170] sm:$0xff] }
  0x11   :  { %v216_v23 = vpop.eup %215  ;;  %141 = vst [vmem:[%s760_s1 + $0x20] sm:$0xff] %v214_v21  ;;  %235 = vtanh.f32 %v23_v18  ;;  %v55_v18 = vld [vmem:[%s759_s0 + $0x178] sm:$0xff] }
  0x12   :  { %v218_v25 = vpop.eup %217  ;;  %142 = vst.msk [vmem:[%s760_s1 + $0x28] sm:$0xff] %vm137_vm0, %v216_v23  ;;  %237 = vtanh.f32 %v24_v20  ;;  %v56_v20 = vld [vmem:[%s759_s0 + $0x180] sm:$0xff] }
  0x13   :  { %v220_v27 = vpop.eup %219  ;;  %143 = vst [vmem:[%s760_s1 + $0x30] sm:$0xff] %v218_v25  ;;  %239 = vtanh.f32 %v25_v22  ;;  %v57_v22 = vld [vmem:[%s759_s0 + $0x188] sm:$0xff] }
  0x14   :  { %v222_v29 = vpop.eup %221  ;;  %144 = vst.msk [vmem:[%s760_s1 + $0x38] sm:$0xff] %vm137_vm0, %v220_v27  ;;  %241 = vtanh.f32 %v26_v24  ;;  %v58_v24 = vld [vmem:[%s759_s0 + $0x190] sm:$0xff] }
  0x15   :  { %v224_v31 = vpop.eup %223  ;;  %145 = vst [vmem:[%s760_s1 + $0x40] sm:$0xff] %v222_v29  ;;  %243 = vtanh.f32 %v27_v26  ;;  %v59_v26 = vld [vmem:[%s759_s0 + $0x198] sm:$0xff] }
  0x16   :  { %v226_v33 = vpop.eup %225  ;;  %146 = vst.msk [vmem:[%s760_s1 + $0x48] sm:$0xff] %vm137_vm0, %v224_v31  ;;  %245 = vtanh.f32 %v28_v28  ;;  %v60_v28 = vld [vmem:[%s759_s0 + $0x1a0] sm:$0xff] }
  0x17   :  { %v228_v35 = vpop.eup %227  ;;  %147 = vst [vmem:[%s760_s1 + $0x50] sm:$0xff] %v226_v33  ;;  %247 = vtanh.f32 %v29_v30  ;;  %v61_v30 = vld [vmem:[%s759_s0 + $0x1a8] sm:$0xff] }
  0x18   :  { %v230_v37 = vpop.eup %229  ;;  %148 = vst.msk [vmem:[%s760_s1 + $0x58] sm:$0xff] %vm137_vm0, %v228_v35  ;;  %249 = vtanh.f32 %v30_v32  ;;  %v62_v32 = vld [vmem:[%s759_s0 + $0x1b0] sm:$0xff] }
  0x19   :  { %v232_v39 = vpop.eup %231  ;;  %149 = vst [vmem:[%s760_s1 + $0x60] sm:$0xff] %v230_v37  ;;  %251 = vtanh.f32 %v31_v34  ;;  %v63_v34 = vld [vmem:[%s759_s0 + $0x1b8] sm:$0xff] }
  0x1a   :  { %v234_v41 = vpop.eup %233  ;;  %150 = vst.msk [vmem:[%s760_s1 + $0x68] sm:$0xff] %vm137_vm0, %v232_v39  ;;  %253 = vtanh.f32 %v32_v36  ;;  %v64_v36 = vld [vmem:[%s759_s0 + $0x1c0] sm:$0xff] }
  0x1b   :  { %v236_v43 = vpop.eup %235  ;;  %151 = vst [vmem:[%s760_s1 + $0x70] sm:$0xff] %v234_v41  ;;  %255 = vtanh.f32 %v33_v38  ;;  %v65_v38 = vld [vmem:[%s759_s0 + $0x1c8] sm:$0xff] }
  0x1c   :  { %v238_v45 = vpop.eup %237  ;;  %152 = vst.msk [vmem:[%s760_s1 + $0x78] sm:$0xff] %vm137_vm0, %v236_v43  ;;  %257 = vtanh.f32 %v34_v40  ;;  %v66_v40 = vld [vmem:[%s759_s0 + $0x1d0] sm:$0xff] }
  0x1d   :  { %v240_v47 = vpop.eup %239  ;;  %153 = vst [vmem:[%s760_s1 + $0x80] sm:$0xff] %v238_v45  ;;  %259 = vtanh.f32 %v35_v42  ;;  %v67_v42 = vld [vmem:[%s759_s0 + $0x1d8] sm:$0xff] }
  0x1e   :  { %v242_v49 = vpop.eup %241  ;;  %154 = vst.msk [vmem:[%s760_s1 + $0x88] sm:$0xff] %vm137_vm0, %v240_v47  ;;  %261 = vtanh.f32 %v36_v44  ;;  %v68_v44 = vld [vmem:[%s759_s0 + $0x1e0] sm:$0xff] }
  0x1f   :  { %v244_v51 = vpop.eup %243  ;;  %155 = vst [vmem:[%s760_s1 + $0x90] sm:$0xff] %v242_v49  ;;  %263 = vtanh.f32 %v37_v46  ;;  %v69_v46 = vld [vmem:[%s759_s0 + $0x1e8] sm:$0xff] }
  0x20   :  { %v246_v53 = vpop.eup %245  ;;  %156 = vst.msk [vmem:[%s760_s1 + $0x98] sm:$0xff] %vm137_vm0, %v244_v51  ;;  %265 = vtanh.f32 %v38_v48  ;;  %v70_v48 = vld [vmem:[%s759_s0 + $0x1f0] sm:$0xff] }
  0x21   :  { %v248_v55 = vpop.eup %247  ;;  %157 = vst [vmem:[%s760_s1 + $0xa0] sm:$0xff] %v246_v53  ;;  %267 = vtanh.f32 %v39_v50  ;;  %v71_v50 = vld [vmem:[%s759_s0 + $0x1f8] sm:$0xff] }
  0x22   :  { %v250_v57 = vpop.eup %249  ;;  %158 = vst.msk [vmem:[%s760_s1 + $0xa8] sm:$0xff] %vm137_vm0, %v248_v55  ;;  %269 = vtanh.f32 %v40_v52 }
  0x23   :  { %v252_v59 = vpop.eup %251  ;;  %159 = vst [vmem:[%s760_s1 + $0xb0] sm:$0xff] %v250_v57  ;;  %271 = vtanh.f32 %v41_v54 }
  0x24   :  { %v254_v61 = vpop.eup %253  ;;  %160 = vst.msk [vmem:[%s760_s1 + $0xb8] sm:$0xff] %vm137_vm0, %v252_v59  ;;  %273 = vtanh.f32 %v42_v56 }
  0x25   :  { %v256_v63 = vpop.eup %255  ;;  %161 = vst [vmem:[%s760_s1 + $0xc0] sm:$0xff] %v254_v61  ;;  %275 = vtanh.f32 %v43_v58 }
  0x26   :  { %v258_v1 = vpop.eup %257  ;;  %162 = vst.msk [vmem:[%s760_s1 + $0xc8] sm:$0xff] %vm137_vm0, %v256_v63  ;;  %277 = vtanh.f32 %v44_v60 }
  0x27   :  { %v260_v3 = vpop.eup %259  ;;  %163 = vst [vmem:[%s760_s1 + $0xd0] sm:$0xff] %v258_v1  ;;  %279 = vtanh.f32 %v45_v62 }
  0x28   :  { %v262_v5 = vpop.eup %261  ;;  %164 = vst.msk [vmem:[%s760_s1 + $0xd8] sm:$0xff] %vm137_vm0, %v260_v3  ;;  %281 = vtanh.f32 %v46_v0 }
  0x29   :  { %v264_v7 = vpop.eup %263  ;;  %165 = vst [vmem:[%s760_s1 + $0xe0] sm:$0xff] %v262_v5  ;;  %283 = vtanh.f32 %v47_v2 }
  0x2a   :  { %v266_v9 = vpop.eup %265  ;;  %166 = vst.msk [vmem:[%s760_s1 + $0xe8] sm:$0xff] %vm137_vm0, %v264_v7  ;;  %285 = vtanh.f32 %v48_v4 }
  0x2b   :  { %v268_v11 = vpop.eup %267  ;;  %167 = vst [vmem:[%s760_s1 + $0xf0] sm:$0xff] %v266_v9  ;;  %287 = vtanh.f32 %v49_v6 }
  0x2c   :  { %v270_v13 = vpop.eup %269  ;;  %168 = vst.msk [vmem:[%s760_s1 + $0xf8] sm:$0xff] %vm137_vm0, %v268_v11  ;;  %289 = vtanh.f32 %v50_v8 }
  0x2d   :  { %v272_v15 = vpop.eup %271  ;;  %169 = vst [vmem:[%s760_s1 + $0x100] sm:$0xff] %v270_v13  ;;  %291 = vtanh.f32 %v51_v10 }
  0x2e   :  { %v274_v17 = vpop.eup %273  ;;  %170 = vst.msk [vmem:[%s760_s1 + $0x108] sm:$0xff] %vm137_vm0, %v272_v15  ;;  %293 = vtanh.f32 %v52_v12 }
  0x2f   :  { %v276_v19 = vpop.eup %275  ;;  %171 = vst [vmem:[%s760_s1 + $0x110] sm:$0xff] %v274_v17  ;;  %295 = vtanh.f32 %v53_v14 }
  0x30   :  { %v278_v21 = vpop.eup %277  ;;  %172 = vst.msk [vmem:[%s760_s1 + $0x118] sm:$0xff] %vm137_vm0, %v276_v19  ;;  %297 = vtanh.f32 %v54_v16 }
  0x31   :  { %v280_v23 = vpop.eup %279  ;;  %173 = vst [vmem:[%s760_s1 + $0x120] sm:$0xff] %v278_v21  ;;  %299 = vtanh.f32 %v55_v18 }
  0x32   :  { %v282_v25 = vpop.eup %281  ;;  %174 = vst.msk [vmem:[%s760_s1 + $0x128] sm:$0xff] %vm137_vm0, %v280_v23  ;;  %301 = vtanh.f32 %v56_v20 }
  0x33   :  { %v284_v27 = vpop.eup %283  ;;  %175 = vst [vmem:[%s760_s1 + $0x130] sm:$0xff] %v282_v25  ;;  %303 = vtanh.f32 %v57_v22 }
  0x34   :  { %v286_v29 = vpop.eup %285  ;;  %176 = vst.msk [vmem:[%s760_s1 + $0x138] sm:$0xff] %vm137_vm0, %v284_v27  ;;  %305 = vtanh.f32 %v58_v24 }
  0x35   :  { %v288_v31 = vpop.eup %287  ;;  %177 = vst [vmem:[%s760_s1 + $0x140] sm:$0xff] %v286_v29  ;;  %307 = vtanh.f32 %v59_v26 }
  0x36   :  { %v290_v33 = vpop.eup %289  ;;  %178 = vst.msk [vmem:[%s760_s1 + $0x148] sm:$0xff] %vm137_vm0, %v288_v31  ;;  %309 = vtanh.f32 %v60_v28 }
  0x37   :  { %v292_v35 = vpop.eup %291  ;;  %179 = vst [vmem:[%s760_s1 + $0x150] sm:$0xff] %v290_v33  ;;  %311 = vtanh.f32 %v61_v30 }
  0x38   :  { %v294_v37 = vpop.eup %293  ;;  %180 = vst.msk [vmem:[%s760_s1 + $0x158] sm:$0xff] %vm137_vm0, %v292_v35  ;;  %313 = vtanh.f32 %v62_v32 }
  0x39   :  { %v296_v39 = vpop.eup %295  ;;  %181 = vst [vmem:[%s760_s1 + $0x160] sm:$0xff] %v294_v37  ;;  %315 = vtanh.f32 %v63_v34 }
  0x3a   :  { %v298_v41 = vpop.eup %297  ;;  %182 = vst.msk [vmem:[%s760_s1 + $0x168] sm:$0xff] %vm137_vm0, %v296_v39  ;;  %317 = vtanh.f32 %v64_v36 }
  0x3b   :  { %v300_v43 = vpop.eup %299  ;;  %183 = vst [vmem:[%s760_s1 + $0x170] sm:$0xff] %v298_v41  ;;  %319 = vtanh.f32 %v65_v38 }
  0x3c   :  { %v302_v45 = vpop.eup %301  ;;  %184 = vst.msk [vmem:[%s760_s1 + $0x178] sm:$0xff] %vm137_vm0, %v300_v43  ;;  %321 = vtanh.f32 %v66_v40 }
  0x3d   :  { %v304_v47 = vpop.eup %303  ;;  %185 = vst [vmem:[%s760_s1 + $0x180] sm:$0xff] %v302_v45  ;;  %323 = vtanh.f32 %v67_v42 }
  0x3e   :  { %v306_v49 = vpop.eup %305  ;;  %186 = vst.msk [vmem:[%s760_s1 + $0x188] sm:$0xff] %vm137_vm0, %v304_v47  ;;  %325 = vtanh.f32 %v68_v44 }
  0x3f   :  { %v308_v51 = vpop.eup %307  ;;  %187 = vst [vmem:[%s760_s1 + $0x190] sm:$0xff] %v306_v49  ;;  %327 = vtanh.f32 %v69_v46 }
  0x40   :  { %v310_v52 = vpop.eup %309  ;;  %188 = vst.msk [vmem:[%s760_s1 + $0x198] sm:$0xff] %vm137_vm0, %v308_v51  ;;  %329 = vtanh.f32 %v70_v48 }
  0x41   :  { %v312_v53 = vpop.eup %311  ;;  %189 = vst [vmem:[%s760_s1 + $0x1a0] sm:$0xff] %v310_v52  ;;  %331 = vtanh.f32 %v71_v50 }
  0x42   :  { %v314_v54 = vpop.eup %313  ;;  %190 = vst.msk [vmem:[%s760_s1 + $0x1a8] sm:$0xff] %vm137_vm0, %v312_v53 }
  0x43   :  { %v316_v55 = vpop.eup %315  ;;  %191 = vst [vmem:[%s760_s1 + $0x1b0] sm:$0xff] %v314_v54 }
  0x44   :  { %v318_v56 = vpop.eup %317  ;;  %192 = vst.msk [vmem:[%s760_s1 + $0x1b8] sm:$0xff] %vm137_vm0, %v316_v55 }
  0x45   :  { %v320_v57 = vpop.eup %319  ;;  %193 = vst [vmem:[%s760_s1 + $0x1c0] sm:$0xff] %v318_v56 }
  0x46   :  { %v322_v58 = vpop.eup %321  ;;  %194 = vst.msk [vmem:[%s760_s1 + $0x1c8] sm:$0xff] %vm137_vm0, %v320_v57 }
  0x47   :  { %v324_v59 = vpop.eup %323  ;;  %195 = vst [vmem:[%s760_s1 + $0x1d0] sm:$0xff] %v322_v58 }
  0x48   :  { %v326_v60 = vpop.eup %325  ;;  %196 = vst.msk [vmem:[%s760_s1 + $0x1d8] sm:$0xff] %vm137_vm0, %v324_v59 }
  0x49   :  { %v328_v61 = vpop.eup %327  ;;  %197 = vst [vmem:[%s760_s1 + $0x1e0] sm:$0xff] %v326_v60 }
  0x4a   :  { %v330_v62 = vpop.eup %329  ;;  %198 = vst.msk [vmem:[%s760_s1 + $0x1e8] sm:$0xff] %vm137_vm0, %v328_v61 }
  0x4b   :  { %v332_v63 = vpop.eup %331  ;;  %199 = vst [vmem:[%s760_s1 + $0x1f0] sm:$0xff] %v330_v62 }
  0x4c   :  { %200 = vst.msk [vmem:[%s760_s1 + $0x1f8] sm:$0xff] %vm137_vm0, %v332_v63 }

</bundles_post_ra>
